<compile_context>
chip_gen: v7x
topology: tpu7x:2x2x1
jax: 0.10.0
libtpu: 0.0.40
codegen_flags: <defaults>
</compile_context>

<pallas_src>
import jax
import jax.numpy as jnp
from jax.experimental import pallas as pl
from jax.experimental.pallas import tpu as pltpu


def _proj_kernel(x_ref, w_ref, b_ref, o_ref):
    # x_ref: [T, tbn, G*C]   lane index = g*C + c   (node n = group*G + g), lane-dense
    # w_ref: [T*G*C, G*H]    block-diagonal over g; K index = t*(G*C) + g*C + c
    # b_ref: [1, G*H]  f32   bias tiled G times (lane index = g*H + h)
    # o_ref: [tbn, G*H]      lane index = g*H + h  -> free reshape to [N, H] in the wrapper
    T = x_ref.shape[0]
    # Concatenating the T lane-groups along lanes (128-aligned) is just vreg placement.
    lhs = jnp.concatenate([x_ref[t] for t in range(T)], axis=-1)      # [tbn, T*G*C]
    acc = jnp.dot(lhs, w_ref[...], preferred_element_type=jnp.float32)
    acc = acc + b_ref[...].astype(jnp.float32)                        # broadcast over rows
    o_ref[...] = jnp.maximum(acc, 0.0).astype(o_ref.dtype)


def _packing_group(channel: int):
    """Node-group size G such that G*channel lanes are dense (multiple of 128)."""
    if 128 % channel == 0:
        return 128 // channel
    if channel % 128 == 0:
        return 1
    return None


def _pick_group_tile(num_groups: int, cap: int) -> int:
    """Largest multiple-of-8 divisor of num_groups that is <= cap (with sane fallbacks)."""
    if num_groups <= cap:
        return num_groups                      # full axis is always a legal block
    start = cap - cap % 8
    for d in range(start, 7, -8):
        if num_groups % d == 0:
            return d
    # No nice divisor: use a multiple-of-8 tile and let Pallas mask the edge block.
    return start if start >= 8 else num_groups


def _proj_reference(x, weight, bias):
    """Pure-JAX reference / escape-hatch path (f32 result)."""
    out = jnp.einsum("btnc,hct->bnh",
                     x.astype(jnp.float32), weight[..., 0].astype(jnp.float32),
                     preferred_element_type=jnp.float32)
    return jnp.maximum(out + bias.astype(jnp.float32)[None, None, :], 0.0)


def proj_layer_forward(x, weight, bias, *, out_dtype=None, use_pallas=None,
                       max_nodes_per_tile=4096):
    """
    x:      [B, T, N, C]  float32 or bfloat16
    weight: [H, C, T, 1]  (PyTorch Conv2d(channel, dec_hid_dim, (T, 1)) layout)
    bias:   [H]
    returns [B, N, H] in out_dtype (default: x.dtype)
    """
    B, T, N, C = x.shape
    H = weight.shape[0]
    assert weight.shape == (H, C, T, 1), weight.shape
    out_dtype = out_dtype or x.dtype

    G = _packing_group(C)
    packable = (G is not None) and (N % G == 0)

    if use_pallas is None:
        # Escape hatch: at <~1 MiB of activations (or awkward channel counts) a fused
        # XLA einsum beats a 1-2 step, unpipelined pallas_call.
        use_pallas = packable and (x.size * x.dtype.itemsize >= (1 << 20))
    if use_pallas and not packable:
        raise ValueError(f"channel={C}, num_nodes={N} cannot be lane-packed; "
                         f"call with use_pallas=False")
    if not use_pallas:
        return _proj_reference(x, weight, bias).astype(out_dtype)

    num_groups = N // G
    GC, GH = G * C, G * H

    # --- Parameter packing (only T*C*H real values; do this once at init in a real model).
    w2 = jnp.transpose(weight[..., 0], (2, 1, 0)).astype(x.dtype)       # [T, C, H]
    eye = jnp.eye(G, dtype=w2.dtype)
    # w_packed[t*(G*C) + g*C + c, k*H + h] = (g == k) * w2[t, c, h]
    w_packed = jnp.einsum("gk,tch->tgckh", eye, w2).reshape(T * GC, GH)
    b_packed = jnp.tile(bias.astype(jnp.float32), G).reshape(1, GH)     # [1, G*H]

    # Lane-dense view of x: pure metadata (N and C are the contiguous minor dims).
    x_view = x.reshape(B, T, num_groups, GC)

    # --- Tiling over node groups.
    cap = max(8, max_nodes_per_tile // G)
    tbn = _pick_group_tile(num_groups, cap)
    n_blocks = pl.cdiv(num_groups, tbn)
    # v7x has 2 TensorCores: make sure the grid has >= 2 steps when we can split.
    if B * n_blocks < 2 and tbn >= 16:
        tbn = max(8, (tbn // 2 + 7) // 8 * 8)
        n_blocks = pl.cdiv(num_groups, tbn)
    grid = (B, n_blocks)

    # Actual MXU flops (including the block-diagonal zero blocks) for the scheduler hint.
    flops = 2 * B * n_blocks * tbn * (T * GC) * GH
    bytes_accessed = (x.size * x.dtype.itemsize
                      + w_packed.size * w_packed.dtype.itemsize
                      + b_packed.size * 4
                      + B * N * H * jnp.dtype(out_dtype).itemsize)

    out_packed = pl.pallas_call(
        _proj_kernel,
        out_shape=jax.ShapeDtypeStruct((B, num_groups, GH), out_dtype),
        grid=grid,
        in_specs=[
            # x[b, :, j*tbn:(j+1)*tbn, :]: T contiguous HBM chunks per step, dense in VMEM.
            pl.BlockSpec((None, T, tbn, GC), lambda b, j: (b, 0, j, 0)),
            # Packed weight / bias: constant across the whole grid.
            pl.BlockSpec((T * GC, GH), lambda b, j: (0, 0)),
            pl.BlockSpec((1, GH), lambda b, j: (0, 0)),
        ],
        out_specs=pl.BlockSpec((None, tbn, GH), lambda b, j: (b, j, 0)),
        compiler_params=pltpu.CompilerParams(
            dimension_semantics=("parallel", "parallel")),
        cost_estimate=pl.CostEstimate(
            flops=flops, transcendentals=0, bytes_accessed=bytes_accessed),
    )(x_view, w_packed, b_packed)

    # (group, g*H + h) -> (n, h): free reshape of contiguous trailing dims.
    return out_packed.reshape(B, N, H)


if __name__ == "__main__":
    # Small shapes consistent with the module's forward:
    # batch=2, time_step=8, num_nodes=256, channel=4, dec_hid_dim=32.
    B, T, N, C, H = 2, 8, 256, 4, 32

    key = jax.random.PRNGKey(0)
    kx, kw, kb = jax.random.split(key, 3)
    x = jax.random.normal(kx, (B, T, N, C), dtype=jnp.float32)
    weight = jax.random.normal(kw, (H, C, T, 1), dtype=jnp.float32) * 0.1
    bias = jax.random.normal(kb, (H,), dtype=jnp.float32) * 0.1

    ref = _proj_reference(x, weight, bias)

    # f32 run through the Pallas path -- exact semantics of the PyTorch module.
    out = jax.block_until_ready(proj_layer_forward(x, weight, bias, use_pallas=True))
    assert out.shape == (B, N, H), out.shape
    assert jnp.allclose(out, ref, atol=1e-4, rtol=1e-4), "f32 mismatch vs reference"

    # bf16 inputs + bf16 stores (default out_dtype = x.dtype): ~2x less HBM read AND
    # write traffic; accumulation / bias / ReLU stay f32 in-kernel.
    out_bf = jax.block_until_ready(
        proj_layer_forward(x.astype(jnp.bfloat16), weight.astype(jnp.bfloat16), bias,
                           use_pallas=True))
    assert out_bf.dtype == jnp.bfloat16
    assert jnp.allclose(out_bf.astype(jnp.float32), ref, atol=3e-2, rtol=3e-2), \
        "bf16 mismatch vs reference"

    # Auto heuristic at these tiny sizes takes the pure-JAX escape hatch.
    out_auto = jax.block_until_ready(proj_layer_forward(x, weight, bias))
    assert jnp.allclose(out_auto, ref, atol=1e-4, rtol=1e-4), "fallback mismatch"

    print("KERNEL_OK")
</pallas_src>

<mosaic_0001>
module attributes {stable_mosaic.version = 11 : i64} {
  func.func @_proj_kernel(%arg0: i32, %arg1: i32, %arg2: memref<1x8x8x128xf32, #tpu.memory_space<vmem>>, %arg3: memref<1024x1024xf32, #tpu.memory_space<vmem>>, %arg4: memref<1x1024xf32, #tpu.memory_space<vmem>>, %arg5: memref<1x8x1024xf32, #tpu.memory_space<vmem>>) attributes {dimension_semantics = [#tpu.dimension_semantics<parallel>, #tpu.dimension_semantics<parallel>], iteration_bounds = array<i64: 2, 1>, scalar_prefetch = 0 : i64, scratch_operands = 0 : i64, tpu.core_type = #tpu.core_type<tc>, window_params = [{transform_indices = @transform_0, window_bounds = array<i64: 1, 8, 8, 128>}, {pipeline_mode = #tpu.pipeline_mode<synchronous>, transform_indices = @transform_1, window_bounds = array<i64: 1024, 1024>}, {pipeline_mode = #tpu.pipeline_mode<synchronous>, transform_indices = @transform_2, window_bounds = array<i64: 1, 1024>}, {transform_indices = @transform_3, window_bounds = array<i64: 1, 8, 1024>}]} {
    %c0 = arith.constant 0 : index
    %c0_0 = arith.constant 0 : index
    %c0_1 = arith.constant 0 : index
    %c0_2 = arith.constant 0 : index
    %0 = vector.load %arg2[%c0, %c0_0, %c0_1, %c0_2] : memref<1x8x8x128xf32, #tpu.memory_space<vmem>>, vector<1x1x8x128xf32>
    %1 = vector.shape_cast %0 : vector<1x1x8x128xf32> to vector<8x128xf32>
    %c0_3 = arith.constant 0 : index
    %c1 = arith.constant 1 : index
    %c0_4 = arith.constant 0 : index
    %c0_5 = arith.constant 0 : index
    %2 = vector.load %arg2[%c0_3, %c1, %c0_4, %c0_5] : memref<1x8x8x128xf32, #tpu.memory_space<vmem>>, vector<1x1x8x128xf32>
    %3 = vector.shape_cast %2 : vector<1x1x8x128xf32> to vector<8x128xf32>
    %c0_6 = arith.constant 0 : index
    %c2 = arith.constant 2 : index
    %c0_7 = arith.constant 0 : index
    %c0_8 = arith.constant 0 : index
    %4 = vector.load %arg2[%c0_6, %c2, %c0_7, %c0_8] : memref<1x8x8x128xf32, #tpu.memory_space<vmem>>, vector<1x1x8x128xf32>
    %5 = vector.shape_cast %4 : vector<1x1x8x128xf32> to vector<8x128xf32>
    %c0_9 = arith.constant 0 : index
    %c3 = arith.constant 3 : index
    %c0_10 = arith.constant 0 : index
    %c0_11 = arith.constant 0 : index
    %6 = vector.load %arg2[%c0_9, %c3, %c0_10, %c0_11] : memref<1x8x8x128xf32, #tpu.memory_space<vmem>>, vector<1x1x8x128xf32>
    %7 = vector.shape_cast %6 : vector<1x1x8x128xf32> to vector<8x128xf32>
    %c0_12 = arith.constant 0 : index
    %c4 = arith.constant 4 : index
    %c0_13 = arith.constant 0 : index
    %c0_14 = arith.constant 0 : index
    %8 = vector.load %arg2[%c0_12, %c4, %c0_13, %c0_14] : memref<1x8x8x128xf32, #tpu.memory_space<vmem>>, vector<1x1x8x128xf32>
    %9 = vector.shape_cast %8 : vector<1x1x8x128xf32> to vector<8x128xf32>
    %c0_15 = arith.constant 0 : index
    %c5 = arith.constant 5 : index
    %c0_16 = arith.constant 0 : index
    %c0_17 = arith.constant 0 : index
    %10 = vector.load %arg2[%c0_15, %c5, %c0_16, %c0_17] : memref<1x8x8x128xf32, #tpu.memory_space<vmem>>, vector<1x1x8x128xf32>
    %11 = vector.shape_cast %10 : vector<1x1x8x128xf32> to vector<8x128xf32>
    %c0_18 = arith.constant 0 : index
    %c6 = arith.constant 6 : index
    %c0_19 = arith.constant 0 : index
    %c0_20 = arith.constant 0 : index
    %12 = vector.load %arg2[%c0_18, %c6, %c0_19, %c0_20] : memref<1x8x8x128xf32, #tpu.memory_space<vmem>>, vector<1x1x8x128xf32>
    %13 = vector.shape_cast %12 : vector<1x1x8x128xf32> to vector<8x128xf32>
    %c0_21 = arith.constant 0 : index
    %c7 = arith.constant 7 : index
    %c0_22 = arith.constant 0 : index
    %c0_23 = arith.constant 0 : index
    %14 = vector.load %arg2[%c0_21, %c7, %c0_22, %c0_23] : memref<1x8x8x128xf32, #tpu.memory_space<vmem>>, vector<1x1x8x128xf32>
    %15 = vector.shape_cast %14 : vector<1x1x8x128xf32> to vector<8x128xf32>
    %16 = tpu.concatenate %1, %3, %5, %7, %9, %11, %13, %15 in 1 : vector<8x128xf32>, vector<8x128xf32>, vector<8x128xf32>, vector<8x128xf32>, vector<8x128xf32>, vector<8x128xf32>, vector<8x128xf32>, vector<8x128xf32> -> vector<8x1024xf32>
    %c0_24 = arith.constant 0 : index
    %c0_25 = arith.constant 0 : index
    %17 = vector.load %arg3[%c0_24, %c0_25] : memref<1024x1024xf32, #tpu.memory_space<vmem>>, vector<1024x1024xf32>
    %cst = arith.constant dense<0.000000e+00> : vector<8x1024xf32>
    %18 = tpu.matmul %16, %17, %cst {dimension_numbers = #tpu.dot_dimension_numbers<[1], [0], [0], [1], [0, 0, 1, 1], [], []>} : vector<8x1024xf32>, vector<1024x1024xf32>, vector<8x1024xf32> -> vector<8x1024xf32>
    %c0_26 = arith.constant 0 : index
    %c0_27 = arith.constant 0 : index
    %19 = vector.load %arg4[%c0_26, %c0_27] : memref<1x1024xf32, #tpu.memory_space<vmem>>, vector<1x1024xf32>
    %20 = vector.broadcast %19 : vector<1x1024xf32> to vector<8x1024xf32>
    %21 = arith.addf %18, %20 : vector<8x1024xf32>
    %cst_28 = arith.constant 0.000000e+00 : f32
    %22 = vector.broadcast %cst_28 : f32 to vector<8x1024xf32>
    %23 = arith.maximumf %21, %22 : vector<8x1024xf32>
    %c0_29 = arith.constant 0 : index
    %c0_30 = arith.constant 0 : index
    %c0_31 = arith.constant 0 : index
    %24 = vector.load %arg5[%c0_29, %c0_30, %c0_31] : memref<1x8x1024xf32, #tpu.memory_space<vmem>>, vector<1x8x1024xf32>
    %25 = vector.shape_cast %24 : vector<1x8x1024xf32> to vector<8x1024xf32>
    %26 = vector.shape_cast %23 : vector<8x1024xf32> to vector<1x8x1024xf32>
    tpu.vector_store %arg5[%c0_29, %c0_30, %c0_31], %26 {strides = array<i32>} : memref<1x8x1024xf32, #tpu.memory_space<vmem>>, vector<1x8x1024xf32>,
    return
  }
  func.func @transform_0(%arg0: i32, %arg1: i32) -> (i32, i32, i32, i32) {
    %c0_i32 = arith.constant 0 : i32
    %c0_i32_0 = arith.constant 0 : i32
    %c0_i32_1 = arith.constant 0 : i32
    return %arg0, %c0_i32, %arg1, %c0_i32_0 : i32, i32, i32, i32
  }
  func.func @transform_1(%arg0: i32, %arg1: i32) -> (i32, i32) {
    %c0_i32 = arith.constant 0 : i32
    %c0_i32_0 = arith.constant 0 : i32
    %c0_i32_1 = arith.constant 0 : i32
    return %c0_i32, %c0_i32_0 : i32, i32
  }
  func.func @transform_2(%arg0: i32, %arg1: i32) -> (i32, i32) {
    %c0_i32 = arith.constant 0 : i32
    %c0_i32_0 = arith.constant 0 : i32
    %c0_i32_1 = arith.constant 0 : i32
    return %c0_i32, %c0_i32_0 : i32, i32
  }
  func.func @transform_3(%arg0: i32, %arg1: i32) -> (i32, i32, i32) {
    %c0_i32 = arith.constant 0 : i32
    %c0_i32_0 = arith.constant 0 : i32
    return %arg0, %arg1, %c0_i32 : i32, i32, i32
  }
}

</mosaic_0001>

<bundles_post_ra>
// kernel: tpu_custom_call.1
= control target key start
LH: loop header
LB: loop body
LE: loop exit
PB: predicated region body
PF: predicated region fallthrough
CT: control target
= control target key end

     0   :  { %8 = vsyncpa [#allocation3], 0  ;;  %s4272_s0 = inlined_call_operand.hbm [shape: f32[2,8,8,128], index: 0, kind: input, shape index: {}]   ;;  %s4273_s1 = inlined_call_operand.hbm [shape: f32[1024,1024], index: 1, kind: input, shape index: {}]   ;;  %s4274_s2 = inlined_call_operand.hbm [shape: f32[1,1024], index: 2, kind: input, shape index: {}]   ;;  %s4275_s3 = inlined_call_operand.hbm [shape: f32[2,8,1024], index: 3, kind: output, shape index: {}]  }
   0x1   :  { %10 = vsyncpa [#allocation3 + $0x1], 0 }
   0x2   :  { %11 = vsyncpa [#allocation6], 0 }
   0x3   :  { %12 = vsyncpa [#allocation4], 0 }
   0x4   :  { %14 = vsyncpa [#allocation4 + $0x1], 0  ;;  %s3966_s12 = smov 0   ;;  %s3968_s13 = smov 0  }
   0x5   :  { %s3970_s14 = smov 0   ;;  %s3972_s15 = smov 0  }
   0x6   :  { %s3974_s16 = smov 0   ;;  %s3976_s17 = smov 0  }
   0x7 LB: > { %s2585_s18 = sadd.s32 4294967295, %s3936_s17   ;;  %s2586_s19 = sadd.s32 4294967294, %s3936_s17   ;;  %s3936_s17 = sphi %s3976_s17, %s20_s17   ;;  %s3932_s16 = sphi %s3974_s16, %s4297_s16   ;;  %s3928_s15 = sphi %s3972_s15, %s4296_s15   ;;  %s3924_s14 = sphi %s3970_s14, %s4295_s14   ;;  %s3920_s13 = sphi %s3968_s13, %s4294_s13   ;;  %s3916_s12 = sphi %s3966_s12, %s4293_s12  }
   0x8   : > { %p54_p0 = scmp.ne.s32.totalorder %s3920_s13, %s3916_s12  ;;  %p4000_p1 = scmp.eq.s32.totalorder %s2585_s18, 0 }
   0x9   : > { %p4004_p2 = scmp.eq.s32.totalorder %s2585_s18, 1  ;;  %p128_p3 = scmp.eq.s32.totalorder %s2586_s19, 1 }
   0xa   : > { %s4280_s20 = scalar_select %p4000_p1, 1, 0 }
   0xb   : > { %p4010_p4 = por %p4000_p1, %p54_p0  ;;  %p2587_p5 = scmp.ge.s32.totalorder %s3936_s17, 1 }
   0xc   : > { %p4015_p6 = por %p128_p3, %p54_p0  ;;  %p135_p7 = scmp.lt.s32.totalorder %s3936_s17, 3 }
   0xd   : > { %s4282_s22 = scalar_select %p4010_p4, 1, 0 }
   0xe   : > { %s4283_s23 = scalar_select %p4015_p6, 1, 0 }
   0xf   : > { %p4020_p8 = pnand %p2587_p5, %p135_p7  ;;  %s3938_s25 = smov [#allocation5]  }
  0x10   : > { %s147_s26 = sshll.u32 %s3938_s25, 4  ;;  %s3939_s28 = smov [#allocation7]   ;;  %s4024_s26 = int_to_ptr.vmem [resolvable:$true] %s147_s26 }
  0x11   : > { %p3681_p9 = pneg %p4020_p8  ;;  %s161_s29 = sshll.u32 %s3939_s28, 4  ;;  %s4035_s29 = int_to_ptr.vmem [resolvable:$true] %s161_s29 }
  0x12   : > { %s3764_s5 = scalar_lea.hbm %s4273_s1, 131072 }
  0x13   : > { %p4031_p11 = pnand %p3681_p9, %p4000_p1  ;;  %p3765_p12 = scmp.ne.s32.totalorder %s4273_s1, %s3764_s5 }
  0x14   : > { %p3771_p5 = scmp.lt.u32.totalorder %s3764_s5, %s4273_s1 }
  0x15   : > { %p3766_p13 = pneg %p4031_p11 }
  0x17   : > { %p3767_p0 = pnand %p3766_p13, %p3765_p12 }
  0x19   : > { %p3768_p3 = pneg %p3767_p0 }
  0x1b   : > { %p3773_p7 = pnand %p3771_p5, %p3768_p3 }
  0x1d   : > { %3776 = shalt.err (!%p3773_p7)
}
  0x1e   : > { %s3777_s10 = scalar_lea.vmem %s4024_s26, 131072  ;;  %p3785_p1 = scmp.lt.s32.totalorder %s4024_s26, %s4024_s26 }
  0x1f   : > { %p3778_p9 = scmp.ne.s32.totalorder %s4024_s26, %s3777_s10  ;;  %p3786_p12 = scmp.lt.s32.totalorder %s3777_s10, %s3777_s10 }
  0x21   : > { %p3780_p10 = pnand %p3778_p9, %p3766_p13  ;;  %p3787_p0 = por %p3786_p12, %p3785_p1 }
  0x23   : > { %p3781_p6 = pneg %p3780_p10 }
  0x25   : > { %p3788_p4 = pnand %p3787_p0, %p3781_p6 }
  0x27   : > { %3791 = shalt.err (!%p3788_p4)
}
  0x28   : > { %s3940_s11 = smov 1024   ;;  %s3941_s18 = smov 64  }
  0x29   : > { %3684 = dma.hbm_to_vmem [thread:$0]  (!%p4031_p11), %s4273_s1, 131072, %s4024_s26, [#allocation6], %s3940_s11, %s3940_s11, %s3941_s18  }
  0x2a   : > { %s3792_s4 = scalar_lea.hbm %s4274_s2, 128 }
  0x2b   : > { %p3793_p1 = scmp.ne.s32.totalorder %s4274_s2, %s3792_s4  ;;  %p3799_p10 = scmp.lt.u32.totalorder %s3792_s4, %s4274_s2 }
  0x2d   : > { %p3795_p4 = pnand %p3793_p1, %p3766_p13 }
  0x2f   : > { %p3796_p6 = pneg %p3795_p4 }
  0x31   : > { %p3801_p3 = pnand %p3799_p10, %p3796_p6 }
  0x33   : > { %3804 = shalt.err (!%p3801_p3)
}
  0x34   : > { %s3805_s26 = scalar_lea.vmem %s4035_s29, 128  ;;  %p3813_p12 = scmp.lt.s32.totalorder %s4035_s29, %s4035_s29 }
  0x35   : > { %p3806_p5 = scmp.ne.s32.totalorder %s4035_s29, %s3805_s26  ;;  %p3814_p0 = scmp.lt.s32.totalorder %s3805_s26, %s3805_s26 }
  0x37   : > { %p3808_p7 = pnand %p3806_p5, %p3766_p13  ;;  %p3815_p1 = por %p3814_p0, %p3813_p12 }
  0x39   : > { %p3809_p9 = pneg %p3808_p7 }
  0x3b   : > { %p3816_p4 = pnand %p3815_p1, %p3809_p9 }
  0x3d   : > { %3819 = shalt.err (!%p3816_p4)
}
  0x3e   : > { %3687 = dma.hbm_to_vmem [thread:$0]  (!%p4031_p11), %s4274_s2, 128, %s4035_s29, [#allocation6]  }
  0x3f   : > { %s32_s11 = sadd.s32 1, %s3932_s16  ;;  %s41_s18 = sadd.s32 1, %s3924_s14 }
  0x40   : > { %p34_p13 = scmp.ge.s32.totalorder %s32_s11, 2  ;;  %p48_p6 = scmp.ne.s32.totalorder %s3924_s14, %s3920_s13 }
  0x41   : > { %p49_p10 = scmp.eq.s32.totalorder %s3936_s17, 0  ;;  %p3698_p3 = scmp.lt.s32.totalorder %s3936_s17, 2 }
  0x42   : > { %s4299_s11 = smov (%p34_p13, %s32_s11), 0  ;;  %p4099_p7 = por %p4004_p2, %p48_p6 }
  0x43   : > { %p50_p5 = por %p49_p10, %p48_p6  ;;  %s36_s19 = ssub.s32 %s3932_s16, %s4299_s11 }
  0x44   : > { %s4286_s27 = scalar_select %p4099_p7, 1, 0 }
  0x45   : > { %s172_s25 = sand.u32 1, %s3924_s14   ;;  %p39_p9 = scmp.eq.s32.totalorder %s36_s19, 0 }
  0x46   : > { %s2591_s29 = sshll.u32 %s172_s25, 6  ;;  %s2611_s28 = sshll.u32 %s3932_s16, 10 }
  0x47   : > { %s4108_s30 = scalar_select %p39_p9, %s3924_s14, %s41_s18  }
  0x48   : > { %s4113_s6 = scalar_lea.hbm %s4272_s0, %s2611_s28  ;;  %s176_s21 = scalar_lea.vmem [#allocation2], %s2591_s29 }
  0x49   : > { %s184_s7 = sshll.u32 %s176_s21, 4  ;;  %p4117_p2 = pnand %p3698_p3, %p50_p5  ;;  %s4121_s7 = int_to_ptr.vmem [resolvable:$true] %s184_s7 }
  0x4a   : > { %s4123_s26 = scalar_lea.sflag [#allocation3], %s172_s25  ;;  %s3820_s9 = scalar_lea.hbm %s4113_s6, 1024 }
  0x4b   : > { %p3821_p11 = scmp.ne.s32.totalorder %s4113_s6, %s3820_s9  ;;  %p3822_p12 = pneg %p4117_p2 }
  0x4c   : > { %s3825_s19 = scalar_lea.hbm %s4272_s0, 2048  ;;  %p3826_p4 = scmp.lt.u32.totalorder %s4113_s6, %s4272_s0 }
  0x4d   : > { %p3823_p0 = pnand %p3822_p12, %p3821_p11  ;;  %p3827_p13 = scmp.lt.u32.totalorder %s3825_s19, %s3820_s9 }
  0x4e   : > { %p3829_p10 = scmp.lt.u32.totalorder %s3820_s9, %s4113_s6 }
  0x4f   : > { %p3824_p1 = pneg %p3823_p0  ;;  %p3828_p6 = por %p3827_p13, %p3826_p4 }
  0x51   : > { %p3830_p3 = por %p3829_p10, %p3828_p6 }
  0x53   : > { %p3831_p5 = pnand %p3830_p3, %p3824_p1 }
  0x55   : > { %3834 = shalt.err (!%p3831_p5)
}
  0x56   : > { %s3835_s25 = scalar_lea.vmem %s4121_s7, 1024  ;;  %s3942_s4 = smov [#allocation2]  }
  0x57   : > { %p3836_p9 = scmp.ne.s32.totalorder %s4121_s7, %s3835_s25  ;;  %s3840_s5 = sshll.u32 %s3942_s4, 4  ;;  %s3841_s5 = int_to_ptr.vmem [resolvable:$false] %s3840_s5 }
  0x58   : > { %s3842_s21 = scalar_lea.vmem %s3841_s5, 2048  ;;  %p3843_p7 = scmp.lt.s32.totalorder %s4121_s7, %s3841_s5 }
  0x59   : > { %p3838_p11 = pnand %p3836_p9, %p3822_p12  ;;  %p3844_p4 = scmp.lt.s32.totalorder %s3842_s21, %s3835_s25 }
  0x5b   : > { %p3839_p0 = pneg %p3838_p11  ;;  %p3845_p13 = por %p3844_p4, %p3843_p7 }
  0x5d   : > { %p3846_p6 = pnand %p3845_p13, %p3839_p0 }
  0x5f   : > { %3849 = shalt.err (!%p3846_p6)
}
  0x60   : > { %s3943_s9 = smov 128   ;;  %s3944_s10 = smov 8  }
  0x61   : > { %3691 = dma.hbm_to_vmem [thread:$0]  (!%p4117_p2), %s4113_s6, 1024, %s4121_s7, %s4123_s26, %s3943_s9, %s3943_s9, %s3944_s10  }
  0x62   : > { %196 = sbr.rel (%p4020_p8) target bundleno = 857 (0x359), region = 32  ;;  %s4154_s18 = sand.u32 (!%p4020_p8), 1, %s3920_s13  }
  0x63   : > { %s2595_s19 = sshll.u32 (!%p4020_p8), %s4154_s18, 6  ;;  %s199_s29 = scalar_lea.sflag (!%p4020_p8), [#allocation3], %s4154_s18 }
  0x64   : > { %s4160_s28 = scalar_lea.vmem (!%p4020_p8), [#allocation2], %s2595_s19  ;;  %p4288_p7 = scmp.ne.s32.totalorder (!%p4020_p8), %s4282_s22, 0 }
  0x69   : > { %3903 = dma.done.wait (%p4288_p7), %s199_s29, 1024  }
  0x6a   : > { %3905 = vsyncadd (%p4288_p7), %s199_s29, 4294966272  ;;  %p4289_p2 = scmp.ne.s32.totalorder %s4280_s20, 0 }
  0x6c   : > { %3907 = dma.done.wait (%p4289_p2), [#allocation6], 131200  }
  0x6d   : > { %3909 = vsyncadd (%p4289_p2), [#allocation6], 4294836096  ;;  %v249_v0 = vld [vmem:[#allocation5 + $0x8] sm:$0xff]  ;;  %v251_v2 = vld [vmem:[#allocation5 + $0x18] sm:$0xff]  ;;  %s4199_s20 = scalar_lea.vmem [#allocation8], %s2595_s19  ;;  %s2612_s22 = sshll.u32 %s3928_s15, 10 }
  0x6e   : > { %v257_v1 = vld [vmem:[#allocation5 + $0x48] sm:$0xff]  ;;  %v259_v4 = vld [vmem:[#allocation5 + $0x58] sm:$0xff]  ;;  %v248_v5 = vld [vmem:[#allocation5] sm:$0xff]  ;;  %s2483_s24 = sshll.u32 %s4199_s20, 4  ;;  %s4220_s8 = scalar_lea.hbm %s4275_s3, %s2612_s22  ;;  %s4222_s24 = int_to_ptr.vmem [resolvable:$true] %s2483_s24 }
  0x6f   : > { %v2613_v3 = vpack.c.bf16 %v257_v1, %v249_v0  ;;  %v256_v6 = vld [vmem:[#allocation5 + $0x40] sm:$0xff]  ;;  %v2869_v7 = vpack.c.bf16 %v259_v4, %v251_v2  ;;  %v250_v9 = vld [vmem:[#allocation5 + $0x10] sm:$0xff]  ;;  %v265_v11 = vld [vmem:[#allocation5 + $0x88] sm:$0xff]  ;;  %s2467_s15 = scalar_lea.sflag [#allocation4], %s4154_s18  ;;  %s3850_s26 = scalar_lea.vmem %s4222_s24, 1024 }
  0x70   : > { %v2615_v8 = vpack.c.bf16 %v256_v6, %v248_v5  ;;  %v258_v10 = vld [vmem:[#allocation5 + $0x50] sm:$0xff]  ;;  %v273_v13 = vld [vmem:[#allocation5 + $0xc8] sm:$0xff]  ;;  %v267_v14 = vld [vmem:[#allocation5 + $0x98] sm:$0xff]  ;;  %p3851_p8 = scmp.ne.s32.totalorder %s4222_s24, %s3850_s26  ;;  %p4290_p12 = scmp.ne.s32.totalorder %s4286_s27, 0 }
  0x71   : > { %2614 = vmatprep.subr.bf16.mxu0 %v2613_v3  ;;  %v2871_v12 = vpack.c.bf16 %v258_v10, %v250_v9  ;;  %v275_v15 = vld [vmem:[#allocation5 + $0xd8] sm:$0xff]  ;;  %2870 = vmatprep.subr.bf16.mxu1 %v2869_v7  ;;  %v2617_v16 = vpack.c.bf16 %v273_v13, %v265_v11  ;;  %v264_v18 = vld [vmem:[#allocation5 + $0x80] sm:$0xff]  ;;  %v266_v20 = vld [vmem:[#allocation5 + $0x90] sm:$0xff]  ;;  %s3945_s25 = smov [#allocation8]  }
  0x72   : > { %2616 = vmatpush1.bf16.msra.mxu0 %v2615_v8  ;;  %v2873_v17 = vpack.c.bf16 %v275_v15, %v267_v14  ;;  %v272_v19 = vld [vmem:[#allocation5 + $0xc0] sm:$0xff]  ;;  %v274_v22 = vld [vmem:[#allocation5 + $0xd0] sm:$0xff]  ;;  %v281_v23 = vld [vmem:[#allocation5 + $0x108] sm:$0xff]  ;;  %p3852_p1 = pnand %p3851_p8, %p4290_p12  ;;  %s3854_s4 = sshll.u32 %s3945_s25, 4  ;;  %s3855_s4 = int_to_ptr.vmem [resolvable:$false] %s3854_s4 }
  0x73   : > { %2872 = vmatpush1.bf16.msra.mxu1 %v2871_v12  ;;  %v2619_v21 = vpack.c.bf16 %v272_v19, %v264_v18  ;;  %v289_v24 = vld [vmem:[#allocation5 + $0x148] sm:$0xff]  ;;  %2618 = vmatprep.subr.bf16.mxu0 %v2617_v16  ;;  %v2875_v25 = vpack.c.bf16 %v274_v22, %v266_v20  ;;  %v283_v27 = vld [vmem:[#allocation5 + $0x118] sm:$0xff]  ;;  %v280_v29 = vld [vmem:[#allocation5 + $0x100] sm:$0xff]  ;;  %s3856_s5 = scalar_lea.vmem %s3855_s4, 2048  ;;  %p3857_p3 = scmp.lt.s32.totalorder %s4222_s24, %s3855_s4 }
  0x74   : > { %2874 = vmatprep.subr.bf16.mxu1 %v2873_v17  ;;  %v2621_v26 = vpack.c.bf16 %v289_v24, %v281_v23  ;;  %v291_v28 = vld [vmem:[#allocation5 + $0x158] sm:$0xff]  ;;  %v288_v31 = vld [vmem:[#allocation5 + $0x140] sm:$0xff]  ;;  %v282_v32 = vld [vmem:[#allocation5 + $0x110] sm:$0xff]  ;;  %p3853_p10 = pneg %p3852_p1  ;;  %p3858_p5 = scmp.lt.s32.totalorder %s3856_s5, %s3850_s26 }
  0x75   : > { %v2877_v30 = vpack.c.bf16 %v291_v28, %v283_v27  ;;  %v290_v33 = vld [vmem:[#allocation5 + $0x150] sm:$0xff]  ;;  %v2623_v34 = vpack.c.bf16 %v288_v31, %v280_v29  ;;  %v297_v35 = vld [vmem:[#allocation5 + $0x188] sm:$0xff]  ;;  %v299_v37 = vld [vmem:[#allocation5 + $0x198] sm:$0xff] }
  0x76   : > { %2620 = vmatpush1.bf16.msra.mxu0 %v2619_v21  ;;  %v305_v36 = vld [vmem:[#allocation5 + $0x1c8] sm:$0xff]  ;;  %v2879_v38 = vpack.c.bf16 %v290_v33, %v282_v32  ;;  %v307_v40 = vld [vmem:[#allocation5 + $0x1d8] sm:$0xff]  ;;  %v296_v41 = vld [vmem:[#allocation5 + $0x180] sm:$0xff]  ;;  %p3859_p9 = por %p3858_p5, %p3857_p3 }
  0x77   : > { %2876 = vmatpush1.bf16.msra.mxu1 %v2875_v25  ;;  %2622 = vmatprep.subr.bf16.mxu0 %v2621_v26  ;;  %v2625_v39 = vpack.c.bf16 %v305_v36, %v297_v35  ;;  %v304_v42 = vld [vmem:[#allocation5 + $0x1c0] sm:$0xff]  ;;  %v2881_v43 = vpack.c.bf16 %v307_v40, %v299_v37  ;;  %v298_v44 = vld [vmem:[#allocation5 + $0x190] sm:$0xff]  ;;  %v313_v46 = vld [vmem:[#allocation5 + $0x208] sm:$0xff] }
  0x78   : > { %2878 = vmatprep.subr.bf16.mxu1 %v2877_v30  ;;  %v306_v45 = vld [vmem:[#allocation5 + $0x1d0] sm:$0xff]  ;;  %v321_v47 = vld [vmem:[#allocation5 + $0x248] sm:$0xff]  ;;  %v315_v48 = vld [vmem:[#allocation5 + $0x218] sm:$0xff]  ;;  %v2627_v50 = vpack.c.bf16 %v304_v42, %v296_v41  ;;  %p3860_p11 = pnand %p3859_p9, %p3853_p10 }
  0x79   : > { %v323_v49 = vld [vmem:[#allocation5 + $0x258] sm:$0xff]  ;;  %v2883_v51 = vpack.c.bf16 %v306_v45, %v298_v44  ;;  %v2629_v52 = vpack.c.bf16 %v321_v47, %v313_v46  ;;  %v312_v53 = vld [vmem:[#allocation5 + $0x200] sm:$0xff]  ;;  %v314_v55 = vld [vmem:[#allocation5 + $0x210] sm:$0xff] }
  0x7a   : > { %2624 = vmatpush1.bf16.msra.mxu0 %v2623_v34  ;;  %v320_v54 = vld [vmem:[#allocation5 + $0x240] sm:$0xff]  ;;  %v2885_v56 = vpack.c.bf16 %v323_v49, %v315_v48  ;;  %v322_v57 = vld [vmem:[#allocation5 + $0x250] sm:$0xff]  ;;  %v329_v58 = vld [vmem:[#allocation5 + $0x288] sm:$0xff] }
  0x7b   : > { %2880 = vmatpush1.bf16.msra.mxu1 %v2879_v38  ;;  %2626 = vmatprep.subr.bf16.mxu0 %v2625_v39  ;;  %v337_v59 = vld [vmem:[#allocation5 + $0x2c8] sm:$0xff]  ;;  %v331_v60 = vld [vmem:[#allocation5 + $0x298] sm:$0xff]  ;;  %v2631_v62 = vpack.c.bf16 %v320_v54, %v312_v53  ;;  %v2887_v63 = vpack.c.bf16 %v322_v57, %v314_v55  ;;  %v328_v1 = vld [vmem:[#allocation5 + $0x280] sm:$0xff] }
  0x7c   : > { %2882 = vmatprep.subr.bf16.mxu1 %v2881_v43  ;;  %v339_v61 = vld [vmem:[#allocation5 + $0x2d8] sm:$0xff]  ;;  %v2633_v0 = vpack.c.bf16 %v337_v59, %v329_v58  ;;  %v336_v2 = vld [vmem:[#allocation5 + $0x2c0] sm:$0xff]  ;;  %v330_v3 = vld [vmem:[#allocation5 + $0x290] sm:$0xff] }
  0x7d   : > { %v2889_v4 = vpack.c.bf16 %v339_v61, %v331_v60  ;;  %v338_v5 = vld [vmem:[#allocation5 + $0x2d0] sm:$0xff]  ;;  %v345_v6 = vld [vmem:[#allocation5 + $0x308] sm:$0xff]  ;;  %v347_v8 = vld [vmem:[#allocation5 + $0x318] sm:$0xff]  ;;  %v2635_v10 = vpack.c.bf16 %v336_v2, %v328_v1 }
  0x7e   : > { %2628 = vmatpush1.bf16.msra.mxu0 %v2627_v50  ;;  %v353_v7 = vld [vmem:[#allocation5 + $0x348] sm:$0xff]  ;;  %v355_v9 = vld [vmem:[#allocation5 + $0x358] sm:$0xff]  ;;  %v2891_v11 = vpack.c.bf16 %v338_v5, %v330_v3  ;;  %v344_v13 = vld [vmem:[#allocation5 + $0x300] sm:$0xff] }
  0x7f   : > { %2884 = vmatpush1.bf16.msra.mxu1 %v2883_v51  ;;  %2630 = vmatprep.subr.bf16.mxu0 %v2629_v52  ;;  %v2637_v12 = vpack.c.bf16 %v353_v7, %v345_v6  ;;  %v352_v14 = vld [vmem:[#allocation5 + $0x340] sm:$0xff]  ;;  %v346_v15 = vld [vmem:[#allocation5 + $0x310] sm:$0xff]  ;;  %v2893_v16 = vpack.c.bf16 %v355_v9, %v347_v8  ;;  %v361_v18 = vld [vmem:[#allocation5 + $0x388] sm:$0xff] }
  0x80   : > { %2886 = vmatprep.subr.bf16.mxu1 %v2885_v56  ;;  %v354_v17 = vld [vmem:[#allocation5 + $0x350] sm:$0xff]  ;;  %v369_v19 = vld [vmem:[#allocation5 + $0x3c8] sm:$0xff]  ;;  %v363_v20 = vld [vmem:[#allocation5 + $0x398] sm:$0xff]  ;;  %v2639_v22 = vpack.c.bf16 %v352_v14, %v344_v13 }
  0x81   : > { %v371_v21 = vld [vmem:[#allocation5 + $0x3d8] sm:$0xff]  ;;  %v2895_v23 = vpack.c.bf16 %v354_v17, %v346_v15  ;;  %v2641_v24 = vpack.c.bf16 %v369_v19, %v361_v18  ;;  %v360_v25 = vld [vmem:[#allocation5 + $0x380] sm:$0xff]  ;;  %v362_v27 = vld [vmem:[#allocation5 + $0x390] sm:$0xff] }
  0x82   : > { %2632 = vmatpush1.bf16.msra.mxu0 %v2631_v62  ;;  %v368_v26 = vld [vmem:[#allocation5 + $0x3c0] sm:$0xff]  ;;  %v2897_v28 = vpack.c.bf16 %v371_v21, %v363_v20  ;;  %v370_v29 = vld [vmem:[#allocation5 + $0x3d0] sm:$0xff]  ;;  %v377_v30 = vld [vmem:[#allocation5 + $0x408] sm:$0xff] }
  0x83   : > { %2888 = vmatpush1.bf16.msra.mxu1 %v2887_v63  ;;  %2634 = vmatprep.subr.bf16.mxu0 %v2633_v0  ;;  %v385_v31 = vld [vmem:[#allocation5 + $0x448] sm:$0xff]  ;;  %v379_v32 = vld [vmem:[#allocation5 + $0x418] sm:$0xff]  ;;  %v2643_v34 = vpack.c.bf16 %v368_v26, %v360_v25  ;;  %v2899_v35 = vpack.c.bf16 %v370_v29, %v362_v27  ;;  %v376_v37 = vld [vmem:[#allocation5 + $0x400] sm:$0xff] }
  0x84   : > { %2890 = vmatprep.subr.bf16.mxu1 %v2889_v4  ;;  %v387_v33 = vld [vmem:[#allocation5 + $0x458] sm:$0xff]  ;;  %v2645_v36 = vpack.c.bf16 %v385_v31, %v377_v30  ;;  %v384_v38 = vld [vmem:[#allocation5 + $0x440] sm:$0xff]  ;;  %v378_v39 = vld [vmem:[#allocation5 + $0x410] sm:$0xff] }
  0x85   : > { %v2901_v40 = vpack.c.bf16 %v387_v33, %v379_v32  ;;  %v386_v41 = vld [vmem:[#allocation5 + $0x450] sm:$0xff]  ;;  %v393_v42 = vld [vmem:[#allocation5 + $0x488] sm:$0xff]  ;;  %v395_v44 = vld [vmem:[#allocation5 + $0x498] sm:$0xff]  ;;  %v2647_v46 = vpack.c.bf16 %v384_v38, %v376_v37 }
  0x86   : > { %2636 = vmatpush1.bf16.msra.mxu0 %v2635_v10  ;;  %v401_v43 = vld [vmem:[#allocation5 + $0x4c8] sm:$0xff]  ;;  %v403_v45 = vld [vmem:[#allocation5 + $0x4d8] sm:$0xff]  ;;  %v2903_v47 = vpack.c.bf16 %v386_v41, %v378_v39  ;;  %v392_v49 = vld [vmem:[#allocation5 + $0x480] sm:$0xff] }
  0x87   : > { %2892 = vmatpush1.bf16.msra.mxu1 %v2891_v11  ;;  %2638 = vmatprep.subr.bf16.mxu0 %v2637_v12  ;;  %v2649_v48 = vpack.c.bf16 %v401_v43, %v393_v42  ;;  %v400_v50 = vld [vmem:[#allocation5 + $0x4c0] sm:$0xff]  ;;  %v394_v51 = vld [vmem:[#allocation5 + $0x490] sm:$0xff]  ;;  %v2905_v52 = vpack.c.bf16 %v403_v45, %v395_v44  ;;  %v409_v54 = vld [vmem:[#allocation5 + $0x508] sm:$0xff] }
  0x88   : > { %2894 = vmatprep.subr.bf16.mxu1 %v2893_v16  ;;  %v402_v53 = vld [vmem:[#allocation5 + $0x4d0] sm:$0xff]  ;;  %v417_v55 = vld [vmem:[#allocation5 + $0x548] sm:$0xff]  ;;  %v411_v56 = vld [vmem:[#allocation5 + $0x518] sm:$0xff]  ;;  %v2651_v58 = vpack.c.bf16 %v400_v50, %v392_v49 }
  0x89   : > { %v419_v57 = vld [vmem:[#allocation5 + $0x558] sm:$0xff]  ;;  %v2907_v59 = vpack.c.bf16 %v402_v53, %v394_v51  ;;  %v2653_v60 = vpack.c.bf16 %v417_v55, %v409_v54  ;;  %v408_v61 = vld [vmem:[#allocation5 + $0x500] sm:$0xff]  ;;  %v410_v63 = vld [vmem:[#allocation5 + $0x510] sm:$0xff] }
  0x8a   : > { %2640 = vmatpush1.bf16.msra.mxu0 %v2639_v22  ;;  %v416_v62 = vld [vmem:[#allocation5 + $0x540] sm:$0xff]  ;;  %v2909_v0 = vpack.c.bf16 %v419_v57, %v411_v56  ;;  %v418_v1 = vld [vmem:[#allocation5 + $0x550] sm:$0xff]  ;;  %v425_v2 = vld [vmem:[#allocation5 + $0x588] sm:$0xff] }
  0x8b   : > { %2896 = vmatpush1.bf16.msra.mxu1 %v2895_v23  ;;  %2642 = vmatprep.subr.bf16.mxu0 %v2641_v24  ;;  %v433_v3 = vld [vmem:[#allocation5 + $0x5c8] sm:$0xff]  ;;  %v427_v4 = vld [vmem:[#allocation5 + $0x598] sm:$0xff]  ;;  %v2655_v6 = vpack.c.bf16 %v416_v62, %v408_v61  ;;  %v424_v7 = vld [vmem:[#allocation5 + $0x580] sm:$0xff]  ;;  %v2911_v8 = vpack.c.bf16 %v418_v1, %v410_v63 }
  0x8c   : > { %2898 = vmatprep.subr.bf16.mxu1 %v2897_v28  ;;  %v435_v5 = vld [vmem:[#allocation5 + $0x5d8] sm:$0xff]  ;;  %v2657_v9 = vpack.c.bf16 %v433_v3, %v425_v2  ;;  %v432_v10 = vld [vmem:[#allocation5 + $0x5c0] sm:$0xff]  ;;  %v426_v11 = vld [vmem:[#allocation5 + $0x590] sm:$0xff] }
  0x8d   : > { %v434_v12 = vld [vmem:[#allocation5 + $0x5d0] sm:$0xff]  ;;  %v2913_v13 = vpack.c.bf16 %v435_v5, %v427_v4  ;;  %v441_v14 = vld [vmem:[#allocation5 + $0x608] sm:$0xff]  ;;  %v443_v17 = vld [vmem:[#allocation5 + $0x618] sm:$0xff]  ;;  %v2659_v19 = vpack.c.bf16 %v432_v10, %v424_v7 }
  0x8e   : > { %2644 = vmatpush1.bf16.msra.mxu0 %v2643_v34  ;;  %v449_v15 = vld [vmem:[#allocation5 + $0x648] sm:$0xff]  ;;  %v451_v18 = vld [vmem:[#allocation5 + $0x658] sm:$0xff]  ;;  %v2915_v20 = vpack.c.bf16 %v434_v12, %v426_v11  ;;  %v440_v22 = vld [vmem:[#allocation5 + $0x600] sm:$0xff] }
  0x8f   : > { %2900 = vmatpush1.bf16.msra.mxu1 %v2899_v35  ;;  %2646 = vmatprep.subr.bf16.mxu0 %v2645_v36  ;;  %v2599_v16 = vld [vmem:[%s4160_s28 + $0x8] sm:$0xff]  ;;  %v2661_v21 = vpack.c.bf16 %v449_v15, %v441_v14  ;;  %v448_v23 = vld [vmem:[#allocation5 + $0x640] sm:$0xff]  ;;  %v442_v24 = vld [vmem:[#allocation5 + $0x610] sm:$0xff]  ;;  %v2917_v25 = vpack.c.bf16 %v451_v18, %v443_v17 }
  0x90   : > { %2902 = vmatprep.subr.bf16.mxu1 %v2901_v40  ;;  %1378 = vmatprep.mubr.f32.mxu0 %v2599_v16  ;;  %v450_v26 = vld [vmem:[#allocation5 + $0x650] sm:$0xff]  ;;  %v457_v27 = vld [vmem:[#allocation5 + $0x688] sm:$0xff]  ;;  %v459_v29 = vld [vmem:[#allocation5 + $0x698] sm:$0xff]  ;;  %v2663_v31 = vpack.c.bf16 %v448_v23, %v440_v22 }
  0x91   : > { %1662 = vmatprep.mubr.f32.mxu1 %v2599_v16  ;;  %v465_v28 = vld [vmem:[#allocation5 + $0x6c8] sm:$0xff]  ;;  %v467_v30 = vld [vmem:[#allocation5 + $0x6d8] sm:$0xff]  ;;  %v2919_v32 = vpack.c.bf16 %v450_v26, %v442_v24  ;;  %v456_v34 = vld [vmem:[#allocation5 + $0x680] sm:$0xff] }
  0x92   : > { %2648 = vmatpush1.bf16.msra.mxu0 %v2647_v46  ;;  %v2665_v33 = vpack.c.bf16 %v465_v28, %v457_v27  ;;  %v464_v35 = vld [vmem:[#allocation5 + $0x6c0] sm:$0xff]  ;;  %v458_v36 = vld [vmem:[#allocation5 + $0x690] sm:$0xff]  ;;  %v2921_v37 = vpack.c.bf16 %v467_v30, %v459_v29  ;;  %v473_v39 = vld [vmem:[#allocation5 + $0x708] sm:$0xff] }
  0x93   : > { %2904 = vmatpush1.bf16.msra.mxu1 %v2903_v47  ;;  %2650 = vmatprep.subr.bf16.mxu0 %v2649_v48  ;;  %v466_v38 = vld [vmem:[#allocation5 + $0x6d0] sm:$0xff]  ;;  %v481_v40 = vld [vmem:[#allocation5 + $0x748] sm:$0xff]  ;;  %v475_v41 = vld [vmem:[#allocation5 + $0x718] sm:$0xff]  ;;  %v2667_v43 = vpack.c.bf16 %v464_v35, %v456_v34 }
  0x94   : > { %2906 = vmatprep.subr.bf16.mxu1 %v2905_v52  ;;  %v483_v42 = vld [vmem:[#allocation5 + $0x758] sm:$0xff]  ;;  %v2923_v44 = vpack.c.bf16 %v466_v38, %v458_v36  ;;  %v2669_v45 = vpack.c.bf16 %v481_v40, %v473_v39  ;;  %v472_v46 = vld [vmem:[#allocation5 + $0x700] sm:$0xff]  ;;  %v474_v48 = vld [vmem:[#allocation5 + $0x710] sm:$0xff] }
  0x95   : > { %v480_v47 = vld [vmem:[#allocation5 + $0x740] sm:$0xff]  ;;  %v2925_v49 = vpack.c.bf16 %v483_v42, %v475_v41  ;;  %v482_v50 = vld [vmem:[#allocation5 + $0x750] sm:$0xff]  ;;  %v489_v51 = vld [vmem:[#allocation5 + $0x788] sm:$0xff] }
  0x96   : > { %2652 = vmatpush1.bf16.msra.mxu0 %v2651_v58  ;;  %v497_v52 = vld [vmem:[#allocation5 + $0x7c8] sm:$0xff]  ;;  %v491_v53 = vld [vmem:[#allocation5 + $0x798] sm:$0xff]  ;;  %v2671_v55 = vpack.c.bf16 %v480_v47, %v472_v46  ;;  %v2927_v56 = vpack.c.bf16 %v482_v50, %v474_v48  ;;  %v488_v58 = vld [vmem:[#allocation5 + $0x780] sm:$0xff] }
  0x97   : > { %2908 = vmatpush1.bf16.msra.mxu1 %v2907_v59  ;;  %2654 = vmatprep.subr.bf16.mxu0 %v2653_v60  ;;  %v499_v54 = vld [vmem:[#allocation5 + $0x7d8] sm:$0xff]  ;;  %v2673_v57 = vpack.c.bf16 %v497_v52, %v489_v51  ;;  %v496_v59 = vld [vmem:[#allocation5 + $0x7c0] sm:$0xff]  ;;  %v490_v60 = vld [vmem:[#allocation5 + $0x790] sm:$0xff] }
  0x98   : > { %2910 = vmatprep.subr.bf16.mxu1 %v2909_v0  ;;  %v2929_v61 = vpack.c.bf16 %v499_v54, %v491_v53  ;;  %v498_v62 = vld [vmem:[#allocation5 + $0x7d0] sm:$0xff]  ;;  %v505_v63 = vld [vmem:[#allocation5 + $0x808] sm:$0xff]  ;;  %v507_v1 = vld [vmem:[#allocation5 + $0x818] sm:$0xff]  ;;  %v2675_v3 = vpack.c.bf16 %v496_v59, %v488_v58 }
  0x99   : > { %v513_v0 = vld [vmem:[#allocation5 + $0x848] sm:$0xff]  ;;  %v515_v2 = vld [vmem:[#allocation5 + $0x858] sm:$0xff]  ;;  %v2931_v4 = vpack.c.bf16 %v498_v62, %v490_v60  ;;  %v512_v7 = vld [vmem:[#allocation5 + $0x840] sm:$0xff] }
  0x9a   : > { %2656 = vmatpush1.bf16.msra.mxu0 %v2655_v6  ;;  %v2677_v5 = vpack.c.bf16 %v513_v0, %v505_v63  ;;  %v504_v6 = vld [vmem:[#allocation5 + $0x800] sm:$0xff]  ;;  %v514_v10 = vld [vmem:[#allocation5 + $0x850] sm:$0xff]  ;;  %v521_v11 = vld [vmem:[#allocation5 + $0x888] sm:$0xff] }
  0x9b   : > { %2912 = vmatpush1.bf16.msra.mxu1 %v2911_v8  ;;  %2658 = vmatprep.subr.bf16.mxu0 %v2657_v9  ;;  %v506_v8 = vld [vmem:[#allocation5 + $0x810] sm:$0xff]  ;;  %v2933_v9 = vpack.c.bf16 %v515_v2, %v507_v1  ;;  %v529_v12 = vld [vmem:[#allocation5 + $0x8c8] sm:$0xff]  ;;  %v531_v14 = vld [vmem:[#allocation5 + $0x8d8] sm:$0xff]  ;;  %v2679_v16 = vpack.c.bf16 %v512_v7, %v504_v6 }
  0x9c   : > { %2914 = vmatprep.subr.bf16.mxu1 %v2913_v13  ;;  %v523_v13 = vld [vmem:[#allocation5 + $0x898] sm:$0xff]  ;;  %v233_v15 = vld [vmem:[%s4160_s28] sm:$0xff]  ;;  %v2935_v17 = vpack.c.bf16 %v514_v10, %v506_v8  ;;  %v2681_v18 = vpack.c.bf16 %v529_v12, %v521_v11  ;;  %v530_v23 = vld [vmem:[#allocation5 + $0x8d0] sm:$0xff] }
  0x9d   : > { %v2937_v22 = vpack.c.bf16 %v531_v14, %v523_v13  ;;  %v537_v24 = vld [vmem:[#allocation5 + $0x908] sm:$0xff]  ;;  %v539_v26 = vld [vmem:[#allocation5 + $0x918] sm:$0xff]  ;;  %v546_v35 = vld [vmem:[#allocation5 + $0x950] sm:$0xff] }
  0x9e   : > { %2660 = vmatpush1.bf16.msra.mxu0 %v2659_v19  ;;  %v520_v19 = vld [vmem:[#allocation5 + $0x880] sm:$0xff]  ;;  %v547_v27 = vld [vmem:[#allocation5 + $0x958] sm:$0xff]  ;;  %v553_v36 = vld [vmem:[#allocation5 + $0x988] sm:$0xff] }
  0x9f   : > { %2916 = vmatpush1.bf16.msra.mxu1 %v2915_v20  ;;  %2662 = vmatprep.subr.bf16.mxu0 %v2661_v21  ;;  %v528_v20 = vld [vmem:[#allocation5 + $0x8c0] sm:$0xff]  ;;  %v522_v21 = vld [vmem:[#allocation5 + $0x890] sm:$0xff]  ;;  %v2941_v34 = vpack.c.bf16 %v547_v27, %v539_v26  ;;  %v555_v38 = vld [vmem:[#allocation5 + $0x998] sm:$0xff] }
  0xa0   : > { %2918 = vmatprep.subr.bf16.mxu1 %v2917_v25  ;;  %v545_v25 = vld [vmem:[#allocation5 + $0x948] sm:$0xff]  ;;  %v2683_v28 = vpack.c.bf16 %v528_v20, %v520_v19  ;;  %v2939_v29 = vpack.c.bf16 %v530_v23, %v522_v21  ;;  %v563_v39 = vld [vmem:[#allocation5 + $0x9d8] sm:$0xff]  ;;  %v562_v47 = vld [vmem:[#allocation5 + $0x9d0] sm:$0xff] }
  0xa1   : > { %v2685_v30 = vpack.c.bf16 %v545_v25, %v537_v24  ;;  %v2945_v46 = vpack.c.bf16 %v563_v39, %v555_v38  ;;  %v569_v48 = vld [vmem:[#allocation5 + $0xa08] sm:$0xff]  ;;  %v571_v50 = vld [vmem:[#allocation5 + $0xa18] sm:$0xff]  ;;  %v578_v59 = vld [vmem:[#allocation5 + $0xa50] sm:$0xff] }
  0xa2   : > { %2664 = vmatpush1.bf16.msra.mxu0 %v2663_v31  ;;  %v536_v31 = vld [vmem:[#allocation5 + $0x900] sm:$0xff]  ;;  %v579_v51 = vld [vmem:[#allocation5 + $0xa58] sm:$0xff]  ;;  %v585_v60 = vld [vmem:[#allocation5 + $0xa88] sm:$0xff] }
  0xa3   : > { %2920 = vmatpush1.bf16.msra.mxu1 %v2919_v32  ;;  %2666 = vmatprep.subr.bf16.mxu0 %v2665_v33  ;;  %v544_v32 = vld [vmem:[#allocation5 + $0x940] sm:$0xff]  ;;  %v538_v33 = vld [vmem:[#allocation5 + $0x910] sm:$0xff]  ;;  %v2949_v58 = vpack.c.bf16 %v579_v51, %v571_v50  ;;  %v587_v62 = vld [vmem:[#allocation5 + $0xa98] sm:$0xff] }
  0xa4   : > { %2922 = vmatprep.subr.bf16.mxu1 %v2921_v37  ;;  %v561_v37 = vld [vmem:[#allocation5 + $0x9c8] sm:$0xff]  ;;  %v2687_v40 = vpack.c.bf16 %v544_v32, %v536_v31  ;;  %v2943_v41 = vpack.c.bf16 %v546_v35, %v538_v33  ;;  %v595_v63 = vld [vmem:[#allocation5 + $0xad8] sm:$0xff]  ;;  %v594_v7 = vld [vmem:[#allocation5 + $0xad0] sm:$0xff] }
  0xa5   : > { %v2689_v42 = vpack.c.bf16 %v561_v37, %v553_v36  ;;  %v2953_v6 = vpack.c.bf16 %v595_v63, %v587_v62  ;;  %v601_v8 = vld [vmem:[#allocation5 + $0xb08] sm:$0xff]  ;;  %v603_v10 = vld [vmem:[#allocation5 + $0xb18] sm:$0xff]  ;;  %v600_v13 = vld [vmem:[#allocation5 + $0xb00] sm:$0xff] }
  0xa6   : > { %2668 = vmatpush1.bf16.msra.mxu0 %v2667_v43  ;;  %v552_v43 = vld [vmem:[#allocation5 + $0x980] sm:$0xff]  ;;  %v611_v11 = vld [vmem:[#allocation5 + $0xb58] sm:$0xff]  ;;  %v617_v20 = vld [vmem:[#allocation5 + $0xb88] sm:$0xff] }
  0xa7   : > { %2924 = vmatpush1.bf16.msra.mxu1 %v2923_v44  ;;  %2670 = vmatprep.subr.bf16.mxu0 %v2669_v45  ;;  %v560_v44 = vld [vmem:[#allocation5 + $0x9c0] sm:$0xff]  ;;  %v554_v45 = vld [vmem:[#allocation5 + $0x990] sm:$0xff]  ;;  %v2957_v19 = vpack.c.bf16 %v611_v11, %v603_v10  ;;  %v625_v21 = vld [vmem:[#allocation5 + $0xbc8] sm:$0xff] }
  0xa8   : > { %2926 = vmatprep.subr.bf16.mxu1 %v2925_v49  ;;  %v577_v49 = vld [vmem:[#allocation5 + $0xa48] sm:$0xff]  ;;  %v2691_v52 = vpack.c.bf16 %v560_v44, %v552_v43  ;;  %v2947_v53 = vpack.c.bf16 %v562_v47, %v554_v45  ;;  %v619_v23 = vld [vmem:[#allocation5 + $0xb98] sm:$0xff]  ;;  %v2705_v27 = vpack.c.bf16 %v625_v21, %v617_v20  ;;  %v626_v32 = vld [vmem:[#allocation5 + $0xbd0] sm:$0xff] }
  0xa9   : > { %v2693_v54 = vpack.c.bf16 %v577_v49, %v569_v48  ;;  %v627_v24 = vld [vmem:[#allocation5 + $0xbd8] sm:$0xff]  ;;  %v633_v33 = vld [vmem:[#allocation5 + $0xc08] sm:$0xff]  ;;  %v642_v44 = vld [vmem:[#allocation5 + $0xc50] sm:$0xff] }
  0xaa   : > { %2672 = vmatpush1.bf16.msra.mxu0 %v2671_v55  ;;  %v568_v55 = vld [vmem:[#allocation5 + $0xa00] sm:$0xff]  ;;  %v2961_v31 = vpack.c.bf16 %v627_v24, %v619_v23  ;;  %v635_v35 = vld [vmem:[#allocation5 + $0xc18] sm:$0xff]  ;;  %v649_v45 = vld [vmem:[#allocation5 + $0xc88] sm:$0xff] }
  0xab   : > { %2928 = vmatpush1.bf16.msra.mxu1 %v2927_v56  ;;  %2674 = vmatprep.subr.bf16.mxu0 %v2673_v57  ;;  %v576_v56 = vld [vmem:[#allocation5 + $0xa40] sm:$0xff]  ;;  %v570_v57 = vld [vmem:[#allocation5 + $0xa10] sm:$0xff]  ;;  %v643_v36 = vld [vmem:[#allocation5 + $0xc58] sm:$0xff] }
  0xac   : > { %2930 = vmatprep.subr.bf16.mxu1 %v2929_v61  ;;  %v593_v61 = vld [vmem:[#allocation5 + $0xac8] sm:$0xff]  ;;  %v2695_v0 = vpack.c.bf16 %v576_v56, %v568_v55  ;;  %v2951_v1 = vpack.c.bf16 %v578_v59, %v570_v57  ;;  %v2965_v43 = vpack.c.bf16 %v643_v36, %v635_v35  ;;  %v651_v47 = vld [vmem:[#allocation5 + $0xc98] sm:$0xff]  ;;  %v658_v56 = vld [vmem:[#allocation5 + $0xcd0] sm:$0xff] }
  0xad   : > { %v2697_v2 = vpack.c.bf16 %v593_v61, %v585_v60  ;;  %v659_v48 = vld [vmem:[#allocation5 + $0xcd8] sm:$0xff]  ;;  %v665_v57 = vld [vmem:[#allocation5 + $0xd08] sm:$0xff]  ;;  %v696_v24 = vld [vmem:[#allocation5 + $0xe00] sm:$0xff] }
  0xae   : > { %2676 = vmatpush1.bf16.msra.mxu0 %v2675_v3  ;;  %v584_v3 = vld [vmem:[#allocation5 + $0xa80] sm:$0xff]  ;;  %v2969_v55 = vpack.c.bf16 %v659_v48, %v651_v47  ;;  %v667_v59 = vld [vmem:[#allocation5 + $0xd18] sm:$0xff] }
  0xaf   : > { %2932 = vmatpush1.bf16.msra.mxu1 %v2931_v4  ;;  %2678 = vmatprep.subr.bf16.mxu0 %v2677_v5  ;;  %v592_v4 = vld [vmem:[#allocation5 + $0xac0] sm:$0xff]  ;;  %v586_v5 = vld [vmem:[#allocation5 + $0xa90] sm:$0xff]  ;;  %v675_v60 = vld [vmem:[#allocation5 + $0xd58] sm:$0xff] }
  0xb0   : > { %2934 = vmatprep.subr.bf16.mxu1 %v2933_v9  ;;  %v609_v9 = vld [vmem:[#allocation5 + $0xb48] sm:$0xff]  ;;  %v2699_v12 = vpack.c.bf16 %v592_v4, %v584_v3  ;;  %v2955_v14 = vpack.c.bf16 %v594_v7, %v586_v5  ;;  %v2973_v3 = vpack.c.bf16 %v675_v60, %v667_v59  ;;  %v674_v4 = vld [vmem:[#allocation5 + $0xd50] sm:$0xff]  ;;  %v683_v7 = vld [vmem:[#allocation5 + $0xd98] sm:$0xff] }
  0xb1   : > { %1379 = vmatmul.mubr.f32.vlgmr.msra.gmra.mrb[0].mxu0 %v233_v15  ;;  %v681_v5 = vld [vmem:[#allocation5 + $0xd88] sm:$0xff]  ;;  %v707_v20 = vld [vmem:[#allocation5 + $0xe58] sm:$0xff]  ;;  %v712_v36 = vld [vmem:[#allocation5 + $0xe80] sm:$0xff] }
  0xb2   : > { %2680 = vmatpush1.bf16.msra.mxu0 %v2679_v16  ;;  %1663 = vmatmul.mubr.f32.vlgmr.msra.gmra.mrb[0].mxu1 %v233_v15  ;;  %v2701_v15 = vpack.c.bf16 %v609_v9, %v601_v8  ;;  %v608_v16 = vld [vmem:[#allocation5 + $0xb40] sm:$0xff]  ;;  %v691_v8 = vld [vmem:[#allocation5 + $0xdd8] sm:$0xff] }
  0xb3   : > { %2936 = vmatpush1.bf16.msra.mxu1 %v2935_v17  ;;  %2682 = vmatprep.subr.bf16.mxu0 %v2681_v18  ;;  %v602_v17 = vld [vmem:[#allocation5 + $0xb10] sm:$0xff]  ;;  %v2703_v25 = vpack.c.bf16 %v608_v16, %v600_v13  ;;  %v688_v13 = vld [vmem:[#allocation5 + $0xdc0] sm:$0xff] }
  0xb4   : > { %2938 = vmatprep.subr.bf16.mxu1 %v2937_v22  ;;  %v610_v18 = vld [vmem:[#allocation5 + $0xb50] sm:$0xff]  ;;  %v2601_v22 = vld [vmem:[%s4160_s28 + $0x18] sm:$0xff]  ;;  %v728_v48 = vld [vmem:[#allocation5 + $0xf00] sm:$0xff] }
  0xb5   : > { %1449 = vmatprep.mubr.f32.mxu0 %v2601_v22  ;;  %1733 = vmatprep.mubr.f32.mxu1 %v2601_v22  ;;  %v2959_v26 = vpack.c.bf16 %v610_v18, %v602_v17  ;;  %v690_v16 = vld [vmem:[#allocation5 + $0xdd0] sm:$0xff]  ;;  %v697_v17 = vld [vmem:[#allocation5 + $0xe08] sm:$0xff]  ;;  %v744_v60 = vld [vmem:[#allocation5 + $0xf80] sm:$0xff] }
  0xb6   : > { %2684 = vmatpush1.bf16.msra.mxu0 %v2683_v28  ;;  %v616_v28 = vld [vmem:[#allocation5 + $0xb80] sm:$0xff]  ;;  %v705_v18 = vld [vmem:[#allocation5 + $0xe48] sm:$0xff] }
  0xb7   : > { %2940 = vmatpush1.bf16.msra.mxu1 %v2939_v29  ;;  %2686 = vmatprep.subr.bf16.mxu0 %v2685_v30  ;;  %v624_v29 = vld [vmem:[#allocation5 + $0xbc0] sm:$0xff]  ;;  %v618_v30 = vld [vmem:[#allocation5 + $0xb90] sm:$0xff]  ;;  %v2725_v23 = vpack.c.bf16 %v705_v18, %v697_v17 }
  0xb8   : > { %2942 = vmatprep.subr.bf16.mxu1 %v2941_v34  ;;  %v641_v34 = vld [vmem:[#allocation5 + $0xc48] sm:$0xff]  ;;  %v2707_v37 = vpack.c.bf16 %v624_v29, %v616_v28  ;;  %v2963_v38 = vpack.c.bf16 %v626_v32, %v618_v30  ;;  %v706_v28 = vld [vmem:[#allocation5 + $0xe50] sm:$0xff]  ;;  %v723_v32 = vld [vmem:[#allocation5 + $0xed8] sm:$0xff] }
  0xb9   : > { %v2709_v39 = vpack.c.bf16 %v641_v34, %v633_v33  ;;  %v713_v29 = vld [vmem:[#allocation5 + $0xe88] sm:$0xff]  ;;  %v2600_v17 = vld [vmem:[%s4160_s28 + $0x10] sm:$0xff] }
  0xba   : > { %2688 = vmatpush1.bf16.msra.mxu0 %v2687_v40  ;;  %v632_v40 = vld [vmem:[#allocation5 + $0xc00] sm:$0xff]  ;;  %v721_v30 = vld [vmem:[#allocation5 + $0xec8] sm:$0xff] }
  0xbb   : > { %2944 = vmatpush1.bf16.msra.mxu1 %v2943_v41  ;;  %2690 = vmatprep.subr.bf16.mxu0 %v2689_v42  ;;  %v640_v41 = vld [vmem:[#allocation5 + $0xc40] sm:$0xff]  ;;  %v634_v42 = vld [vmem:[#allocation5 + $0xc10] sm:$0xff]  ;;  %v2729_v35 = vpack.c.bf16 %v721_v30, %v713_v29  ;;  %v803_v29 = vld [vmem:[#allocation5 + $0x1158] sm:$0xff] }
  0xbc   : > { %2946 = vmatprep.subr.bf16.mxu1 %v2945_v46  ;;  %v657_v46 = vld [vmem:[#allocation5 + $0xcc8] sm:$0xff]  ;;  %v2711_v49 = vpack.c.bf16 %v640_v41, %v632_v40  ;;  %v2967_v50 = vpack.c.bf16 %v642_v44, %v634_v42  ;;  %v722_v40 = vld [vmem:[#allocation5 + $0xed0] sm:$0xff]  ;;  %v739_v44 = vld [vmem:[#allocation5 + $0xf58] sm:$0xff] }
  0xbd   : > { %v2713_v51 = vpack.c.bf16 %v657_v46, %v649_v45  ;;  %v729_v41 = vld [vmem:[#allocation5 + $0xf08] sm:$0xff] }
  0xbe   : > { %2692 = vmatpush1.bf16.msra.mxu0 %v2691_v52  ;;  %v648_v52 = vld [vmem:[#allocation5 + $0xc80] sm:$0xff]  ;;  %v737_v42 = vld [vmem:[#allocation5 + $0xf48] sm:$0xff] }
  0xbf   : > { %2948 = vmatpush1.bf16.msra.mxu1 %v2947_v53  ;;  %2694 = vmatprep.subr.bf16.mxu0 %v2693_v54  ;;  %v656_v53 = vld [vmem:[#allocation5 + $0xcc0] sm:$0xff]  ;;  %v650_v54 = vld [vmem:[#allocation5 + $0xc90] sm:$0xff]  ;;  %v2733_v47 = vpack.c.bf16 %v737_v42, %v729_v41  ;;  %v2603_v30 = vld [vmem:[%s4160_s28 + $0x28] sm:$0xff] }
  0xc0   : > { %2950 = vmatprep.subr.bf16.mxu1 %v2949_v58  ;;  %v673_v58 = vld [vmem:[#allocation5 + $0xd48] sm:$0xff]  ;;  %v2715_v61 = vpack.c.bf16 %v656_v53, %v648_v52  ;;  %v2971_v62 = vpack.c.bf16 %v658_v56, %v650_v54  ;;  %v738_v52 = vld [vmem:[#allocation5 + $0xf50] sm:$0xff]  ;;  %v755_v56 = vld [vmem:[#allocation5 + $0xfd8] sm:$0xff] }
  0xc1   : > { %v2717_v63 = vpack.c.bf16 %v673_v58, %v665_v57  ;;  %v745_v53 = vld [vmem:[#allocation5 + $0xf88] sm:$0xff]  ;;  %v811_v41 = vld [vmem:[#allocation5 + $0x1198] sm:$0xff] }
  0xc2   : > { %2696 = vmatpush1.bf16.msra.mxu0 %v2695_v0  ;;  %v664_v0 = vld [vmem:[#allocation5 + $0xd00] sm:$0xff]  ;;  %v753_v54 = vld [vmem:[#allocation5 + $0xfc8] sm:$0xff]  ;;  %v819_v42 = vld [vmem:[#allocation5 + $0x11d8] sm:$0xff] }
  0xc3   : > { %2952 = vmatpush1.bf16.msra.mxu1 %v2951_v1  ;;  %2698 = vmatprep.subr.bf16.mxu0 %v2697_v2  ;;  %v672_v1 = vld [vmem:[#allocation5 + $0xd40] sm:$0xff]  ;;  %v666_v2 = vld [vmem:[#allocation5 + $0xd10] sm:$0xff]  ;;  %v2737_v59 = vpack.c.bf16 %v753_v54, %v745_v53  ;;  %v827_v53 = vld [vmem:[#allocation5 + $0x1218] sm:$0xff] }
  0xc4   : > { %2954 = vmatprep.subr.bf16.mxu1 %v2953_v6  ;;  %v689_v6 = vld [vmem:[#allocation5 + $0xdc8] sm:$0xff]  ;;  %v2719_v9 = vpack.c.bf16 %v672_v1, %v664_v0  ;;  %v2975_v10 = vpack.c.bf16 %v674_v4, %v666_v2  ;;  %v754_v0 = vld [vmem:[#allocation5 + $0xfd0] sm:$0xff]  ;;  %v771_v4 = vld [vmem:[#allocation5 + $0x1058] sm:$0xff] }
  0xc5   : > { %v2721_v11 = vpack.c.bf16 %v689_v6, %v681_v5  ;;  %v761_v1 = vld [vmem:[#allocation5 + $0x1008] sm:$0xff]  ;;  %v835_v54 = vld [vmem:[#allocation5 + $0x1258] sm:$0xff] }
  0xc6   : > { %2700 = vmatpush1.bf16.msra.mxu0 %v2699_v12  ;;  %v680_v12 = vld [vmem:[#allocation5 + $0xd80] sm:$0xff]  ;;  %v769_v2 = vld [vmem:[#allocation5 + $0x1048] sm:$0xff] }
  0xc7   : > { %2956 = vmatpush1.bf16.msra.mxu1 %v2955_v14  ;;  %2702 = vmatprep.subr.bf16.mxu0 %v2701_v15  ;;  %v682_v14 = vld [vmem:[#allocation5 + $0xd90] sm:$0xff]  ;;  %v2977_v15 = vpack.c.bf16 %v691_v8, %v683_v7  ;;  %v2723_v21 = vpack.c.bf16 %v688_v13, %v680_v12  ;;  %v2741_v7 = vpack.c.bf16 %v769_v2, %v761_v1  ;;  %v760_v8 = vld [vmem:[#allocation5 + $0x1000] sm:$0xff]  ;;  %v777_v13 = vld [vmem:[#allocation5 + $0x1088] sm:$0xff] }
  0xc8   : > { %2958 = vmatprep.subr.bf16.mxu1 %v2957_v19  ;;  %v699_v19 = vld [vmem:[#allocation5 + $0xe18] sm:$0xff]  ;;  %v2979_v22 = vpack.c.bf16 %v690_v16, %v682_v14  ;;  %v770_v12 = vld [vmem:[#allocation5 + $0x1050] sm:$0xff]  ;;  %v785_v14 = vld [vmem:[#allocation5 + $0x10c8] sm:$0xff] }
  0xc9   : > { %v787_v16 = vld [vmem:[#allocation5 + $0x10d8] sm:$0xff] }
  0xca   : > { %2704 = vmatpush1.bf16.msra.mxu0 %v2703_v25  ;;  %v704_v25 = vld [vmem:[#allocation5 + $0xe40] sm:$0xff]  ;;  %v843_v1 = vld [vmem:[#allocation5 + $0x1298] sm:$0xff] }
  0xcb   : > { %2960 = vmatpush1.bf16.msra.mxu1 %v2959_v26  ;;  %2706 = vmatprep.subr.bf16.mxu0 %v2705_v27  ;;  %v698_v26 = vld [vmem:[#allocation5 + $0xe10] sm:$0xff]  ;;  %v2981_v27 = vpack.c.bf16 %v707_v20, %v699_v19  ;;  %v2727_v33 = vpack.c.bf16 %v704_v25, %v696_v24  ;;  %v2745_v20 = vpack.c.bf16 %v785_v14, %v777_v13  ;;  %v851_v2 = vld [vmem:[#allocation5 + $0x12d8] sm:$0xff] }
  0xcc   : > { %2962 = vmatprep.subr.bf16.mxu1 %v2961_v31  ;;  %v715_v31 = vld [vmem:[#allocation5 + $0xe98] sm:$0xff]  ;;  %v2983_v34 = vpack.c.bf16 %v706_v28, %v698_v26  ;;  %v786_v25 = vld [vmem:[#allocation5 + $0x10d0] sm:$0xff]  ;;  %v793_v26 = vld [vmem:[#allocation5 + $0x1108] sm:$0xff] }
  0xcd   : > { %v795_v28 = vld [vmem:[#allocation5 + $0x1118] sm:$0xff] }
  0xce   : > { %2708 = vmatpush1.bf16.msra.mxu0 %v2707_v37  ;;  %v720_v37 = vld [vmem:[#allocation5 + $0xec0] sm:$0xff]  ;;  %v859_v13 = vld [vmem:[#allocation5 + $0x1318] sm:$0xff] }
  0xcf   : > { %2964 = vmatpush1.bf16.msra.mxu1 %v2963_v38  ;;  %2710 = vmatprep.subr.bf16.mxu0 %v2709_v39  ;;  %v714_v38 = vld [vmem:[#allocation5 + $0xe90] sm:$0xff]  ;;  %v2985_v39 = vpack.c.bf16 %v723_v32, %v715_v31  ;;  %v2731_v45 = vpack.c.bf16 %v720_v37, %v712_v36  ;;  %v3005_v37 = vpack.c.bf16 %v803_v29, %v795_v28  ;;  %v867_v14 = vld [vmem:[#allocation5 + $0x1358] sm:$0xff] }
  0xd0   : > { %2966 = vmatprep.subr.bf16.mxu1 %v2965_v43  ;;  %v731_v43 = vld [vmem:[#allocation5 + $0xf18] sm:$0xff]  ;;  %v2987_v46 = vpack.c.bf16 %v722_v40, %v714_v38  ;;  %v794_v36 = vld [vmem:[#allocation5 + $0x1110] sm:$0xff]  ;;  %v817_v40 = vld [vmem:[#allocation5 + $0x11c8] sm:$0xff] }
  0xd1   : > { %v802_v38 = vld [vmem:[#allocation5 + $0x1150] sm:$0xff] }
  0xd2   : > { %2712 = vmatpush1.bf16.msra.mxu0 %v2711_v49  ;;  %v736_v49 = vld [vmem:[#allocation5 + $0xf40] sm:$0xff] }
  0xd3   : > { %2968 = vmatpush1.bf16.msra.mxu1 %v2967_v50  ;;  %2714 = vmatprep.subr.bf16.mxu0 %v2713_v51  ;;  %v730_v50 = vld [vmem:[#allocation5 + $0xf10] sm:$0xff]  ;;  %v2989_v51 = vpack.c.bf16 %v739_v44, %v731_v43  ;;  %v2735_v57 = vpack.c.bf16 %v736_v49, %v728_v48  ;;  %v3007_v44 = vpack.c.bf16 %v802_v38, %v794_v36  ;;  %v897_v36 = vld [vmem:[#allocation5 + $0x1448] sm:$0xff]  ;;  %v899_v38 = vld [vmem:[#allocation5 + $0x1458] sm:$0xff] }
  0xd4   : > { %2970 = vmatprep.subr.bf16.mxu1 %v2969_v55  ;;  %v747_v55 = vld [vmem:[#allocation5 + $0xf98] sm:$0xff]  ;;  %v2991_v58 = vpack.c.bf16 %v738_v52, %v730_v50  ;;  %v810_v48 = vld [vmem:[#allocation5 + $0x1190] sm:$0xff]  ;;  %v3009_v49 = vpack.c.bf16 %v819_v42, %v811_v41  ;;  %v833_v52 = vld [vmem:[#allocation5 + $0x1248] sm:$0xff] }
  0xd5   : > { %v818_v50 = vld [vmem:[#allocation5 + $0x11d0] sm:$0xff]  ;;  %v888_v42 = vld [vmem:[#allocation5 + $0x1400] sm:$0xff] }
  0xd6   : > { %2716 = vmatpush1.bf16.msra.mxu0 %v2715_v61  ;;  %v752_v61 = vld [vmem:[#allocation5 + $0xfc0] sm:$0xff] }
  0xd7   : > { %2972 = vmatpush1.bf16.msra.mxu1 %v2971_v62  ;;  %2718 = vmatprep.subr.bf16.mxu0 %v2717_v63  ;;  %v746_v62 = vld [vmem:[#allocation5 + $0xf90] sm:$0xff]  ;;  %v2993_v63 = vpack.c.bf16 %v755_v56, %v747_v55  ;;  %v2739_v5 = vpack.c.bf16 %v752_v61, %v744_v60  ;;  %v3011_v56 = vpack.c.bf16 %v818_v50, %v810_v48  ;;  %v913_v48 = vld [vmem:[#allocation5 + $0x14c8] sm:$0xff]  ;;  %v915_v50 = vld [vmem:[#allocation5 + $0x14d8] sm:$0xff] }
  0xd8   : > { %2974 = vmatprep.subr.bf16.mxu1 %v2973_v3  ;;  %v763_v3 = vld [vmem:[#allocation5 + $0x1018] sm:$0xff]  ;;  %v2995_v6 = vpack.c.bf16 %v754_v0, %v746_v62  ;;  %v826_v60 = vld [vmem:[#allocation5 + $0x1210] sm:$0xff]  ;;  %v3013_v61 = vpack.c.bf16 %v835_v54, %v827_v53  ;;  %v849_v0 = vld [vmem:[#allocation5 + $0x12c8] sm:$0xff] }
  0xd9   : > { %v834_v62 = vld [vmem:[#allocation5 + $0x1250] sm:$0xff]  ;;  %v904_v54 = vld [vmem:[#allocation5 + $0x1480] sm:$0xff] }
  0xda   : > { %2720 = vmatpush1.bf16.msra.mxu0 %v2719_v9  ;;  %v768_v9 = vld [vmem:[#allocation5 + $0x1040] sm:$0xff] }
  0xdb   : > { %2976 = vmatpush1.bf16.msra.mxu1 %v2975_v10  ;;  %2722 = vmatprep.subr.bf16.mxu0 %v2721_v11  ;;  %v762_v10 = vld [vmem:[#allocation5 + $0x1010] sm:$0xff]  ;;  %v2997_v11 = vpack.c.bf16 %v771_v4, %v763_v3  ;;  %v2743_v18 = vpack.c.bf16 %v768_v9, %v760_v8  ;;  %v3015_v4 = vpack.c.bf16 %v834_v62, %v826_v60  ;;  %v929_v60 = vld [vmem:[#allocation5 + $0x1548] sm:$0xff]  ;;  %v931_v62 = vld [vmem:[#allocation5 + $0x1558] sm:$0xff] }
  0xdc   : > { %2978 = vmatprep.subr.bf16.mxu1 %v2977_v15  ;;  %v779_v15 = vld [vmem:[#allocation5 + $0x1098] sm:$0xff]  ;;  %v2999_v19 = vpack.c.bf16 %v770_v12, %v762_v10  ;;  %v842_v8 = vld [vmem:[#allocation5 + $0x1290] sm:$0xff]  ;;  %v3017_v9 = vpack.c.bf16 %v851_v2, %v843_v1  ;;  %v865_v12 = vld [vmem:[#allocation5 + $0x1348] sm:$0xff] }
  0xdd   : > { %v3001_v24 = vpack.c.bf16 %v787_v16, %v779_v15  ;;  %v850_v10 = vld [vmem:[#allocation5 + $0x12d0] sm:$0xff]  ;;  %v920_v2 = vld [vmem:[#allocation5 + $0x1500] sm:$0xff] }
  0xde   : > { %2724 = vmatpush1.bf16.msra.mxu0 %v2723_v21  ;;  %v776_v21 = vld [vmem:[#allocation5 + $0x1080] sm:$0xff]  ;;  %v3019_v16 = vpack.c.bf16 %v850_v10, %v842_v8  ;;  %v945_v8 = vld [vmem:[#allocation5 + $0x15c8] sm:$0xff]  ;;  %v947_v10 = vld [vmem:[#allocation5 + $0x15d8] sm:$0xff] }
  0xdf   : > { %2980 = vmatpush1.bf16.msra.mxu1 %v2979_v22  ;;  %2726 = vmatprep.subr.bf16.mxu0 %v2725_v23  ;;  %v784_v22 = vld [vmem:[#allocation5 + $0x10c0] sm:$0xff]  ;;  %v778_v23 = vld [vmem:[#allocation5 + $0x1090] sm:$0xff] }
  0xe0   : > { %2982 = vmatprep.subr.bf16.mxu1 %v2981_v27  ;;  %v801_v27 = vld [vmem:[#allocation5 + $0x1148] sm:$0xff]  ;;  %v2747_v31 = vpack.c.bf16 %v784_v22, %v776_v21  ;;  %v3003_v32 = vpack.c.bf16 %v786_v25, %v778_v23  ;;  %v3021_v21 = vpack.c.bf16 %v867_v14, %v859_v13  ;;  %v866_v22 = vld [vmem:[#allocation5 + $0x1350] sm:$0xff]  ;;  %v875_v25 = vld [vmem:[#allocation5 + $0x1398] sm:$0xff] }
  0xe1   : > { %v873_v23 = vld [vmem:[#allocation5 + $0x1388] sm:$0xff]  ;;  %v936_v14 = vld [vmem:[#allocation5 + $0x1580] sm:$0xff] }
  0xe2   : > { %2728 = vmatpush1.bf16.msra.mxu0 %v2727_v33  ;;  %v2749_v33 = vpack.c.bf16 %v801_v27, %v793_v26  ;;  %v883_v26 = vld [vmem:[#allocation5 + $0x13d8] sm:$0xff] }
  0xe3   : > { %2984 = vmatpush1.bf16.msra.mxu1 %v2983_v34  ;;  %2730 = vmatprep.subr.bf16.mxu0 %v2729_v35  ;;  %v792_v34 = vld [vmem:[#allocation5 + $0x1100] sm:$0xff] }
  0xe4   : > { %2986 = vmatprep.subr.bf16.mxu1 %v2985_v39  ;;  %v800_v35 = vld [vmem:[#allocation5 + $0x1140] sm:$0xff]  ;;  %v809_v39 = vld [vmem:[#allocation5 + $0x1188] sm:$0xff] }
  0xe5   : > { %v2751_v43 = vpack.c.bf16 %v800_v35, %v792_v34  ;;  %v882_v34 = vld [vmem:[#allocation5 + $0x13d0] sm:$0xff]  ;;  %v889_v35 = vld [vmem:[#allocation5 + $0x1408] sm:$0xff] }
  0xe6   : > { %2732 = vmatpush1.bf16.msra.mxu0 %v2731_v45  ;;  %v2753_v45 = vpack.c.bf16 %v817_v40, %v809_v39  ;;  %v2773_v41 = vpack.c.bf16 %v897_v36, %v889_v35 }
  0xe7   : > { %2988 = vmatpush1.bf16.msra.mxu1 %v2987_v46  ;;  %2734 = vmatprep.subr.bf16.mxu0 %v2733_v47  ;;  %v808_v46 = vld [vmem:[#allocation5 + $0x1180] sm:$0xff] }
  0xe8   : > { %2990 = vmatprep.subr.bf16.mxu1 %v2989_v51  ;;  %v816_v47 = vld [vmem:[#allocation5 + $0x11c0] sm:$0xff]  ;;  %v825_v51 = vld [vmem:[#allocation5 + $0x1208] sm:$0xff] }
  0xe9   : > { %v2755_v55 = vpack.c.bf16 %v816_v47, %v808_v46  ;;  %v898_v46 = vld [vmem:[#allocation5 + $0x1450] sm:$0xff]  ;;  %v905_v47 = vld [vmem:[#allocation5 + $0x1488] sm:$0xff] }
  0xea   : > { %2736 = vmatpush1.bf16.msra.mxu0 %v2735_v57  ;;  %v2757_v57 = vpack.c.bf16 %v833_v52, %v825_v51  ;;  %v2777_v53 = vpack.c.bf16 %v913_v48, %v905_v47 }
  0xeb   : > { %2992 = vmatpush1.bf16.msra.mxu1 %v2991_v58  ;;  %2738 = vmatprep.subr.bf16.mxu0 %v2737_v59  ;;  %v824_v58 = vld [vmem:[#allocation5 + $0x1200] sm:$0xff] }
  0xec   : > { %2994 = vmatprep.subr.bf16.mxu1 %v2993_v63  ;;  %v832_v59 = vld [vmem:[#allocation5 + $0x1240] sm:$0xff]  ;;  %v841_v63 = vld [vmem:[#allocation5 + $0x1288] sm:$0xff] }
  0xed   : > { %v2759_v3 = vpack.c.bf16 %v832_v59, %v824_v58  ;;  %v914_v58 = vld [vmem:[#allocation5 + $0x14d0] sm:$0xff]  ;;  %v921_v59 = vld [vmem:[#allocation5 + $0x1508] sm:$0xff] }
  0xee   : > { %2740 = vmatpush1.bf16.msra.mxu0 %v2739_v5  ;;  %v2761_v5 = vpack.c.bf16 %v849_v0, %v841_v63  ;;  %v2781_v1 = vpack.c.bf16 %v929_v60, %v921_v59 }
  0xef   : > { %2996 = vmatpush1.bf16.msra.mxu1 %v2995_v6  ;;  %2742 = vmatprep.subr.bf16.mxu0 %v2741_v7  ;;  %v840_v6 = vld [vmem:[#allocation5 + $0x1280] sm:$0xff] }
  0xf0   : > { %2998 = vmatprep.subr.bf16.mxu1 %v2997_v11  ;;  %v848_v7 = vld [vmem:[#allocation5 + $0x12c0] sm:$0xff]  ;;  %v857_v11 = vld [vmem:[#allocation5 + $0x1308] sm:$0xff] }
  0xf1   : > { %1450 = vmatmul.mubr.f32.vlgmr.msra.gmra.mrb[0].mxu0 %v2600_v17  ;;  %v2763_v15 = vpack.c.bf16 %v848_v7, %v840_v6  ;;  %v930_v6 = vld [vmem:[#allocation5 + $0x1550] sm:$0xff]  ;;  %v937_v7 = vld [vmem:[#allocation5 + $0x1588] sm:$0xff] }
  0xf2   : > { %2744 = vmatpush1.bf16.msra.mxu0 %v2743_v18  ;;  %1734 = vmatmul.mubr.f32.vlgmr.msra.gmra.mrb[0].mxu1 %v2600_v17  ;;  %v2765_v17 = vpack.c.bf16 %v865_v12, %v857_v11  ;;  %v856_v18 = vld [vmem:[#allocation5 + $0x1300] sm:$0xff]  ;;  %v2785_v13 = vpack.c.bf16 %v945_v8, %v937_v7 }
  0xf3   : > { %3000 = vmatpush1.bf16.msra.mxu1 %v2999_v19  ;;  %2746 = vmatprep.subr.bf16.mxu0 %v2745_v20  ;;  %v864_v19 = vld [vmem:[#allocation5 + $0x1340] sm:$0xff]  ;;  %v858_v20 = vld [vmem:[#allocation5 + $0x1310] sm:$0xff] }
  0xf4   : > { %3002 = vmatprep.subr.bf16.mxu1 %v3001_v24  ;;  %1520 = vmatprep.mubr.f32.mxu0 %v2603_v30  ;;  %v881_v24 = vld [vmem:[#allocation5 + $0x13c8] sm:$0xff]  ;;  %v2767_v27 = vpack.c.bf16 %v864_v19, %v856_v18  ;;  %v3023_v28 = vpack.c.bf16 %v866_v22, %v858_v20  ;;  %v946_v18 = vld [vmem:[#allocation5 + $0x15d0] sm:$0xff]  ;;  %v963_v22 = vld [vmem:[#allocation5 + $0x1658] sm:$0xff] }
  0xf5   : > { %1804 = vmatprep.mubr.f32.mxu1 %v2603_v30  ;;  %v2769_v29 = vpack.c.bf16 %v881_v24, %v873_v23  ;;  %v872_v30 = vld [vmem:[#allocation5 + $0x1380] sm:$0xff]  ;;  %v953_v19 = vld [vmem:[#allocation5 + $0x1608] sm:$0xff] }
  0xf6   : > { %2748 = vmatpush1.bf16.msra.mxu0 %v2747_v31  ;;  %v880_v31 = vld [vmem:[#allocation5 + $0x13c0] sm:$0xff]  ;;  %v961_v20 = vld [vmem:[#allocation5 + $0x1648] sm:$0xff] }
  0xf7   : > { %3004 = vmatpush1.bf16.msra.mxu1 %v3003_v32  ;;  %2750 = vmatprep.subr.bf16.mxu0 %v2749_v33  ;;  %v874_v32 = vld [vmem:[#allocation5 + $0x1390] sm:$0xff]  ;;  %v3025_v33 = vpack.c.bf16 %v883_v26, %v875_v25  ;;  %v2771_v39 = vpack.c.bf16 %v880_v31, %v872_v30  ;;  %v2789_v25 = vpack.c.bf16 %v961_v20, %v953_v19  ;;  %v952_v26 = vld [vmem:[#allocation5 + $0x1600] sm:$0xff]  ;;  %v969_v31 = vld [vmem:[#allocation5 + $0x1688] sm:$0xff] }
  0xf8   : > { %3006 = vmatprep.subr.bf16.mxu1 %v3005_v37  ;;  %v891_v37 = vld [vmem:[#allocation5 + $0x1418] sm:$0xff]  ;;  %v3027_v40 = vpack.c.bf16 %v882_v34, %v874_v32  ;;  %v962_v30 = vld [vmem:[#allocation5 + $0x1650] sm:$0xff]  ;;  %v977_v32 = vld [vmem:[#allocation5 + $0x16c8] sm:$0xff] }
  0xf9   : > { %v979_v34 = vld [vmem:[#allocation5 + $0x16d8] sm:$0xff]  ;;  %v2602_v19 = vld [vmem:[%s4160_s28 + $0x20] sm:$0xff] }
  0xfa   : > { %2752 = vmatpush1.bf16.msra.mxu0 %v2751_v43  ;;  %v896_v43 = vld [vmem:[#allocation5 + $0x1440] sm:$0xff] }
  0xfb   : > { %3008 = vmatpush1.bf16.msra.mxu1 %v3007_v44  ;;  %2754 = vmatprep.subr.bf16.mxu0 %v2753_v45  ;;  %v890_v44 = vld [vmem:[#allocation5 + $0x1410] sm:$0xff]  ;;  %v3029_v45 = vpack.c.bf16 %v899_v38, %v891_v37  ;;  %v2775_v51 = vpack.c.bf16 %v896_v43, %v888_v42  ;;  %v2793_v37 = vpack.c.bf16 %v977_v32, %v969_v31  ;;  %v968_v38 = vld [vmem:[#allocation5 + $0x1680] sm:$0xff]  ;;  %v985_v43 = vld [vmem:[#allocation5 + $0x1708] sm:$0xff] }
  0xfc   : > { %3010 = vmatprep.subr.bf16.mxu1 %v3009_v49  ;;  %v907_v49 = vld [vmem:[#allocation5 + $0x1498] sm:$0xff]  ;;  %v3031_v52 = vpack.c.bf16 %v898_v46, %v890_v44  ;;  %v978_v42 = vld [vmem:[#allocation5 + $0x16d0] sm:$0xff]  ;;  %v993_v44 = vld [vmem:[#allocation5 + $0x1748] sm:$0xff] }
  0xfd   : > { %v995_v46 = vld [vmem:[#allocation5 + $0x1758] sm:$0xff] }
  0xfe   : > { %2756 = vmatpush1.bf16.msra.mxu0 %v2755_v55  ;;  %v912_v55 = vld [vmem:[#allocation5 + $0x14c0] sm:$0xff]  ;;  %v1059_v31 = vld [vmem:[#allocation5 + $0x1958] sm:$0xff] }
  0xff   : > { %3012 = vmatpush1.bf16.msra.mxu1 %v3011_v56  ;;  %2758 = vmatprep.subr.bf16.mxu0 %v2757_v57  ;;  %v906_v56 = vld [vmem:[#allocation5 + $0x1490] sm:$0xff]  ;;  %v3033_v57 = vpack.c.bf16 %v915_v50, %v907_v49  ;;  %v2779_v63 = vpack.c.bf16 %v912_v55, %v904_v54  ;;  %v2797_v49 = vpack.c.bf16 %v993_v44, %v985_v43  ;;  %v984_v50 = vld [vmem:[#allocation5 + $0x1700] sm:$0xff]  ;;  %v1001_v55 = vld [vmem:[#allocation5 + $0x1788] sm:$0xff] }
 0x100   : > { %3014 = vmatprep.subr.bf16.mxu1 %v3013_v61  ;;  %v923_v61 = vld [vmem:[#allocation5 + $0x1518] sm:$0xff]  ;;  %v3035_v0 = vpack.c.bf16 %v914_v58, %v906_v56  ;;  %v994_v54 = vld [vmem:[#allocation5 + $0x1750] sm:$0xff]  ;;  %v1009_v56 = vld [vmem:[#allocation5 + $0x17c8] sm:$0xff] }
 0x101   : > { %v1011_v58 = vld [vmem:[#allocation5 + $0x17d8] sm:$0xff] }
 0x102   : > { %2760 = vmatpush1.bf16.msra.mxu0 %v2759_v3  ;;  %v928_v3 = vld [vmem:[#allocation5 + $0x1540] sm:$0xff]  ;;  %v2605_v32 = vld [vmem:[%s4160_s28 + $0x38] sm:$0xff] }
 0x103   : > { %3016 = vmatpush1.bf16.msra.mxu1 %v3015_v4  ;;  %2762 = vmatprep.subr.bf16.mxu0 %v2761_v5  ;;  %v922_v4 = vld [vmem:[#allocation5 + $0x1510] sm:$0xff]  ;;  %v3037_v5 = vpack.c.bf16 %v931_v62, %v923_v61  ;;  %v2783_v11 = vpack.c.bf16 %v928_v3, %v920_v2  ;;  %v2801_v61 = vpack.c.bf16 %v1009_v56, %v1001_v55  ;;  %v1000_v62 = vld [vmem:[#allocation5 + $0x1780] sm:$0xff]  ;;  %v1017_v3 = vld [vmem:[#allocation5 + $0x1808] sm:$0xff] }
 0x104   : > { %3018 = vmatprep.subr.bf16.mxu1 %v3017_v9  ;;  %v939_v9 = vld [vmem:[#allocation5 + $0x1598] sm:$0xff]  ;;  %v3039_v12 = vpack.c.bf16 %v930_v6, %v922_v4  ;;  %v1010_v2 = vld [vmem:[#allocation5 + $0x17d0] sm:$0xff]  ;;  %v1025_v4 = vld [vmem:[#allocation5 + $0x1848] sm:$0xff] }
 0x105   : > { %v1027_v6 = vld [vmem:[#allocation5 + $0x1858] sm:$0xff] }
 0x106   : > { %2764 = vmatpush1.bf16.msra.mxu0 %v2763_v15  ;;  %v944_v15 = vld [vmem:[#allocation5 + $0x15c0] sm:$0xff]  ;;  %v1067_v43 = vld [vmem:[#allocation5 + $0x1998] sm:$0xff] }
 0x107   : > { %3020 = vmatpush1.bf16.msra.mxu1 %v3019_v16  ;;  %2766 = vmatprep.subr.bf16.mxu0 %v2765_v17  ;;  %v938_v16 = vld [vmem:[#allocation5 + $0x1590] sm:$0xff]  ;;  %v3041_v17 = vpack.c.bf16 %v947_v10, %v939_v9  ;;  %v2787_v23 = vpack.c.bf16 %v944_v15, %v936_v14  ;;  %v2805_v9 = vpack.c.bf16 %v1025_v4, %v1017_v3  ;;  %v1016_v10 = vld [vmem:[#allocation5 + $0x1800] sm:$0xff]  ;;  %v1033_v15 = vld [vmem:[#allocation5 + $0x1888] sm:$0xff] }
 0x108   : > { %3022 = vmatprep.subr.bf16.mxu1 %v3021_v21  ;;  %v955_v21 = vld [vmem:[#allocation5 + $0x1618] sm:$0xff]  ;;  %v3043_v24 = vpack.c.bf16 %v946_v18, %v938_v16  ;;  %v1026_v14 = vld [vmem:[#allocation5 + $0x1850] sm:$0xff]  ;;  %v1041_v16 = vld [vmem:[#allocation5 + $0x18c8] sm:$0xff] }
 0x109   : > { %v1043_v18 = vld [vmem:[#allocation5 + $0x18d8] sm:$0xff] }
 0x10a   : > { %2768 = vmatpush1.bf16.msra.mxu0 %v2767_v27  ;;  %v960_v27 = vld [vmem:[#allocation5 + $0x1640] sm:$0xff]  ;;  %v1075_v44 = vld [vmem:[#allocation5 + $0x19d8] sm:$0xff] }
 0x10b   : > { %3024 = vmatpush1.bf16.msra.mxu1 %v3023_v28  ;;  %2770 = vmatprep.subr.bf16.mxu0 %v2769_v29  ;;  %v954_v28 = vld [vmem:[#allocation5 + $0x1610] sm:$0xff]  ;;  %v3045_v29 = vpack.c.bf16 %v963_v22, %v955_v21  ;;  %v2791_v35 = vpack.c.bf16 %v960_v27, %v952_v26  ;;  %v2809_v22 = vpack.c.bf16 %v1041_v16, %v1033_v15  ;;  %v1083_v55 = vld [vmem:[#allocation5 + $0x1a18] sm:$0xff] }
 0x10c   : > { %3026 = vmatprep.subr.bf16.mxu1 %v3025_v33  ;;  %v971_v33 = vld [vmem:[#allocation5 + $0x1698] sm:$0xff]  ;;  %v3047_v36 = vpack.c.bf16 %v962_v30, %v954_v28  ;;  %v1042_v27 = vld [vmem:[#allocation5 + $0x18d0] sm:$0xff]  ;;  %v1049_v28 = vld [vmem:[#allocation5 + $0x1908] sm:$0xff] }
 0x10d   : > { %v1051_v30 = vld [vmem:[#allocation5 + $0x1918] sm:$0xff] }
 0x10e   : > { %2772 = vmatpush1.bf16.msra.mxu0 %v2771_v39  ;;  %v976_v39 = vld [vmem:[#allocation5 + $0x16c0] sm:$0xff]  ;;  %v1091_v56 = vld [vmem:[#allocation5 + $0x1a58] sm:$0xff] }
 0x10f   : > { %3028 = vmatpush1.bf16.msra.mxu1 %v3027_v40  ;;  %2774 = vmatprep.subr.bf16.mxu0 %v2773_v41  ;;  %v970_v40 = vld [vmem:[#allocation5 + $0x1690] sm:$0xff]  ;;  %v3049_v41 = vpack.c.bf16 %v979_v34, %v971_v33  ;;  %v2795_v47 = vpack.c.bf16 %v976_v39, %v968_v38  ;;  %v3069_v39 = vpack.c.bf16 %v1059_v31, %v1051_v30  ;;  %v1099_v3 = vld [vmem:[#allocation5 + $0x1a98] sm:$0xff] }
 0x110   : > { %3030 = vmatprep.subr.bf16.mxu1 %v3029_v45  ;;  %v987_v45 = vld [vmem:[#allocation5 + $0x1718] sm:$0xff]  ;;  %v3051_v48 = vpack.c.bf16 %v978_v42, %v970_v40  ;;  %v1050_v38 = vld [vmem:[#allocation5 + $0x1910] sm:$0xff]  ;;  %v1073_v42 = vld [vmem:[#allocation5 + $0x19c8] sm:$0xff] }
 0x111   : > { %v1058_v40 = vld [vmem:[#allocation5 + $0x1950] sm:$0xff]  ;;  %v1107_v4 = vld [vmem:[#allocation5 + $0x1ad8] sm:$0xff] }
 0x112   : > { %2776 = vmatpush1.bf16.msra.mxu0 %v2775_v51  ;;  %v992_v51 = vld [vmem:[#allocation5 + $0x1740] sm:$0xff]  ;;  %v1115_v15 = vld [vmem:[#allocation5 + $0x1b18] sm:$0xff] }
 0x113   : > { %3032 = vmatpush1.bf16.msra.mxu1 %v3031_v52  ;;  %2778 = vmatprep.subr.bf16.mxu0 %v2777_v53  ;;  %v986_v52 = vld [vmem:[#allocation5 + $0x1710] sm:$0xff]  ;;  %v3053_v53 = vpack.c.bf16 %v995_v46, %v987_v45  ;;  %v2799_v59 = vpack.c.bf16 %v992_v51, %v984_v50  ;;  %v3071_v46 = vpack.c.bf16 %v1058_v40, %v1050_v38  ;;  %v1123_v16 = vld [vmem:[#allocation5 + $0x1b58] sm:$0xff]  ;;  %v1153_v38 = vld [vmem:[#allocation5 + $0x1c48] sm:$0xff] }
 0x114   : > { %3034 = vmatprep.subr.bf16.mxu1 %v3033_v57  ;;  %v1003_v57 = vld [vmem:[#allocation5 + $0x1798] sm:$0xff]  ;;  %v3055_v60 = vpack.c.bf16 %v994_v54, %v986_v52  ;;  %v1066_v50 = vld [vmem:[#allocation5 + $0x1990] sm:$0xff]  ;;  %v3073_v51 = vpack.c.bf16 %v1075_v44, %v1067_v43  ;;  %v1089_v54 = vld [vmem:[#allocation5 + $0x1a48] sm:$0xff] }
 0x115   : > { %v1074_v52 = vld [vmem:[#allocation5 + $0x19d0] sm:$0xff]  ;;  %v1155_v40 = vld [vmem:[#allocation5 + $0x1c58] sm:$0xff]  ;;  %v1144_v44 = vld [vmem:[#allocation5 + $0x1c00] sm:$0xff] }
 0x116   : > { %2780 = vmatpush1.bf16.msra.mxu0 %v2779_v63  ;;  %v1008_v63 = vld [vmem:[#allocation5 + $0x17c0] sm:$0xff] }
 0x117   : > { %3036 = vmatpush1.bf16.msra.mxu1 %v3035_v0  ;;  %2782 = vmatprep.subr.bf16.mxu0 %v2781_v1  ;;  %v1002_v0 = vld [vmem:[#allocation5 + $0x1790] sm:$0xff]  ;;  %v3057_v1 = vpack.c.bf16 %v1011_v58, %v1003_v57  ;;  %v2803_v7 = vpack.c.bf16 %v1008_v63, %v1000_v62  ;;  %v3075_v58 = vpack.c.bf16 %v1074_v52, %v1066_v50  ;;  %v1169_v50 = vld [vmem:[#allocation5 + $0x1cc8] sm:$0xff]  ;;  %v1171_v52 = vld [vmem:[#allocation5 + $0x1cd8] sm:$0xff] }
 0x118   : > { %3038 = vmatprep.subr.bf16.mxu1 %v3037_v5  ;;  %v1019_v5 = vld [vmem:[#allocation5 + $0x1818] sm:$0xff]  ;;  %v3059_v8 = vpack.c.bf16 %v1010_v2, %v1002_v0  ;;  %v1082_v62 = vld [vmem:[#allocation5 + $0x1a10] sm:$0xff]  ;;  %v3077_v63 = vpack.c.bf16 %v1091_v56, %v1083_v55  ;;  %v1105_v2 = vld [vmem:[#allocation5 + $0x1ac8] sm:$0xff] }
 0x119   : > { %v1090_v0 = vld [vmem:[#allocation5 + $0x1a50] sm:$0xff]  ;;  %v1160_v56 = vld [vmem:[#allocation5 + $0x1c80] sm:$0xff] }
 0x11a   : > { %2784 = vmatpush1.bf16.msra.mxu0 %v2783_v11  ;;  %v1024_v11 = vld [vmem:[#allocation5 + $0x1840] sm:$0xff] }
 0x11b   : > { %3040 = vmatpush1.bf16.msra.mxu1 %v3039_v12  ;;  %2786 = vmatprep.subr.bf16.mxu0 %v2785_v13  ;;  %v1018_v12 = vld [vmem:[#allocation5 + $0x1810] sm:$0xff]  ;;  %v3061_v13 = vpack.c.bf16 %v1027_v6, %v1019_v5  ;;  %v2807_v20 = vpack.c.bf16 %v1024_v11, %v1016_v10  ;;  %v3079_v6 = vpack.c.bf16 %v1090_v0, %v1082_v62  ;;  %v1185_v62 = vld [vmem:[#allocation5 + $0x1d48] sm:$0xff]  ;;  %v1187_v0 = vld [vmem:[#allocation5 + $0x1d58] sm:$0xff] }
 0x11c   : > { %3042 = vmatprep.subr.bf16.mxu1 %v3041_v17  ;;  %v1035_v17 = vld [vmem:[#allocation5 + $0x1898] sm:$0xff]  ;;  %v3063_v21 = vpack.c.bf16 %v1026_v14, %v1018_v12  ;;  %v1098_v10 = vld [vmem:[#allocation5 + $0x1a90] sm:$0xff]  ;;  %v3081_v11 = vpack.c.bf16 %v1107_v4, %v1099_v3  ;;  %v1121_v14 = vld [vmem:[#allocation5 + $0x1b48] sm:$0xff] }
 0x11d   : > { %v3065_v26 = vpack.c.bf16 %v1043_v18, %v1035_v17  ;;  %v1106_v12 = vld [vmem:[#allocation5 + $0x1ad0] sm:$0xff]  ;;  %v1176_v4 = vld [vmem:[#allocation5 + $0x1d00] sm:$0xff] }
 0x11e   : > { %2788 = vmatpush1.bf16.msra.mxu0 %v2787_v23  ;;  %v1032_v23 = vld [vmem:[#allocation5 + $0x1880] sm:$0xff]  ;;  %v3083_v18 = vpack.c.bf16 %v1106_v12, %v1098_v10  ;;  %v1201_v10 = vld [vmem:[#allocation5 + $0x1dc8] sm:$0xff]  ;;  %v1203_v12 = vld [vmem:[#allocation5 + $0x1dd8] sm:$0xff] }
 0x11f   : > { %3044 = vmatpush1.bf16.msra.mxu1 %v3043_v24  ;;  %2790 = vmatprep.subr.bf16.mxu0 %v2789_v25  ;;  %v1040_v24 = vld [vmem:[#allocation5 + $0x18c0] sm:$0xff]  ;;  %v1034_v25 = vld [vmem:[#allocation5 + $0x1890] sm:$0xff] }
 0x120   : > { %3046 = vmatprep.subr.bf16.mxu1 %v3045_v29  ;;  %v1057_v29 = vld [vmem:[#allocation5 + $0x1948] sm:$0xff]  ;;  %v2811_v33 = vpack.c.bf16 %v1040_v24, %v1032_v23  ;;  %v3067_v34 = vpack.c.bf16 %v1042_v27, %v1034_v25  ;;  %v3085_v23 = vpack.c.bf16 %v1123_v16, %v1115_v15  ;;  %v1122_v24 = vld [vmem:[#allocation5 + $0x1b50] sm:$0xff]  ;;  %v1131_v27 = vld [vmem:[#allocation5 + $0x1b98] sm:$0xff] }
 0x121   : > { %v1129_v25 = vld [vmem:[#allocation5 + $0x1b88] sm:$0xff]  ;;  %v1192_v16 = vld [vmem:[#allocation5 + $0x1d80] sm:$0xff] }
 0x122   : > { %2792 = vmatpush1.bf16.msra.mxu0 %v2791_v35  ;;  %v2813_v35 = vpack.c.bf16 %v1057_v29, %v1049_v28  ;;  %v1139_v28 = vld [vmem:[#allocation5 + $0x1bd8] sm:$0xff] }
 0x123   : > { %3048 = vmatpush1.bf16.msra.mxu1 %v3047_v36  ;;  %2794 = vmatprep.subr.bf16.mxu0 %v2793_v37  ;;  %v1048_v36 = vld [vmem:[#allocation5 + $0x1900] sm:$0xff] }
 0x124   : > { %3050 = vmatprep.subr.bf16.mxu1 %v3049_v41  ;;  %v1056_v37 = vld [vmem:[#allocation5 + $0x1940] sm:$0xff]  ;;  %v1065_v41 = vld [vmem:[#allocation5 + $0x1988] sm:$0xff] }
 0x125   : > { %v2815_v45 = vpack.c.bf16 %v1056_v37, %v1048_v36  ;;  %v1138_v36 = vld [vmem:[#allocation5 + $0x1bd0] sm:$0xff]  ;;  %v1145_v37 = vld [vmem:[#allocation5 + $0x1c08] sm:$0xff] }
 0x126   : > { %2796 = vmatpush1.bf16.msra.mxu0 %v2795_v47  ;;  %v2817_v47 = vpack.c.bf16 %v1073_v42, %v1065_v41  ;;  %v2837_v43 = vpack.c.bf16 %v1153_v38, %v1145_v37 }
 0x127   : > { %3052 = vmatpush1.bf16.msra.mxu1 %v3051_v48  ;;  %2798 = vmatprep.subr.bf16.mxu0 %v2797_v49  ;;  %v1064_v48 = vld [vmem:[#allocation5 + $0x1980] sm:$0xff] }
 0x128   : > { %3054 = vmatprep.subr.bf16.mxu1 %v3053_v53  ;;  %v1072_v49 = vld [vmem:[#allocation5 + $0x19c0] sm:$0xff]  ;;  %v1081_v53 = vld [vmem:[#allocation5 + $0x1a08] sm:$0xff] }
 0x129   : > { %v2819_v57 = vpack.c.bf16 %v1072_v49, %v1064_v48  ;;  %v1154_v48 = vld [vmem:[#allocation5 + $0x1c50] sm:$0xff]  ;;  %v1161_v49 = vld [vmem:[#allocation5 + $0x1c88] sm:$0xff] }
 0x12a   : > { %2800 = vmatpush1.bf16.msra.mxu0 %v2799_v59  ;;  %v2821_v59 = vpack.c.bf16 %v1089_v54, %v1081_v53  ;;  %v2841_v55 = vpack.c.bf16 %v1169_v50, %v1161_v49 }
 0x12b   : > { %3056 = vmatpush1.bf16.msra.mxu1 %v3055_v60  ;;  %2802 = vmatprep.subr.bf16.mxu0 %v2801_v61  ;;  %v1080_v60 = vld [vmem:[#allocation5 + $0x1a00] sm:$0xff] }
 0x12c   : > { %3058 = vmatprep.subr.bf16.mxu1 %v3057_v1  ;;  %v1088_v61 = vld [vmem:[#allocation5 + $0x1a40] sm:$0xff]  ;;  %v1097_v1 = vld [vmem:[#allocation5 + $0x1a88] sm:$0xff] }
 0x12d   : > { %v2823_v5 = vpack.c.bf16 %v1088_v61, %v1080_v60  ;;  %v1170_v60 = vld [vmem:[#allocation5 + $0x1cd0] sm:$0xff]  ;;  %v1177_v61 = vld [vmem:[#allocation5 + $0x1d08] sm:$0xff] }
 0x12e   : > { %2804 = vmatpush1.bf16.msra.mxu0 %v2803_v7  ;;  %v2825_v7 = vpack.c.bf16 %v1105_v2, %v1097_v1  ;;  %v2845_v3 = vpack.c.bf16 %v1185_v62, %v1177_v61 }
 0x12f   : > { %3060 = vmatpush1.bf16.msra.mxu1 %v3059_v8  ;;  %2806 = vmatprep.subr.bf16.mxu0 %v2805_v9  ;;  %v1096_v8 = vld [vmem:[#allocation5 + $0x1a80] sm:$0xff] }
 0x130   : > { %3062 = vmatprep.subr.bf16.mxu1 %v3061_v13  ;;  %v1104_v9 = vld [vmem:[#allocation5 + $0x1ac0] sm:$0xff]  ;;  %v1113_v13 = vld [vmem:[#allocation5 + $0x1b08] sm:$0xff] }
 0x131   : > { %1521 = vmatmul.mubr.f32.vlgmr.msra.gmra.mrb[0].mxu0 %v2602_v19  ;;  %v2827_v17 = vpack.c.bf16 %v1104_v9, %v1096_v8  ;;  %v1186_v8 = vld [vmem:[#allocation5 + $0x1d50] sm:$0xff]  ;;  %v1193_v9 = vld [vmem:[#allocation5 + $0x1d88] sm:$0xff] }
 0x132   : > { %2808 = vmatpush1.bf16.msra.mxu0 %v2807_v20  ;;  %1805 = vmatmul.mubr.f32.vlgmr.msra.gmra.mrb[0].mxu1 %v2602_v19  ;;  %v2829_v19 = vpack.c.bf16 %v1121_v14, %v1113_v13  ;;  %v1112_v20 = vld [vmem:[#allocation5 + $0x1b00] sm:$0xff]  ;;  %v2849_v15 = vpack.c.bf16 %v1201_v10, %v1193_v9 }
 0x133   : > { %3064 = vmatpush1.bf16.msra.mxu1 %v3063_v21  ;;  %2810 = vmatprep.subr.bf16.mxu0 %v2809_v22  ;;  %v1120_v21 = vld [vmem:[#allocation5 + $0x1b40] sm:$0xff]  ;;  %v1114_v22 = vld [vmem:[#allocation5 + $0x1b10] sm:$0xff] }
 0x134   : > { %3066 = vmatprep.subr.bf16.mxu1 %v3065_v26  ;;  %1591 = vmatprep.mubr.f32.mxu0 %v2605_v32  ;;  %v1137_v26 = vld [vmem:[#allocation5 + $0x1bc8] sm:$0xff]  ;;  %v2831_v29 = vpack.c.bf16 %v1120_v21, %v1112_v20  ;;  %v3087_v30 = vpack.c.bf16 %v1122_v24, %v1114_v22  ;;  %v1202_v20 = vld [vmem:[#allocation5 + $0x1dd0] sm:$0xff]  ;;  %v1219_v24 = vld [vmem:[#allocation5 + $0x1e58] sm:$0xff] }
 0x135   : > { %1875 = vmatprep.mubr.f32.mxu1 %v2605_v32  ;;  %v2833_v31 = vpack.c.bf16 %v1137_v26, %v1129_v25  ;;  %v1128_v32 = vld [vmem:[#allocation5 + $0x1b80] sm:$0xff]  ;;  %v1209_v21 = vld [vmem:[#allocation5 + $0x1e08] sm:$0xff] }
 0x136   : > { %2812 = vmatpush1.bf16.msra.mxu0 %v2811_v33  ;;  %v1136_v33 = vld [vmem:[#allocation5 + $0x1bc0] sm:$0xff]  ;;  %v1217_v22 = vld [vmem:[#allocation5 + $0x1e48] sm:$0xff] }
 0x137   : > { %3068 = vmatpush1.bf16.msra.mxu1 %v3067_v34  ;;  %2814 = vmatprep.subr.bf16.mxu0 %v2813_v35  ;;  %v1130_v34 = vld [vmem:[#allocation5 + $0x1b90] sm:$0xff]  ;;  %v3089_v35 = vpack.c.bf16 %v1139_v28, %v1131_v27  ;;  %v2835_v41 = vpack.c.bf16 %v1136_v33, %v1128_v32  ;;  %v2853_v27 = vpack.c.bf16 %v1217_v22, %v1209_v21  ;;  %v1208_v28 = vld [vmem:[#allocation5 + $0x1e00] sm:$0xff]  ;;  %v1225_v33 = vld [vmem:[#allocation5 + $0x1e88] sm:$0xff] }
 0x138   : > { %3070 = vmatprep.subr.bf16.mxu1 %v3069_v39  ;;  %v1147_v39 = vld [vmem:[#allocation5 + $0x1c18] sm:$0xff]  ;;  %v3091_v42 = vpack.c.bf16 %v1138_v36, %v1130_v34  ;;  %v1218_v32 = vld [vmem:[#allocation5 + $0x1e50] sm:$0xff]  ;;  %v1233_v34 = vld [vmem:[#allocation5 + $0x1ec8] sm:$0xff] }
 0x139   : > { %v1235_v36 = vld [vmem:[#allocation5 + $0x1ed8] sm:$0xff]  ;;  %v2604_v21 = vld [vmem:[%s4160_s28 + $0x30] sm:$0xff] }
 0x13a   : > { %2816 = vmatpush1.bf16.msra.mxu0 %v2815_v45  ;;  %v1152_v45 = vld [vmem:[#allocation5 + $0x1c40] sm:$0xff] }
 0x13b   : > { %3072 = vmatpush1.bf16.msra.mxu1 %v3071_v46  ;;  %2818 = vmatprep.subr.bf16.mxu0 %v2817_v47  ;;  %v1146_v46 = vld [vmem:[#allocation5 + $0x1c10] sm:$0xff]  ;;  %v3093_v47 = vpack.c.bf16 %v1155_v40, %v1147_v39  ;;  %v2839_v53 = vpack.c.bf16 %v1152_v45, %v1144_v44  ;;  %v2857_v39 = vpack.c.bf16 %v1233_v34, %v1225_v33  ;;  %v1224_v40 = vld [vmem:[#allocation5 + $0x1e80] sm:$0xff]  ;;  %v1241_v45 = vld [vmem:[#allocation5 + $0x1f08] sm:$0xff] }
 0x13c   : > { %3074 = vmatprep.subr.bf16.mxu1 %v3073_v51  ;;  %v1163_v51 = vld [vmem:[#allocation5 + $0x1c98] sm:$0xff]  ;;  %v3095_v54 = vpack.c.bf16 %v1154_v48, %v1146_v46  ;;  %v1234_v44 = vld [vmem:[#allocation5 + $0x1ed0] sm:$0xff]  ;;  %v1249_v46 = vld [vmem:[#allocation5 + $0x1f48] sm:$0xff] }
 0x13d   : > { %v1251_v48 = vld [vmem:[#allocation5 + $0x1f58] sm:$0xff] }
 0x13e   : > { %2820 = vmatpush1.bf16.msra.mxu0 %v2819_v57  ;;  %v1168_v57 = vld [vmem:[#allocation5 + $0x1cc0] sm:$0xff]  ;;  %v295_v33 = vld [vmem:[#allocation5 + $0x178] sm:$0xff] }
 0x13f   : > { %3076 = vmatpush1.bf16.msra.mxu1 %v3075_v58  ;;  %2822 = vmatprep.subr.bf16.mxu0 %v2821_v59  ;;  %v1162_v58 = vld [vmem:[#allocation5 + $0x1c90] sm:$0xff]  ;;  %v3097_v59 = vpack.c.bf16 %v1171_v52, %v1163_v51  ;;  %v2843_v1 = vpack.c.bf16 %v1168_v57, %v1160_v56  ;;  %v2861_v51 = vpack.c.bf16 %v1249_v46, %v1241_v45  ;;  %v1240_v52 = vld [vmem:[#allocation5 + $0x1f00] sm:$0xff]  ;;  %v1257_v57 = vld [vmem:[#allocation5 + $0x1f88] sm:$0xff] }
 0x140   : > { %3078 = vmatprep.subr.bf16.mxu1 %v3077_v63  ;;  %v1179_v63 = vld [vmem:[#allocation5 + $0x1d18] sm:$0xff]  ;;  %v3099_v2 = vpack.c.bf16 %v1170_v60, %v1162_v58  ;;  %v1250_v56 = vld [vmem:[#allocation5 + $0x1f50] sm:$0xff]  ;;  %v1265_v58 = vld [vmem:[#allocation5 + $0x1fc8] sm:$0xff] }
 0x141   : > { %v1267_v60 = vld [vmem:[#allocation5 + $0x1fd8] sm:$0xff] }
 0x142   : > { %2824 = vmatpush1.bf16.msra.mxu0 %v2823_v5  ;;  %v1184_v5 = vld [vmem:[#allocation5 + $0x1d40] sm:$0xff]  ;;  %v303_v45 = vld [vmem:[#allocation5 + $0x1b8] sm:$0xff] }
 0x143   : > { %3080 = vmatpush1.bf16.msra.mxu1 %v3079_v6  ;;  %2826 = vmatprep.subr.bf16.mxu0 %v2825_v7  ;;  %v1178_v6 = vld [vmem:[#allocation5 + $0x1d10] sm:$0xff]  ;;  %v3101_v7 = vpack.c.bf16 %v1187_v0, %v1179_v63  ;;  %v2847_v13 = vpack.c.bf16 %v1184_v5, %v1176_v4  ;;  %v2865_v63 = vpack.c.bf16 %v1265_v58, %v1257_v57  ;;  %v1256_v0 = vld [vmem:[#allocation5 + $0x1f80] sm:$0xff]  ;;  %v253_v5 = vld [vmem:[#allocation5 + $0x28] sm:$0xff] }
 0x144   : > { %3082 = vmatprep.subr.bf16.mxu1 %v3081_v11  ;;  %v1195_v11 = vld [vmem:[#allocation5 + $0x1d98] sm:$0xff]  ;;  %v3103_v14 = vpack.c.bf16 %v1186_v8, %v1178_v6  ;;  %v1266_v4 = vld [vmem:[#allocation5 + $0x1fd0] sm:$0xff]  ;;  %v261_v6 = vld [vmem:[#allocation5 + $0x68] sm:$0xff] }
 0x145   : > { %v263_v8 = vld [vmem:[#allocation5 + $0x78] sm:$0xff] }
 0x146   : > { %2828 = vmatpush1.bf16.msra.mxu0 %v2827_v17  ;;  %v1200_v17 = vld [vmem:[#allocation5 + $0x1dc0] sm:$0xff]  ;;  %v311_v46 = vld [vmem:[#allocation5 + $0x1f8] sm:$0xff] }
 0x147   : > { %3084 = vmatpush1.bf16.msra.mxu1 %v3083_v18  ;;  %2830 = vmatprep.subr.bf16.mxu0 %v2829_v19  ;;  %v1194_v18 = vld [vmem:[#allocation5 + $0x1d90] sm:$0xff]  ;;  %v3105_v19 = vpack.c.bf16 %v1203_v12, %v1195_v11  ;;  %v2851_v25 = vpack.c.bf16 %v1200_v17, %v1192_v16  ;;  %v3125_v11 = vpack.c.bf16 %v261_v6, %v253_v5  ;;  %v252_v12 = vld [vmem:[#allocation5 + $0x20] sm:$0xff]  ;;  %v269_v17 = vld [vmem:[#allocation5 + $0xa8] sm:$0xff] }
 0x148   : > { %3086 = vmatprep.subr.bf16.mxu1 %v3085_v23  ;;  %v1211_v23 = vld [vmem:[#allocation5 + $0x1e18] sm:$0xff]  ;;  %v3107_v26 = vpack.c.bf16 %v1202_v20, %v1194_v18  ;;  %v262_v16 = vld [vmem:[#allocation5 + $0x70] sm:$0xff]  ;;  %v277_v18 = vld [vmem:[#allocation5 + $0xe8] sm:$0xff] }
 0x149   : > { %v279_v20 = vld [vmem:[#allocation5 + $0xf8] sm:$0xff] }
 0x14a   : > { %2832 = vmatpush1.bf16.msra.mxu0 %v2831_v29  ;;  %v1216_v29 = vld [vmem:[#allocation5 + $0x1e40] sm:$0xff]  ;;  %v319_v57 = vld [vmem:[#allocation5 + $0x238] sm:$0xff] }
 0x14b   : > { %3088 = vmatpush1.bf16.msra.mxu1 %v3087_v30  ;;  %2834 = vmatprep.subr.bf16.mxu0 %v2833_v31  ;;  %v1210_v30 = vld [vmem:[#allocation5 + $0x1e10] sm:$0xff]  ;;  %v3109_v31 = vpack.c.bf16 %v1219_v24, %v1211_v23  ;;  %v2855_v37 = vpack.c.bf16 %v1216_v29, %v1208_v28  ;;  %v3129_v24 = vpack.c.bf16 %v277_v18, %v269_v17  ;;  %v327_v58 = vld [vmem:[#allocation5 + $0x278] sm:$0xff] }
 0x14c   : > { %3090 = vmatprep.subr.bf16.mxu1 %v3089_v35  ;;  %v1227_v35 = vld [vmem:[#allocation5 + $0x1e98] sm:$0xff]  ;;  %v3111_v38 = vpack.c.bf16 %v1218_v32, %v1210_v30  ;;  %v278_v29 = vld [vmem:[#allocation5 + $0xf0] sm:$0xff]  ;;  %v285_v30 = vld [vmem:[#allocation5 + $0x128] sm:$0xff] }
 0x14d   : > { %v287_v32 = vld [vmem:[#allocation5 + $0x138] sm:$0xff] }
 0x14e   : > { %2836 = vmatpush1.bf16.msra.mxu0 %v2835_v41  ;;  %v1232_v41 = vld [vmem:[#allocation5 + $0x1ec0] sm:$0xff]  ;;  %v335_v5 = vld [vmem:[#allocation5 + $0x2b8] sm:$0xff] }
 0x14f   : > { %3092 = vmatpush1.bf16.msra.mxu1 %v3091_v42  ;;  %2838 = vmatprep.subr.bf16.mxu0 %v2837_v43  ;;  %v1226_v42 = vld [vmem:[#allocation5 + $0x1e90] sm:$0xff]  ;;  %v3113_v43 = vpack.c.bf16 %v1235_v36, %v1227_v35  ;;  %v2859_v49 = vpack.c.bf16 %v1232_v41, %v1224_v40  ;;  %v3389_v40 = vpack.c.bf16 %v295_v33, %v287_v32  ;;  %v343_v6 = vld [vmem:[#allocation5 + $0x2f8] sm:$0xff] }
 0x150   : > { %3094 = vmatprep.subr.bf16.mxu1 %v3093_v47  ;;  %v1243_v47 = vld [vmem:[#allocation5 + $0x1f18] sm:$0xff]  ;;  %v3115_v50 = vpack.c.bf16 %v1234_v44, %v1226_v42  ;;  %v294_v41 = vld [vmem:[#allocation5 + $0x170] sm:$0xff]  ;;  %v301_v42 = vld [vmem:[#allocation5 + $0x1a8] sm:$0xff] }
 0x151   : > { %v3756_v44 = vld [vmem:[%s4160_s28 + $0x8] sm:$0xff]  ;;  %v351_v17 = vld [vmem:[#allocation5 + $0x338] sm:$0xff] }
 0x152   : > { %2840 = vmatpush1.bf16.msra.mxu0 %v2839_v53  ;;  %v1248_v53 = vld [vmem:[#allocation5 + $0x1f40] sm:$0xff]  ;;  %v359_v18 = vld [vmem:[#allocation5 + $0x378] sm:$0xff] }
 0x153   : > { %3096 = vmatpush1.bf16.msra.mxu1 %v3095_v54  ;;  %2842 = vmatprep.subr.bf16.mxu0 %v2841_v55  ;;  %v1242_v54 = vld [vmem:[#allocation5 + $0x1f10] sm:$0xff]  ;;  %v3117_v55 = vpack.c.bf16 %v1251_v48, %v1243_v47  ;;  %v2863_v61 = vpack.c.bf16 %v1248_v53, %v1240_v52  ;;  %v3393_v53 = vpack.c.bf16 %v311_v46, %v303_v45  ;;  %v380_v46 = vld [vmem:[#allocation5 + $0x420] sm:$0xff] }
 0x154   : > { %3098 = vmatprep.subr.bf16.mxu1 %v3097_v59  ;;  %v1259_v59 = vld [vmem:[#allocation5 + $0x1f98] sm:$0xff]  ;;  %v3119_v62 = vpack.c.bf16 %v1250_v56, %v1242_v54  ;;  %v302_v52 = vld [vmem:[#allocation5 + $0x1b0] sm:$0xff]  ;;  %v325_v56 = vld [vmem:[#allocation5 + $0x268] sm:$0xff] }
 0x155   : > { %v310_v54 = vld [vmem:[#allocation5 + $0x1f0] sm:$0xff] }
 0x156   : > { %2844 = vmatpush1.bf16.msra.mxu0 %v2843_v1  ;;  %v1264_v1 = vld [vmem:[#allocation5 + $0x1fc0] sm:$0xff] }
 0x157   : > { %3100 = vmatpush1.bf16.msra.mxu1 %v3099_v2  ;;  %2846 = vmatprep.subr.bf16.mxu0 %v2845_v3  ;;  %v1258_v2 = vld [vmem:[#allocation5 + $0x1f90] sm:$0xff]  ;;  %v3121_v3 = vpack.c.bf16 %v1267_v60, %v1259_v59  ;;  %v2867_v9 = vpack.c.bf16 %v1264_v1, %v1256_v0  ;;  %v3395_v60 = vpack.c.bf16 %v310_v54, %v302_v52  ;;  %v405_v52 = vld [vmem:[#allocation5 + $0x4e8] sm:$0xff]  ;;  %v407_v54 = vld [vmem:[#allocation5 + $0x4f8] sm:$0xff] }
 0x158   : > { %3102 = vmatprep.subr.bf16.mxu1 %v3101_v7  ;;  %v255_v7 = vld [vmem:[#allocation5 + $0x38] sm:$0xff]  ;;  %v3123_v10 = vpack.c.bf16 %v1266_v4, %v1258_v2  ;;  %v318_v0 = vld [vmem:[#allocation5 + $0x230] sm:$0xff]  ;;  %v3397_v1 = vpack.c.bf16 %v327_v58, %v319_v57  ;;  %v341_v4 = vld [vmem:[#allocation5 + $0x2e8] sm:$0xff] }
 0x159   : > { %v326_v2 = vld [vmem:[#allocation5 + $0x270] sm:$0xff]  ;;  %v396_v58 = vld [vmem:[#allocation5 + $0x4a0] sm:$0xff] }
 0x15a   : > { %2848 = vmatpush1.bf16.msra.mxu0 %v2847_v13  ;;  %v260_v13 = vld [vmem:[#allocation5 + $0x60] sm:$0xff] }
 0x15b   : > { %3104 = vmatpush1.bf16.msra.mxu1 %v3103_v14  ;;  %2850 = vmatprep.subr.bf16.mxu0 %v2849_v15  ;;  %v254_v14 = vld [vmem:[#allocation5 + $0x30] sm:$0xff]  ;;  %v3381_v15 = vpack.c.bf16 %v263_v8, %v255_v7  ;;  %v3127_v22 = vpack.c.bf16 %v260_v13, %v252_v12  ;;  %v3399_v8 = vpack.c.bf16 %v326_v2, %v318_v0  ;;  %v421_v0 = vld [vmem:[#allocation5 + $0x568] sm:$0xff]  ;;  %v423_v2 = vld [vmem:[#allocation5 + $0x578] sm:$0xff] }
 0x15c   : > { %3106 = vmatprep.subr.bf16.mxu1 %v3105_v19  ;;  %v271_v19 = vld [vmem:[#allocation5 + $0xb8] sm:$0xff]  ;;  %v3383_v23 = vpack.c.bf16 %v262_v16, %v254_v14  ;;  %v334_v12 = vld [vmem:[#allocation5 + $0x2b0] sm:$0xff]  ;;  %v3401_v13 = vpack.c.bf16 %v343_v6, %v335_v5  ;;  %v357_v16 = vld [vmem:[#allocation5 + $0x368] sm:$0xff] }
 0x15d   : > { %v3385_v28 = vpack.c.bf16 %v279_v20, %v271_v19  ;;  %v342_v14 = vld [vmem:[#allocation5 + $0x2f0] sm:$0xff]  ;;  %v412_v6 = vld [vmem:[#allocation5 + $0x520] sm:$0xff] }
 0x15e   : > { %2852 = vmatpush1.bf16.msra.mxu0 %v2851_v25  ;;  %v268_v25 = vld [vmem:[#allocation5 + $0xa0] sm:$0xff]  ;;  %v3403_v20 = vpack.c.bf16 %v342_v14, %v334_v12  ;;  %v437_v12 = vld [vmem:[#allocation5 + $0x5e8] sm:$0xff]  ;;  %v439_v14 = vld [vmem:[#allocation5 + $0x5f8] sm:$0xff] }
 0x15f   : > { %3108 = vmatpush1.bf16.msra.mxu1 %v3107_v26  ;;  %2854 = vmatprep.subr.bf16.mxu0 %v2853_v27  ;;  %v276_v26 = vld [vmem:[#allocation5 + $0xe0] sm:$0xff]  ;;  %v270_v27 = vld [vmem:[#allocation5 + $0xb0] sm:$0xff] }
 0x160   : > { %3110 = vmatprep.subr.bf16.mxu1 %v3109_v31  ;;  %v293_v31 = vld [vmem:[#allocation5 + $0x168] sm:$0xff]  ;;  %v3131_v34 = vpack.c.bf16 %v276_v26, %v268_v25  ;;  %v3387_v35 = vpack.c.bf16 %v278_v29, %v270_v27  ;;  %v3405_v25 = vpack.c.bf16 %v359_v18, %v351_v17  ;;  %v358_v26 = vld [vmem:[#allocation5 + $0x370] sm:$0xff]  ;;  %v367_v29 = vld [vmem:[#allocation5 + $0x3b8] sm:$0xff] }
 0x161   : > { %v3133_v36 = vpack.c.bf16 %v293_v31, %v285_v30  ;;  %v365_v27 = vld [vmem:[#allocation5 + $0x3a8] sm:$0xff]  ;;  %v375_v30 = vld [vmem:[#allocation5 + $0x3f8] sm:$0xff]  ;;  %v428_v18 = vld [vmem:[#allocation5 + $0x5a0] sm:$0xff] }
 0x162   : > { %2856 = vmatpush1.bf16.msra.mxu0 %v2855_v37  ;;  %v284_v37 = vld [vmem:[#allocation5 + $0x120] sm:$0xff] }
 0x163   : > { %3112 = vmatpush1.bf16.msra.mxu1 %v3111_v38  ;;  %2858 = vmatprep.subr.bf16.mxu0 %v2857_v39  ;;  %v292_v38 = vld [vmem:[#allocation5 + $0x160] sm:$0xff]  ;;  %v286_v39 = vld [vmem:[#allocation5 + $0x130] sm:$0xff] }
 0x164   : > { %3114 = vmatprep.subr.bf16.mxu1 %v3113_v43  ;;  %v309_v43 = vld [vmem:[#allocation5 + $0x1e8] sm:$0xff]  ;;  %v3135_v47 = vpack.c.bf16 %v292_v38, %v284_v37  ;;  %v3391_v48 = vpack.c.bf16 %v294_v41, %v286_v39  ;;  %v3409_v37 = vpack.c.bf16 %v375_v30, %v367_v29  ;;  %v374_v38 = vld [vmem:[#allocation5 + $0x3f0] sm:$0xff]  ;;  %v383_v41 = vld [vmem:[#allocation5 + $0x438] sm:$0xff] }
 0x165   : > { %v381_v39 = vld [vmem:[#allocation5 + $0x428] sm:$0xff]  ;;  %v444_v30 = vld [vmem:[#allocation5 + $0x620] sm:$0xff] }
 0x166   : > { %2860 = vmatpush1.bf16.msra.mxu0 %v2859_v49  ;;  %v3137_v49 = vpack.c.bf16 %v309_v43, %v301_v42  ;;  %v391_v42 = vld [vmem:[#allocation5 + $0x478] sm:$0xff] }
 0x167   : > { %3116 = vmatpush1.bf16.msra.mxu1 %v3115_v50  ;;  %2862 = vmatprep.subr.bf16.mxu0 %v2861_v51  ;;  %v300_v50 = vld [vmem:[#allocation5 + $0x1a0] sm:$0xff] }
 0x168   : > { %3118 = vmatprep.subr.bf16.mxu1 %v3117_v55  ;;  %v308_v51 = vld [vmem:[#allocation5 + $0x1e0] sm:$0xff]  ;;  %v317_v55 = vld [vmem:[#allocation5 + $0x228] sm:$0xff] }
 0x169   : > { %v3139_v59 = vpack.c.bf16 %v308_v51, %v300_v50  ;;  %v390_v50 = vld [vmem:[#allocation5 + $0x470] sm:$0xff]  ;;  %v397_v51 = vld [vmem:[#allocation5 + $0x4a8] sm:$0xff] }
 0x16a   : > { %2864 = vmatpush1.bf16.msra.mxu0 %v2863_v61  ;;  %v3141_v61 = vpack.c.bf16 %v325_v56, %v317_v55  ;;  %v3161_v57 = vpack.c.bf16 %v405_v52, %v397_v51 }
 0x16b   : > { %3120 = vmatpush1.bf16.msra.mxu1 %v3119_v62  ;;  %2866 = vmatprep.subr.bf16.mxu0 %v2865_v63  ;;  %v316_v62 = vld [vmem:[#allocation5 + $0x220] sm:$0xff] }
 0x16c   : > { %3122 = vmatprep.subr.bf16.mxu1 %v3121_v3  ;;  %v324_v63 = vld [vmem:[#allocation5 + $0x260] sm:$0xff]  ;;  %v333_v3 = vld [vmem:[#allocation5 + $0x2a8] sm:$0xff] }
 0x16d   : > { %v3143_v7 = vpack.c.bf16 %v324_v63, %v316_v62  ;;  %v406_v62 = vld [vmem:[#allocation5 + $0x4f0] sm:$0xff]  ;;  %v413_v63 = vld [vmem:[#allocation5 + $0x528] sm:$0xff] }
 0x16e   : > { %2868 = vmatpush1.bf16.msra.mxu0 %v2867_v9  ;;  %v3145_v9 = vpack.c.bf16 %v341_v4, %v333_v3  ;;  %v3165_v5 = vpack.c.bf16 %v421_v0, %v413_v63 }
 0x16f   : > { %3124 = vmatpush1.bf16.msra.mxu1 %v3123_v10  ;;  %3126 = vmatprep.subr.bf16.mxu0 %v3125_v11  ;;  %v332_v10 = vld [vmem:[#allocation5 + $0x2a0] sm:$0xff] }
 0x170   : > { %3382 = vmatprep.subr.bf16.mxu1 %v3381_v15  ;;  %v340_v11 = vld [vmem:[#allocation5 + $0x2e0] sm:$0xff]  ;;  %v349_v15 = vld [vmem:[#allocation5 + $0x328] sm:$0xff] }
 0x171   : > { %1592 = vmatmul.mubr.f32.vlgmr.msra.gmra.mrb[0].mxu0 %v2604_v21  ;;  %v3147_v19 = vpack.c.bf16 %v340_v11, %v332_v10  ;;  %v422_v10 = vld [vmem:[#allocation5 + $0x570] sm:$0xff]  ;;  %v429_v11 = vld [vmem:[#allocation5 + $0x5a8] sm:$0xff] }
 0x172   : > { %1876 = vmatmul.mubr.f32.vlgmr.msra.gmra.mrb[0].mxu1 %v2604_v21  ;;  %3128 = vmatpush1.bf16.msra.mxu0 %v3127_v22  ;;  %v3149_v21 = vpack.c.bf16 %v357_v16, %v349_v15  ;;  %v348_v22 = vld [vmem:[#allocation5 + $0x320] sm:$0xff]  ;;  %v3169_v17 = vpack.c.bf16 %v437_v12, %v429_v11 }
 0x173   : > { %3384 = vmatpush1.bf16.msra.mxu1 %v3383_v23  ;;  %3130 = vmatprep.subr.bf16.mxu0 %v3129_v24  ;;  %v356_v23 = vld [vmem:[#allocation5 + $0x360] sm:$0xff]  ;;  %v350_v24 = vld [vmem:[#allocation5 + $0x330] sm:$0xff] }
 0x174   : > { %3386 = vmatprep.subr.bf16.mxu1 %v3385_v28  ;;  %1946 = vmatprep.mubr.f32.mxu0 %v3756_v44  ;;  %v373_v28 = vld [vmem:[#allocation5 + $0x3e8] sm:$0xff]  ;;  %v3151_v31 = vpack.c.bf16 %v356_v23, %v348_v22  ;;  %v3407_v32 = vpack.c.bf16 %v358_v26, %v350_v24  ;;  %v438_v22 = vld [vmem:[#allocation5 + $0x5f0] sm:$0xff]  ;;  %v455_v26 = vld [vmem:[#allocation5 + $0x678] sm:$0xff] }
 0x175   : > { %2230 = vmatprep.mubr.f32.mxu1 %v3756_v44  ;;  %v3153_v33 = vpack.c.bf16 %v373_v28, %v365_v27  ;;  %v445_v23 = vld [vmem:[#allocation5 + $0x628] sm:$0xff] }
 0x176   : > { %3132 = vmatpush1.bf16.msra.mxu0 %v3131_v34  ;;  %v364_v34 = vld [vmem:[#allocation5 + $0x3a0] sm:$0xff]  ;;  %v453_v24 = vld [vmem:[#allocation5 + $0x668] sm:$0xff] }
 0x177   : > { %3388 = vmatpush1.bf16.msra.mxu1 %v3387_v35  ;;  %3134 = vmatprep.subr.bf16.mxu0 %v3133_v36  ;;  %v372_v35 = vld [vmem:[#allocation5 + $0x3e0] sm:$0xff]  ;;  %v366_v36 = vld [vmem:[#allocation5 + $0x3b0] sm:$0xff]  ;;  %v3173_v29 = vpack.c.bf16 %v453_v24, %v445_v23 }
 0x178   : > { %3390 = vmatprep.subr.bf16.mxu1 %v3389_v40  ;;  %v389_v40 = vld [vmem:[#allocation5 + $0x468] sm:$0xff]  ;;  %v3155_v43 = vpack.c.bf16 %v372_v35, %v364_v34  ;;  %v3411_v44 = vpack.c.bf16 %v374_v38, %v366_v36  ;;  %v454_v34 = vld [vmem:[#allocation5 + $0x670] sm:$0xff]  ;;  %v471_v38 = vld [vmem:[#allocation5 + $0x6f8] sm:$0xff] }
 0x179   : > { %v3157_v45 = vpack.c.bf16 %v389_v40, %v381_v39  ;;  %v461_v35 = vld [vmem:[#allocation5 + $0x6a8] sm:$0xff] }
 0x17a   : > { %3136 = vmatpush1.bf16.msra.mxu0 %v3135_v47  ;;  %v388_v47 = vld [vmem:[#allocation5 + $0x460] sm:$0xff]  ;;  %v469_v36 = vld [vmem:[#allocation5 + $0x6e8] sm:$0xff] }
 0x17b   : > { %3392 = vmatpush1.bf16.msra.mxu1 %v3391_v48  ;;  %3138 = vmatprep.subr.bf16.mxu0 %v3137_v49  ;;  %v382_v48 = vld [vmem:[#allocation5 + $0x430] sm:$0xff]  ;;  %v3413_v49 = vpack.c.bf16 %v391_v42, %v383_v41  ;;  %v3159_v55 = vpack.c.bf16 %v388_v47, %v380_v46  ;;  %v3177_v41 = vpack.c.bf16 %v469_v36, %v461_v35  ;;  %v460_v42 = vld [vmem:[#allocation5 + $0x6a0] sm:$0xff]  ;;  %v477_v47 = vld [vmem:[#allocation5 + $0x728] sm:$0xff] }
 0x17c   : > { %3394 = vmatprep.subr.bf16.mxu1 %v3393_v53  ;;  %v399_v53 = vld [vmem:[#allocation5 + $0x4b8] sm:$0xff]  ;;  %v3415_v56 = vpack.c.bf16 %v390_v50, %v382_v48  ;;  %v470_v46 = vld [vmem:[#allocation5 + $0x6f0] sm:$0xff]  ;;  %v485_v48 = vld [vmem:[#allocation5 + $0x768] sm:$0xff] }
 0x17d   : > { %v487_v50 = vld [vmem:[#allocation5 + $0x778] sm:$0xff] }
 0x17e   : > { %3140 = vmatpush1.bf16.msra.mxu0 %v3139_v59  ;;  %v404_v59 = vld [vmem:[#allocation5 + $0x4e0] sm:$0xff]  ;;  %v551_v35 = vld [vmem:[#allocation5 + $0x978] sm:$0xff] }
 0x17f   : > { %3396 = vmatpush1.bf16.msra.mxu1 %v3395_v60  ;;  %3142 = vmatprep.subr.bf16.mxu0 %v3141_v61  ;;  %v398_v60 = vld [vmem:[#allocation5 + $0x4b0] sm:$0xff]  ;;  %v3417_v61 = vpack.c.bf16 %v407_v54, %v399_v53  ;;  %v3163_v3 = vpack.c.bf16 %v404_v59, %v396_v58  ;;  %v3181_v53 = vpack.c.bf16 %v485_v48, %v477_v47  ;;  %v476_v54 = vld [vmem:[#allocation5 + $0x720] sm:$0xff]  ;;  %v493_v59 = vld [vmem:[#allocation5 + $0x7a8] sm:$0xff] }
 0x180   : > { %3398 = vmatprep.subr.bf16.mxu1 %v3397_v1  ;;  %v415_v1 = vld [vmem:[#allocation5 + $0x538] sm:$0xff]  ;;  %v3419_v4 = vpack.c.bf16 %v406_v62, %v398_v60  ;;  %v486_v58 = vld [vmem:[#allocation5 + $0x770] sm:$0xff]  ;;  %v501_v60 = vld [vmem:[#allocation5 + $0x7e8] sm:$0xff] }
 0x181   : > { %v503_v62 = vld [vmem:[#allocation5 + $0x7f8] sm:$0xff] }
 0x182   : > { %3144 = vmatpush1.bf16.msra.mxu0 %v3143_v7  ;;  %v420_v7 = vld [vmem:[#allocation5 + $0x560] sm:$0xff]  ;;  %v559_v47 = vld [vmem:[#allocation5 + $0x9b8] sm:$0xff] }
 0x183   : > { %3400 = vmatpush1.bf16.msra.mxu1 %v3399_v8  ;;  %3146 = vmatprep.subr.bf16.mxu0 %v3145_v9  ;;  %v414_v8 = vld [vmem:[#allocation5 + $0x530] sm:$0xff]  ;;  %v3421_v9 = vpack.c.bf16 %v423_v2, %v415_v1  ;;  %v3167_v15 = vpack.c.bf16 %v420_v7, %v412_v6  ;;  %v3185_v1 = vpack.c.bf16 %v501_v60, %v493_v59  ;;  %v492_v2 = vld [vmem:[#allocation5 + $0x7a0] sm:$0xff]  ;;  %v509_v7 = vld [vmem:[#allocation5 + $0x828] sm:$0xff] }
 0x184   : > { %3402 = vmatprep.subr.bf16.mxu1 %v3401_v13  ;;  %v431_v13 = vld [vmem:[#allocation5 + $0x5b8] sm:$0xff]  ;;  %v3423_v16 = vpack.c.bf16 %v422_v10, %v414_v8  ;;  %v502_v6 = vld [vmem:[#allocation5 + $0x7f0] sm:$0xff]  ;;  %v517_v8 = vld [vmem:[#allocation5 + $0x868] sm:$0xff] }
 0x185   : > { %v519_v10 = vld [vmem:[#allocation5 + $0x878] sm:$0xff] }
 0x186   : > { %3148 = vmatpush1.bf16.msra.mxu0 %v3147_v19  ;;  %v436_v19 = vld [vmem:[#allocation5 + $0x5e0] sm:$0xff]  ;;  %v567_v48 = vld [vmem:[#allocation5 + $0x9f8] sm:$0xff] }
 0x187   : > { %3404 = vmatpush1.bf16.msra.mxu1 %v3403_v20  ;;  %3150 = vmatprep.subr.bf16.mxu0 %v3149_v21  ;;  %v430_v20 = vld [vmem:[#allocation5 + $0x5b0] sm:$0xff]  ;;  %v3425_v21 = vpack.c.bf16 %v439_v14, %v431_v13  ;;  %v3171_v27 = vpack.c.bf16 %v436_v19, %v428_v18  ;;  %v3189_v13 = vpack.c.bf16 %v517_v8, %v509_v7  ;;  %v508_v14 = vld [vmem:[#allocation5 + $0x820] sm:$0xff]  ;;  %v525_v19 = vld [vmem:[#allocation5 + $0x8a8] sm:$0xff] }
 0x188   : > { %3406 = vmatprep.subr.bf16.mxu1 %v3405_v25  ;;  %v447_v25 = vld [vmem:[#allocation5 + $0x638] sm:$0xff]  ;;  %v3427_v28 = vpack.c.bf16 %v438_v22, %v430_v20  ;;  %v518_v18 = vld [vmem:[#allocation5 + $0x870] sm:$0xff]  ;;  %v533_v20 = vld [vmem:[#allocation5 + $0x8e8] sm:$0xff] }
 0x189   : > { %v535_v22 = vld [vmem:[#allocation5 + $0x8f8] sm:$0xff] }
 0x18a   : > { %3152 = vmatpush1.bf16.msra.mxu0 %v3151_v31  ;;  %v452_v31 = vld [vmem:[#allocation5 + $0x660] sm:$0xff]  ;;  %v575_v59 = vld [vmem:[#allocation5 + $0xa38] sm:$0xff] }
 0x18b   : > { %3408 = vmatpush1.bf16.msra.mxu1 %v3407_v32  ;;  %3154 = vmatprep.subr.bf16.mxu0 %v3153_v33  ;;  %v446_v32 = vld [vmem:[#allocation5 + $0x630] sm:$0xff]  ;;  %v3429_v33 = vpack.c.bf16 %v455_v26, %v447_v25  ;;  %v3175_v39 = vpack.c.bf16 %v452_v31, %v444_v30  ;;  %v3193_v25 = vpack.c.bf16 %v533_v20, %v525_v19  ;;  %v524_v26 = vld [vmem:[#allocation5 + $0x8a0] sm:$0xff]  ;;  %v541_v31 = vld [vmem:[#allocation5 + $0x928] sm:$0xff] }
 0x18c   : > { %3410 = vmatprep.subr.bf16.mxu1 %v3409_v37  ;;  %v463_v37 = vld [vmem:[#allocation5 + $0x6b8] sm:$0xff]  ;;  %v3431_v40 = vpack.c.bf16 %v454_v34, %v446_v32  ;;  %v534_v30 = vld [vmem:[#allocation5 + $0x8f0] sm:$0xff]  ;;  %v549_v32 = vld [vmem:[#allocation5 + $0x968] sm:$0xff] }
 0x18d   : > { %v543_v34 = vld [vmem:[#allocation5 + $0x938] sm:$0xff] }
 0x18e   : > { %3156 = vmatpush1.bf16.msra.mxu0 %v3155_v43  ;;  %v468_v43 = vld [vmem:[#allocation5 + $0x6e0] sm:$0xff]  ;;  %v583_v60 = vld [vmem:[#allocation5 + $0xa78] sm:$0xff] }
 0x18f   : > { %3412 = vmatpush1.bf16.msra.mxu1 %v3411_v44  ;;  %3158 = vmatprep.subr.bf16.mxu0 %v3157_v45  ;;  %v462_v44 = vld [vmem:[#allocation5 + $0x6b0] sm:$0xff]  ;;  %v3433_v45 = vpack.c.bf16 %v471_v38, %v463_v37  ;;  %v3179_v51 = vpack.c.bf16 %v468_v43, %v460_v42  ;;  %v3197_v38 = vpack.c.bf16 %v549_v32, %v541_v31  ;;  %v591_v7 = vld [vmem:[#allocation5 + $0xab8] sm:$0xff] }
 0x190   : > { %3414 = vmatprep.subr.bf16.mxu1 %v3413_v49  ;;  %v479_v49 = vld [vmem:[#allocation5 + $0x738] sm:$0xff]  ;;  %v3435_v52 = vpack.c.bf16 %v470_v46, %v462_v44  ;;  %v3453_v42 = vpack.c.bf16 %v551_v35, %v543_v34  ;;  %v550_v43 = vld [vmem:[#allocation5 + $0x970] sm:$0xff]  ;;  %v557_v44 = vld [vmem:[#allocation5 + $0x9a8] sm:$0xff] }
 0x191   : > { %v3758_v46 = vld [vmem:[%s4160_s28 + $0x18] sm:$0xff] }
 0x192   : > { %3160 = vmatpush1.bf16.msra.mxu0 %v3159_v55  ;;  %v484_v55 = vld [vmem:[#allocation5 + $0x760] sm:$0xff]  ;;  %v599_v8 = vld [vmem:[#allocation5 + $0xaf8] sm:$0xff] }
 0x193   : > { %3416 = vmatpush1.bf16.msra.mxu1 %v3415_v56  ;;  %3162 = vmatprep.subr.bf16.mxu0 %v3161_v57  ;;  %v478_v56 = vld [vmem:[#allocation5 + $0x730] sm:$0xff]  ;;  %v3437_v57 = vpack.c.bf16 %v487_v50, %v479_v49  ;;  %v3183_v63 = vpack.c.bf16 %v484_v55, %v476_v54  ;;  %v3457_v55 = vpack.c.bf16 %v567_v48, %v559_v47  ;;  %v607_v19 = vld [vmem:[#allocation5 + $0xb38] sm:$0xff]  ;;  %v636_v48 = vld [vmem:[#allocation5 + $0xc20] sm:$0xff] }
 0x194   : > { %3418 = vmatprep.subr.bf16.mxu1 %v3417_v61  ;;  %v495_v61 = vld [vmem:[#allocation5 + $0x7b8] sm:$0xff]  ;;  %v3439_v0 = vpack.c.bf16 %v486_v58, %v478_v56  ;;  %v558_v54 = vld [vmem:[#allocation5 + $0x9b0] sm:$0xff]  ;;  %v581_v58 = vld [vmem:[#allocation5 + $0xa68] sm:$0xff] }
 0x195   : > { %v566_v56 = vld [vmem:[#allocation5 + $0x9f0] sm:$0xff]  ;;  %v615_v20 = vld [vmem:[#allocation5 + $0xb78] sm:$0xff] }
 0x196   : > { %3164 = vmatpush1.bf16.msra.mxu0 %v3163_v3  ;;  %v500_v3 = vld [vmem:[#allocation5 + $0x7e0] sm:$0xff]  ;;  %v623_v31 = vld [vmem:[#allocation5 + $0xbb8] sm:$0xff] }
 0x197   : > { %3420 = vmatpush1.bf16.msra.mxu1 %v3419_v4  ;;  %3166 = vmatprep.subr.bf16.mxu0 %v3165_v5  ;;  %v494_v4 = vld [vmem:[#allocation5 + $0x7b0] sm:$0xff]  ;;  %v3441_v5 = vpack.c.bf16 %v503_v62, %v495_v61  ;;  %v3187_v11 = vpack.c.bf16 %v500_v3, %v492_v2  ;;  %v3459_v62 = vpack.c.bf16 %v566_v56, %v558_v54  ;;  %v631_v32 = vld [vmem:[#allocation5 + $0xbf8] sm:$0xff]  ;;  %v661_v54 = vld [vmem:[#allocation5 + $0xce8] sm:$0xff] }
 0x198   : > { %3422 = vmatprep.subr.bf16.mxu1 %v3421_v9  ;;  %v511_v9 = vld [vmem:[#allocation5 + $0x838] sm:$0xff]  ;;  %v3443_v12 = vpack.c.bf16 %v502_v6, %v494_v4  ;;  %v574_v2 = vld [vmem:[#allocation5 + $0xa30] sm:$0xff]  ;;  %v3461_v3 = vpack.c.bf16 %v583_v60, %v575_v59  ;;  %v597_v6 = vld [vmem:[#allocation5 + $0xae8] sm:$0xff] }
 0x199   : > { %v582_v4 = vld [vmem:[#allocation5 + $0xa70] sm:$0xff]  ;;  %v663_v56 = vld [vmem:[#allocation5 + $0xcf8] sm:$0xff]  ;;  %v652_v60 = vld [vmem:[#allocation5 + $0xca0] sm:$0xff] }
 0x19a   : > { %3168 = vmatpush1.bf16.msra.mxu0 %v3167_v15  ;;  %v516_v15 = vld [vmem:[#allocation5 + $0x860] sm:$0xff] }
 0x19b   : > { %3424 = vmatpush1.bf16.msra.mxu1 %v3423_v16  ;;  %3170 = vmatprep.subr.bf16.mxu0 %v3169_v17  ;;  %v510_v16 = vld [vmem:[#allocation5 + $0x830] sm:$0xff]  ;;  %v3445_v17 = vpack.c.bf16 %v519_v10, %v511_v9  ;;  %v3191_v23 = vpack.c.bf16 %v516_v15, %v508_v14  ;;  %v3463_v10 = vpack.c.bf16 %v582_v4, %v574_v2  ;;  %v677_v2 = vld [vmem:[#allocation5 + $0xd68] sm:$0xff]  ;;  %v679_v4 = vld [vmem:[#allocation5 + $0xd78] sm:$0xff] }
 0x19c   : > { %3426 = vmatprep.subr.bf16.mxu1 %v3425_v21  ;;  %v527_v21 = vld [vmem:[#allocation5 + $0x8b8] sm:$0xff]  ;;  %v3447_v24 = vpack.c.bf16 %v518_v18, %v510_v16  ;;  %v590_v14 = vld [vmem:[#allocation5 + $0xab0] sm:$0xff]  ;;  %v3465_v15 = vpack.c.bf16 %v599_v8, %v591_v7  ;;  %v613_v18 = vld [vmem:[#allocation5 + $0xb68] sm:$0xff] }
 0x19d   : > { %v598_v16 = vld [vmem:[#allocation5 + $0xaf0] sm:$0xff]  ;;  %v668_v8 = vld [vmem:[#allocation5 + $0xd20] sm:$0xff] }
 0x19e   : > { %3172 = vmatpush1.bf16.msra.mxu0 %v3171_v27  ;;  %v532_v27 = vld [vmem:[#allocation5 + $0x8e0] sm:$0xff] }
 0x19f   : > { %3428 = vmatpush1.bf16.msra.mxu1 %v3427_v28  ;;  %3174 = vmatprep.subr.bf16.mxu0 %v3173_v29  ;;  %v526_v28 = vld [vmem:[#allocation5 + $0x8b0] sm:$0xff]  ;;  %v3449_v29 = vpack.c.bf16 %v535_v22, %v527_v21  ;;  %v3195_v36 = vpack.c.bf16 %v532_v27, %v524_v26  ;;  %v3467_v22 = vpack.c.bf16 %v598_v16, %v590_v14  ;;  %v693_v14 = vld [vmem:[#allocation5 + $0xde8] sm:$0xff]  ;;  %v695_v16 = vld [vmem:[#allocation5 + $0xdf8] sm:$0xff] }
 0x1a0   : > { %3430 = vmatprep.subr.bf16.mxu1 %v3429_v33  ;;  %v3757_v33 = vld [vmem:[%s4160_s28] sm:$0xff]  ;;  %v3451_v37 = vpack.c.bf16 %v534_v30, %v526_v28  ;;  %v606_v26 = vld [vmem:[#allocation5 + $0xb30] sm:$0xff]  ;;  %v3469_v27 = vpack.c.bf16 %v615_v20, %v607_v19  ;;  %v629_v30 = vld [vmem:[#allocation5 + $0xbe8] sm:$0xff] }
 0x1a1   : > { %v614_v28 = vld [vmem:[#allocation5 + $0xb70] sm:$0xff]  ;;  %v684_v20 = vld [vmem:[#allocation5 + $0xda0] sm:$0xff] }
 0x1a2   : > { %3176 = vmatpush1.bf16.msra.mxu0 %v3175_v39  ;;  %v540_v39 = vld [vmem:[#allocation5 + $0x920] sm:$0xff]  ;;  %v3471_v34 = vpack.c.bf16 %v614_v28, %v606_v26  ;;  %v709_v26 = vld [vmem:[#allocation5 + $0xe68] sm:$0xff]  ;;  %v711_v28 = vld [vmem:[#allocation5 + $0xe78] sm:$0xff] }
 0x1a3   : > { %3432 = vmatpush1.bf16.msra.mxu1 %v3431_v40  ;;  %3178 = vmatprep.subr.bf16.mxu0 %v3177_v41  ;;  %v548_v40 = vld [vmem:[#allocation5 + $0x960] sm:$0xff]  ;;  %v542_v41 = vld [vmem:[#allocation5 + $0x930] sm:$0xff] }
 0x1a4   : > { %3434 = vmatprep.subr.bf16.mxu1 %v3433_v45  ;;  %v565_v45 = vld [vmem:[#allocation5 + $0x9e8] sm:$0xff]  ;;  %v3199_v49 = vpack.c.bf16 %v548_v40, %v540_v39  ;;  %v3455_v50 = vpack.c.bf16 %v550_v43, %v542_v41  ;;  %v3473_v39 = vpack.c.bf16 %v631_v32, %v623_v31  ;;  %v630_v40 = vld [vmem:[#allocation5 + $0xbf0] sm:$0xff]  ;;  %v639_v43 = vld [vmem:[#allocation5 + $0xc38] sm:$0xff] }
 0x1a5   : > { %v637_v41 = vld [vmem:[#allocation5 + $0xc28] sm:$0xff]  ;;  %v700_v32 = vld [vmem:[#allocation5 + $0xe20] sm:$0xff] }
 0x1a6   : > { %3180 = vmatpush1.bf16.msra.mxu0 %v3179_v51  ;;  %v3201_v51 = vpack.c.bf16 %v565_v45, %v557_v44  ;;  %v647_v44 = vld [vmem:[#allocation5 + $0xc78] sm:$0xff] }
 0x1a7   : > { %3436 = vmatpush1.bf16.msra.mxu1 %v3435_v52  ;;  %3182 = vmatprep.subr.bf16.mxu0 %v3181_v53  ;;  %v556_v52 = vld [vmem:[#allocation5 + $0x9a0] sm:$0xff] }
 0x1a8   : > { %3438 = vmatprep.subr.bf16.mxu1 %v3437_v57  ;;  %v564_v53 = vld [vmem:[#allocation5 + $0x9e0] sm:$0xff]  ;;  %v573_v57 = vld [vmem:[#allocation5 + $0xa28] sm:$0xff] }
 0x1a9   : > { %v3203_v61 = vpack.c.bf16 %v564_v53, %v556_v52  ;;  %v646_v52 = vld [vmem:[#allocation5 + $0xc70] sm:$0xff]  ;;  %v653_v53 = vld [vmem:[#allocation5 + $0xca8] sm:$0xff] }
 0x1aa   : > { %3184 = vmatpush1.bf16.msra.mxu0 %v3183_v63  ;;  %v3205_v63 = vpack.c.bf16 %v581_v58, %v573_v57  ;;  %v3225_v59 = vpack.c.bf16 %v661_v54, %v653_v53 }
 0x1ab   : > { %3440 = vmatpush1.bf16.msra.mxu1 %v3439_v0  ;;  %3186 = vmatprep.subr.bf16.mxu0 %v3185_v1  ;;  %v572_v0 = vld [vmem:[#allocation5 + $0xa20] sm:$0xff] }
 0x1ac   : > { %3442 = vmatprep.subr.bf16.mxu1 %v3441_v5  ;;  %v580_v1 = vld [vmem:[#allocation5 + $0xa60] sm:$0xff]  ;;  %v589_v5 = vld [vmem:[#allocation5 + $0xaa8] sm:$0xff] }
 0x1ad   : > { %v3207_v9 = vpack.c.bf16 %v580_v1, %v572_v0  ;;  %v662_v0 = vld [vmem:[#allocation5 + $0xcf0] sm:$0xff]  ;;  %v669_v1 = vld [vmem:[#allocation5 + $0xd28] sm:$0xff] }
 0x1ae   : > { %3188 = vmatpush1.bf16.msra.mxu0 %v3187_v11  ;;  %v3209_v11 = vpack.c.bf16 %v597_v6, %v589_v5  ;;  %v3229_v7 = vpack.c.bf16 %v677_v2, %v669_v1 }
 0x1af   : > { %3444 = vmatpush1.bf16.msra.mxu1 %v3443_v12  ;;  %3190 = vmatprep.subr.bf16.mxu0 %v3189_v13  ;;  %v588_v12 = vld [vmem:[#allocation5 + $0xaa0] sm:$0xff] }
 0x1b0   : > { %3446 = vmatprep.subr.bf16.mxu1 %v3445_v17  ;;  %v596_v13 = vld [vmem:[#allocation5 + $0xae0] sm:$0xff]  ;;  %v605_v17 = vld [vmem:[#allocation5 + $0xb28] sm:$0xff] }
 0x1b1   : > { %1947 = vmatmul.mubr.f32.vlgmr.msra.gmra.mrb[2].mxu0 %v3757_v33  ;;  %v3211_v21 = vpack.c.bf16 %v596_v13, %v588_v12  ;;  %v678_v12 = vld [vmem:[#allocation5 + $0xd70] sm:$0xff]  ;;  %v685_v13 = vld [vmem:[#allocation5 + $0xda8] sm:$0xff] }
 0x1b2   : > { %3192 = vmatpush1.bf16.msra.mxu0 %v3191_v23  ;;  %2231 = vmatmul.mubr.f32.vlgmr.msra.gmra.mrb[2].mxu1 %v3757_v33  ;;  %v3213_v23 = vpack.c.bf16 %v613_v18, %v605_v17  ;;  %v3233_v19 = vpack.c.bf16 %v693_v14, %v685_v13 }
 0x1b3   : > { %3448 = vmatpush1.bf16.msra.mxu1 %v3447_v24  ;;  %3194 = vmatprep.subr.bf16.mxu0 %v3193_v25  ;;  %v604_v24 = vld [vmem:[#allocation5 + $0xb20] sm:$0xff] }
 0x1b4   : > { %3450 = vmatprep.subr.bf16.mxu1 %v3449_v29  ;;  %2017 = vmatprep.mubr.f32.mxu0 %v3758_v46  ;;  %v612_v25 = vld [vmem:[#allocation5 + $0xb60] sm:$0xff]  ;;  %v621_v29 = vld [vmem:[#allocation5 + $0xba8] sm:$0xff] }
 0x1b5   : > { %2301 = vmatprep.mubr.f32.mxu1 %v3758_v46  ;;  %v3215_v33 = vpack.c.bf16 %v612_v25, %v604_v24  ;;  %v3217_v35 = vpack.c.bf16 %v629_v30, %v621_v29  ;;  %v694_v24 = vld [vmem:[#allocation5 + $0xdf0] sm:$0xff]  ;;  %v701_v25 = vld [vmem:[#allocation5 + $0xe28] sm:$0xff] }
 0x1b6   : > { %3196 = vmatpush1.bf16.msra.mxu0 %v3195_v36  ;;  %v620_v36 = vld [vmem:[#allocation5 + $0xba0] sm:$0xff]  ;;  %v3237_v31 = vpack.c.bf16 %v709_v26, %v701_v25 }
 0x1b7   : > { %3452 = vmatpush1.bf16.msra.mxu1 %v3451_v37  ;;  %3198 = vmatprep.subr.bf16.mxu0 %v3197_v38  ;;  %v628_v37 = vld [vmem:[#allocation5 + $0xbe0] sm:$0xff]  ;;  %v622_v38 = vld [vmem:[#allocation5 + $0xbb0] sm:$0xff] }
 0x1b8   : > { %3454 = vmatprep.subr.bf16.mxu1 %v3453_v42  ;;  %v645_v42 = vld [vmem:[#allocation5 + $0xc68] sm:$0xff]  ;;  %v3219_v45 = vpack.c.bf16 %v628_v37, %v620_v36  ;;  %v3475_v46 = vpack.c.bf16 %v630_v40, %v622_v38  ;;  %v710_v36 = vld [vmem:[#allocation5 + $0xe70] sm:$0xff]  ;;  %v727_v40 = vld [vmem:[#allocation5 + $0xef8] sm:$0xff] }
 0x1b9   : > { %v3221_v47 = vpack.c.bf16 %v645_v42, %v637_v41  ;;  %v717_v37 = vld [vmem:[#allocation5 + $0xea8] sm:$0xff] }
 0x1ba   : > { %3200 = vmatpush1.bf16.msra.mxu0 %v3199_v49  ;;  %v644_v49 = vld [vmem:[#allocation5 + $0xc60] sm:$0xff]  ;;  %v725_v38 = vld [vmem:[#allocation5 + $0xee8] sm:$0xff] }
 0x1bb   : > { %3456 = vmatpush1.bf16.msra.mxu1 %v3455_v50  ;;  %3202 = vmatprep.subr.bf16.mxu0 %v3201_v51  ;;  %v638_v50 = vld [vmem:[#allocation5 + $0xc30] sm:$0xff]  ;;  %v3477_v51 = vpack.c.bf16 %v647_v44, %v639_v43  ;;  %v3223_v57 = vpack.c.bf16 %v644_v49, %v636_v48  ;;  %v3241_v43 = vpack.c.bf16 %v725_v38, %v717_v37  ;;  %v716_v44 = vld [vmem:[#allocation5 + $0xea0] sm:$0xff]  ;;  %v733_v49 = vld [vmem:[#allocation5 + $0xf28] sm:$0xff] }
 0x1bc   : > { %3458 = vmatprep.subr.bf16.mxu1 %v3457_v55  ;;  %v655_v55 = vld [vmem:[#allocation5 + $0xcb8] sm:$0xff]  ;;  %v3479_v58 = vpack.c.bf16 %v646_v52, %v638_v50  ;;  %v726_v48 = vld [vmem:[#allocation5 + $0xef0] sm:$0xff]  ;;  %v741_v50 = vld [vmem:[#allocation5 + $0xf68] sm:$0xff] }
 0x1bd   : > { %v743_v52 = vld [vmem:[#allocation5 + $0xf78] sm:$0xff] }
 0x1be   : > { %3204 = vmatpush1.bf16.msra.mxu0 %v3203_v61  ;;  %v660_v61 = vld [vmem:[#allocation5 + $0xce0] sm:$0xff]  ;;  %v807_v37 = vld [vmem:[#allocation5 + $0x1178] sm:$0xff] }
 0x1bf   : > { %3460 = vmatpush1.bf16.msra.mxu1 %v3459_v62  ;;  %3206 = vmatprep.subr.bf16.mxu0 %v3205_v63  ;;  %v654_v62 = vld [vmem:[#allocation5 + $0xcb0] sm:$0xff]  ;;  %v3481_v63 = vpack.c.bf16 %v663_v56, %v655_v55  ;;  %v3227_v5 = vpack.c.bf16 %v660_v61, %v652_v60  ;;  %v3245_v55 = vpack.c.bf16 %v741_v50, %v733_v49  ;;  %v732_v56 = vld [vmem:[#allocation5 + $0xf20] sm:$0xff]  ;;  %v749_v61 = vld [vmem:[#allocation5 + $0xfa8] sm:$0xff] }
 0x1c0   : > { %3462 = vmatprep.subr.bf16.mxu1 %v3461_v3  ;;  %v671_v3 = vld [vmem:[#allocation5 + $0xd38] sm:$0xff]  ;;  %v3483_v6 = vpack.c.bf16 %v662_v0, %v654_v62  ;;  %v742_v60 = vld [vmem:[#allocation5 + $0xf70] sm:$0xff]  ;;  %v757_v62 = vld [vmem:[#allocation5 + $0xfe8] sm:$0xff] }
 0x1c1   : > { %v759_v0 = vld [vmem:[#allocation5 + $0xff8] sm:$0xff] }
 0x1c2   : > { %3208 = vmatpush1.bf16.msra.mxu0 %v3207_v9  ;;  %v676_v9 = vld [vmem:[#allocation5 + $0xd60] sm:$0xff]  ;;  %v815_v49 = vld [vmem:[#allocation5 + $0x11b8] sm:$0xff] }
 0x1c3   : > { %3464 = vmatpush1.bf16.msra.mxu1 %v3463_v10  ;;  %3210 = vmatprep.subr.bf16.mxu0 %v3209_v11  ;;  %v670_v10 = vld [vmem:[#allocation5 + $0xd30] sm:$0xff]  ;;  %v3485_v11 = vpack.c.bf16 %v679_v4, %v671_v3  ;;  %v3231_v17 = vpack.c.bf16 %v676_v9, %v668_v8  ;;  %v3249_v3 = vpack.c.bf16 %v757_v62, %v749_v61  ;;  %v748_v4 = vld [vmem:[#allocation5 + $0xfa0] sm:$0xff]  ;;  %v765_v9 = vld [vmem:[#allocation5 + $0x1028] sm:$0xff] }
 0x1c4   : > { %3466 = vmatprep.subr.bf16.mxu1 %v3465_v15  ;;  %v687_v15 = vld [vmem:[#allocation5 + $0xdb8] sm:$0xff]  ;;  %v3487_v18 = vpack.c.bf16 %v678_v12, %v670_v10  ;;  %v758_v8 = vld [vmem:[#allocation5 + $0xff0] sm:$0xff]  ;;  %v773_v10 = vld [vmem:[#allocation5 + $0x1068] sm:$0xff] }
 0x1c5   : > { %v775_v12 = vld [vmem:[#allocation5 + $0x1078] sm:$0xff] }
 0x1c6   : > { %3212 = vmatpush1.bf16.msra.mxu0 %v3211_v21  ;;  %v692_v21 = vld [vmem:[#allocation5 + $0xde0] sm:$0xff]  ;;  %v823_v50 = vld [vmem:[#allocation5 + $0x11f8] sm:$0xff] }
 0x1c7   : > { %3468 = vmatpush1.bf16.msra.mxu1 %v3467_v22  ;;  %3214 = vmatprep.subr.bf16.mxu0 %v3213_v23  ;;  %v686_v22 = vld [vmem:[#allocation5 + $0xdb0] sm:$0xff]  ;;  %v3489_v23 = vpack.c.bf16 %v695_v16, %v687_v15  ;;  %v3235_v29 = vpack.c.bf16 %v692_v21, %v684_v20  ;;  %v3253_v15 = vpack.c.bf16 %v773_v10, %v765_v9  ;;  %v764_v16 = vld [vmem:[#allocation5 + $0x1020] sm:$0xff]  ;;  %v781_v21 = vld [vmem:[#allocation5 + $0x10a8] sm:$0xff] }
 0x1c8   : > { %3470 = vmatprep.subr.bf16.mxu1 %v3469_v27  ;;  %v703_v27 = vld [vmem:[#allocation5 + $0xe38] sm:$0xff]  ;;  %v3491_v30 = vpack.c.bf16 %v694_v24, %v686_v22  ;;  %v774_v20 = vld [vmem:[#allocation5 + $0x1070] sm:$0xff]  ;;  %v789_v22 = vld [vmem:[#allocation5 + $0x10e8] sm:$0xff] }
 0x1c9   : > { %v791_v24 = vld [vmem:[#allocation5 + $0x10f8] sm:$0xff] }
 0x1ca   : > { %3216 = vmatpush1.bf16.msra.mxu0 %v3215_v33  ;;  %v708_v33 = vld [vmem:[#allocation5 + $0xe60] sm:$0xff]  ;;  %v831_v61 = vld [vmem:[#allocation5 + $0x1238] sm:$0xff] }
 0x1cb   : > { %3472 = vmatpush1.bf16.msra.mxu1 %v3471_v34  ;;  %3218 = vmatprep.subr.bf16.mxu0 %v3217_v35  ;;  %v702_v34 = vld [vmem:[#allocation5 + $0xe30] sm:$0xff]  ;;  %v3493_v35 = vpack.c.bf16 %v711_v28, %v703_v27  ;;  %v3239_v41 = vpack.c.bf16 %v708_v33, %v700_v32  ;;  %v3257_v27 = vpack.c.bf16 %v789_v22, %v781_v21  ;;  %v780_v28 = vld [vmem:[#allocation5 + $0x10a0] sm:$0xff]  ;;  %v797_v33 = vld [vmem:[#allocation5 + $0x1128] sm:$0xff] }
 0x1cc   : > { %3474 = vmatprep.subr.bf16.mxu1 %v3473_v39  ;;  %v719_v39 = vld [vmem:[#allocation5 + $0xeb8] sm:$0xff]  ;;  %v3495_v42 = vpack.c.bf16 %v710_v36, %v702_v34  ;;  %v790_v32 = vld [vmem:[#allocation5 + $0x10f0] sm:$0xff]  ;;  %v805_v34 = vld [vmem:[#allocation5 + $0x1168] sm:$0xff] }
 0x1cd   : > { %v799_v36 = vld [vmem:[#allocation5 + $0x1138] sm:$0xff] }
 0x1ce   : > { %3220 = vmatpush1.bf16.msra.mxu0 %v3219_v45  ;;  %v724_v45 = vld [vmem:[#allocation5 + $0xee0] sm:$0xff]  ;;  %v839_v62 = vld [vmem:[#allocation5 + $0x1278] sm:$0xff] }
 0x1cf   : > { %3476 = vmatpush1.bf16.msra.mxu1 %v3475_v46  ;;  %3222 = vmatprep.subr.bf16.mxu0 %v3221_v47  ;;  %v718_v46 = vld [vmem:[#allocation5 + $0xeb0] sm:$0xff]  ;;  %v3497_v47 = vpack.c.bf16 %v727_v40, %v719_v39  ;;  %v3243_v53 = vpack.c.bf16 %v724_v45, %v716_v44  ;;  %v3261_v40 = vpack.c.bf16 %v805_v34, %v797_v33  ;;  %v847_v9 = vld [vmem:[#allocation5 + $0x12b8] sm:$0xff] }
 0x1d0   : > { %3478 = vmatprep.subr.bf16.mxu1 %v3477_v51  ;;  %v735_v51 = vld [vmem:[#allocation5 + $0xf38] sm:$0xff]  ;;  %v3499_v54 = vpack.c.bf16 %v726_v48, %v718_v46  ;;  %v3517_v44 = vpack.c.bf16 %v807_v37, %v799_v36  ;;  %v806_v45 = vld [vmem:[#allocation5 + $0x1170] sm:$0xff]  ;;  %v813_v46 = vld [vmem:[#allocation5 + $0x11a8] sm:$0xff] }
 0x1d1   : > { %v3760_v48 = vld [vmem:[%s4160_s28 + $0x28] sm:$0xff]  ;;  %v855_v10 = vld [vmem:[#allocation5 + $0x12f8] sm:$0xff] }
 0x1d2   : > { %3224 = vmatpush1.bf16.msra.mxu0 %v3223_v57  ;;  %v740_v57 = vld [vmem:[#allocation5 + $0xf60] sm:$0xff]  ;;  %v863_v21 = vld [vmem:[#allocation5 + $0x1338] sm:$0xff] }
 0x1d3   : > { %3480 = vmatpush1.bf16.msra.mxu1 %v3479_v58  ;;  %3226 = vmatprep.subr.bf16.mxu0 %v3225_v59  ;;  %v734_v58 = vld [vmem:[#allocation5 + $0xf30] sm:$0xff]  ;;  %v3501_v59 = vpack.c.bf16 %v743_v52, %v735_v51  ;;  %v3247_v1 = vpack.c.bf16 %v740_v57, %v732_v56  ;;  %v3521_v57 = vpack.c.bf16 %v823_v50, %v815_v49  ;;  %v871_v22 = vld [vmem:[#allocation5 + $0x1378] sm:$0xff]  ;;  %v892_v50 = vld [vmem:[#allocation5 + $0x1420] sm:$0xff] }
 0x1d4   : > { %3482 = vmatprep.subr.bf16.mxu1 %v3481_v63  ;;  %v751_v63 = vld [vmem:[#allocation5 + $0xfb8] sm:$0xff]  ;;  %v3503_v2 = vpack.c.bf16 %v742_v60, %v734_v58  ;;  %v814_v56 = vld [vmem:[#allocation5 + $0x11b0] sm:$0xff]  ;;  %v837_v60 = vld [vmem:[#allocation5 + $0x1268] sm:$0xff] }
 0x1d5   : > { %v822_v58 = vld [vmem:[#allocation5 + $0x11f0] sm:$0xff]  ;;  %v879_v33 = vld [vmem:[#allocation5 + $0x13b8] sm:$0xff] }
 0x1d6   : > { %3228 = vmatpush1.bf16.msra.mxu0 %v3227_v5  ;;  %v756_v5 = vld [vmem:[#allocation5 + $0xfe0] sm:$0xff]  ;;  %v887_v34 = vld [vmem:[#allocation5 + $0x13f8] sm:$0xff] }
 0x1d7   : > { %3484 = vmatpush1.bf16.msra.mxu1 %v3483_v6  ;;  %3230 = vmatprep.subr.bf16.mxu0 %v3229_v7  ;;  %v750_v6 = vld [vmem:[#allocation5 + $0xfb0] sm:$0xff]  ;;  %v3505_v7 = vpack.c.bf16 %v759_v0, %v751_v63  ;;  %v3251_v13 = vpack.c.bf16 %v756_v5, %v748_v4  ;;  %v3523_v0 = vpack.c.bf16 %v822_v58, %v814_v56  ;;  %v917_v56 = vld [vmem:[#allocation5 + $0x14e8] sm:$0xff]  ;;  %v919_v58 = vld [vmem:[#allocation5 + $0x14f8] sm:$0xff] }
 0x1d8   : > { %3486 = vmatprep.subr.bf16.mxu1 %v3485_v11  ;;  %v767_v11 = vld [vmem:[#allocation5 + $0x1038] sm:$0xff]  ;;  %v3507_v14 = vpack.c.bf16 %v758_v8, %v750_v6  ;;  %v830_v4 = vld [vmem:[#allocation5 + $0x1230] sm:$0xff]  ;;  %v3525_v5 = vpack.c.bf16 %v839_v62, %v831_v61  ;;  %v853_v8 = vld [vmem:[#allocation5 + $0x12e8] sm:$0xff] }
 0x1d9   : > { %v838_v6 = vld [vmem:[#allocation5 + $0x1270] sm:$0xff]  ;;  %v908_v62 = vld [vmem:[#allocation5 + $0x14a0] sm:$0xff] }
 0x1da   : > { %3232 = vmatpush1.bf16.msra.mxu0 %v3231_v17  ;;  %v772_v17 = vld [vmem:[#allocation5 + $0x1060] sm:$0xff] }
 0x1db   : > { %3488 = vmatpush1.bf16.msra.mxu1 %v3487_v18  ;;  %3234 = vmatprep.subr.bf16.mxu0 %v3233_v19  ;;  %v766_v18 = vld [vmem:[#allocation5 + $0x1030] sm:$0xff]  ;;  %v3509_v19 = vpack.c.bf16 %v775_v12, %v767_v11  ;;  %v3255_v25 = vpack.c.bf16 %v772_v17, %v764_v16  ;;  %v3527_v12 = vpack.c.bf16 %v838_v6, %v830_v4  ;;  %v933_v4 = vld [vmem:[#allocation5 + $0x1568] sm:$0xff]  ;;  %v935_v6 = vld [vmem:[#allocation5 + $0x1578] sm:$0xff] }
 0x1dc   : > { %3490 = vmatprep.subr.bf16.mxu1 %v3489_v23  ;;  %v783_v23 = vld [vmem:[#allocation5 + $0x10b8] sm:$0xff]  ;;  %v3511_v26 = vpack.c.bf16 %v774_v20, %v766_v18  ;;  %v846_v16 = vld [vmem:[#allocation5 + $0x12b0] sm:$0xff]  ;;  %v3529_v17 = vpack.c.bf16 %v855_v10, %v847_v9  ;;  %v869_v20 = vld [vmem:[#allocation5 + $0x1368] sm:$0xff] }
 0x1dd   : > { %v854_v18 = vld [vmem:[#allocation5 + $0x12f0] sm:$0xff]  ;;  %v924_v10 = vld [vmem:[#allocation5 + $0x1520] sm:$0xff] }
 0x1de   : > { %3236 = vmatpush1.bf16.msra.mxu0 %v3235_v29  ;;  %v788_v29 = vld [vmem:[#allocation5 + $0x10e0] sm:$0xff] }
 0x1df   : > { %3492 = vmatpush1.bf16.msra.mxu1 %v3491_v30  ;;  %3238 = vmatprep.subr.bf16.mxu0 %v3237_v31  ;;  %v782_v30 = vld [vmem:[#allocation5 + $0x10b0] sm:$0xff]  ;;  %v3513_v31 = vpack.c.bf16 %v791_v24, %v783_v23  ;;  %v3259_v38 = vpack.c.bf16 %v788_v29, %v780_v28  ;;  %v3531_v24 = vpack.c.bf16 %v854_v18, %v846_v16  ;;  %v949_v16 = vld [vmem:[#allocation5 + $0x15e8] sm:$0xff]  ;;  %v951_v18 = vld [vmem:[#allocation5 + $0x15f8] sm:$0xff] }
 0x1e0   : > { %3494 = vmatprep.subr.bf16.mxu1 %v3493_v35  ;;  %v3759_v35 = vld [vmem:[%s4160_s28 + $0x10] sm:$0xff]  ;;  %v3515_v39 = vpack.c.bf16 %v790_v32, %v782_v30  ;;  %v3533_v29 = vpack.c.bf16 %v871_v22, %v863_v21  ;;  %v885_v32 = vld [vmem:[#allocation5 + $0x13e8] sm:$0xff]  ;;  %v940_v22 = vld [vmem:[#allocation5 + $0x15a0] sm:$0xff] }
 0x1e1   : > { %v862_v28 = vld [vmem:[#allocation5 + $0x1330] sm:$0xff] }
 0x1e2   : > { %3240 = vmatpush1.bf16.msra.mxu0 %v3239_v41  ;;  %v796_v41 = vld [vmem:[#allocation5 + $0x1120] sm:$0xff]  ;;  %v870_v30 = vld [vmem:[#allocation5 + $0x1370] sm:$0xff] }
 0x1e3   : > { %3496 = vmatpush1.bf16.msra.mxu1 %v3495_v42  ;;  %3242 = vmatprep.subr.bf16.mxu0 %v3241_v43  ;;  %v804_v42 = vld [vmem:[#allocation5 + $0x1160] sm:$0xff]  ;;  %v798_v43 = vld [vmem:[#allocation5 + $0x1130] sm:$0xff]  ;;  %v3535_v36 = vpack.c.bf16 %v870_v30, %v862_v28  ;;  %v965_v28 = vld [vmem:[#allocation5 + $0x1668] sm:$0xff] }
 0x1e4   : > { %3498 = vmatprep.subr.bf16.mxu1 %v3497_v47  ;;  %v821_v47 = vld [vmem:[#allocation5 + $0x11e8] sm:$0xff]  ;;  %v3263_v51 = vpack.c.bf16 %v804_v42, %v796_v41  ;;  %v3519_v52 = vpack.c.bf16 %v806_v45, %v798_v43  ;;  %v3537_v41 = vpack.c.bf16 %v887_v34, %v879_v33  ;;  %v886_v42 = vld [vmem:[#allocation5 + $0x13f0] sm:$0xff]  ;;  %v895_v45 = vld [vmem:[#allocation5 + $0x1438] sm:$0xff] }
 0x1e5   : > { %v893_v43 = vld [vmem:[#allocation5 + $0x1428] sm:$0xff]  ;;  %v967_v30 = vld [vmem:[#allocation5 + $0x1678] sm:$0xff]  ;;  %v956_v34 = vld [vmem:[#allocation5 + $0x1620] sm:$0xff] }
 0x1e6   : > { %3244 = vmatpush1.bf16.msra.mxu0 %v3243_v53  ;;  %v3265_v53 = vpack.c.bf16 %v821_v47, %v813_v46  ;;  %v903_v46 = vld [vmem:[#allocation5 + $0x1478] sm:$0xff] }
 0x1e7   : > { %3500 = vmatpush1.bf16.msra.mxu1 %v3499_v54  ;;  %3246 = vmatprep.subr.bf16.mxu0 %v3245_v55  ;;  %v812_v54 = vld [vmem:[#allocation5 + $0x11a0] sm:$0xff] }
 0x1e8   : > { %3502 = vmatprep.subr.bf16.mxu1 %v3501_v59  ;;  %v820_v55 = vld [vmem:[#allocation5 + $0x11e0] sm:$0xff]  ;;  %v829_v59 = vld [vmem:[#allocation5 + $0x1228] sm:$0xff] }
 0x1e9   : > { %v3267_v63 = vpack.c.bf16 %v820_v55, %v812_v54  ;;  %v902_v54 = vld [vmem:[#allocation5 + $0x1470] sm:$0xff]  ;;  %v909_v55 = vld [vmem:[#allocation5 + $0x14a8] sm:$0xff] }
 0x1ea   : > { %3248 = vmatpush1.bf16.msra.mxu0 %v3247_v1  ;;  %v3269_v1 = vpack.c.bf16 %v837_v60, %v829_v59  ;;  %v3289_v61 = vpack.c.bf16 %v917_v56, %v909_v55 }
 0x1eb   : > { %3504 = vmatpush1.bf16.msra.mxu1 %v3503_v2  ;;  %3250 = vmatprep.subr.bf16.mxu0 %v3249_v3  ;;  %v828_v2 = vld [vmem:[#allocation5 + $0x1220] sm:$0xff] }
 0x1ec   : > { %3506 = vmatprep.subr.bf16.mxu1 %v3505_v7  ;;  %v836_v3 = vld [vmem:[#allocation5 + $0x1260] sm:$0xff]  ;;  %v845_v7 = vld [vmem:[#allocation5 + $0x12a8] sm:$0xff] }
 0x1ed   : > { %v3271_v11 = vpack.c.bf16 %v836_v3, %v828_v2  ;;  %v918_v2 = vld [vmem:[#allocation5 + $0x14f0] sm:$0xff]  ;;  %v925_v3 = vld [vmem:[#allocation5 + $0x1528] sm:$0xff] }
 0x1ee   : > { %3252 = vmatpush1.bf16.msra.mxu0 %v3251_v13  ;;  %v3273_v13 = vpack.c.bf16 %v853_v8, %v845_v7  ;;  %v3293_v9 = vpack.c.bf16 %v933_v4, %v925_v3 }
 0x1ef   : > { %3508 = vmatpush1.bf16.msra.mxu1 %v3507_v14  ;;  %3254 = vmatprep.subr.bf16.mxu0 %v3253_v15  ;;  %v844_v14 = vld [vmem:[#allocation5 + $0x12a0] sm:$0xff] }
 0x1f0   : > { %3510 = vmatprep.subr.bf16.mxu1 %v3509_v19  ;;  %v852_v15 = vld [vmem:[#allocation5 + $0x12e0] sm:$0xff]  ;;  %v861_v19 = vld [vmem:[#allocation5 + $0x1328] sm:$0xff] }
 0x1f1   : > { %2018 = vmatmul.mubr.f32.vlgmr.msra.gmra.mrb[2].mxu0 %v3759_v35  ;;  %v3275_v23 = vpack.c.bf16 %v852_v15, %v844_v14  ;;  %v934_v14 = vld [vmem:[#allocation5 + $0x1570] sm:$0xff]  ;;  %v941_v15 = vld [vmem:[#allocation5 + $0x15a8] sm:$0xff] }
 0x1f2   : > { %3256 = vmatpush1.bf16.msra.mxu0 %v3255_v25  ;;  %2302 = vmatmul.mubr.f32.vlgmr.msra.gmra.mrb[2].mxu1 %v3759_v35  ;;  %v3277_v25 = vpack.c.bf16 %v869_v20, %v861_v19  ;;  %v3297_v21 = vpack.c.bf16 %v949_v16, %v941_v15 }
 0x1f3   : > { %3512 = vmatpush1.bf16.msra.mxu1 %v3511_v26  ;;  %3258 = vmatprep.subr.bf16.mxu0 %v3257_v27  ;;  %v860_v26 = vld [vmem:[#allocation5 + $0x1320] sm:$0xff] }
 0x1f4   : > { %3514 = vmatprep.subr.bf16.mxu1 %v3513_v31  ;;  %2088 = vmatprep.mubr.f32.mxu0 %v3760_v48  ;;  %v868_v27 = vld [vmem:[#allocation5 + $0x1360] sm:$0xff]  ;;  %v877_v31 = vld [vmem:[#allocation5 + $0x13a8] sm:$0xff] }
 0x1f5   : > { %2372 = vmatprep.mubr.f32.mxu1 %v3760_v48  ;;  %v3279_v35 = vpack.c.bf16 %v868_v27, %v860_v26  ;;  %v3281_v37 = vpack.c.bf16 %v885_v32, %v877_v31  ;;  %v950_v26 = vld [vmem:[#allocation5 + $0x15f0] sm:$0xff]  ;;  %v957_v27 = vld [vmem:[#allocation5 + $0x1628] sm:$0xff] }
 0x1f6   : > { %3260 = vmatpush1.bf16.msra.mxu0 %v3259_v38  ;;  %v876_v38 = vld [vmem:[#allocation5 + $0x13a0] sm:$0xff]  ;;  %v3301_v33 = vpack.c.bf16 %v965_v28, %v957_v27 }
 0x1f7   : > { %3516 = vmatpush1.bf16.msra.mxu1 %v3515_v39  ;;  %3262 = vmatprep.subr.bf16.mxu0 %v3261_v40  ;;  %v884_v39 = vld [vmem:[#allocation5 + $0x13e0] sm:$0xff]  ;;  %v878_v40 = vld [vmem:[#allocation5 + $0x13b0] sm:$0xff] }
 0x1f8   : > { %3518 = vmatprep.subr.bf16.mxu1 %v3517_v44  ;;  %v901_v44 = vld [vmem:[#allocation5 + $0x1468] sm:$0xff]  ;;  %v3283_v47 = vpack.c.bf16 %v884_v39, %v876_v38  ;;  %v3539_v48 = vpack.c.bf16 %v886_v42, %v878_v40  ;;  %v966_v38 = vld [vmem:[#allocation5 + $0x1670] sm:$0xff]  ;;  %v983_v42 = vld [vmem:[#allocation5 + $0x16f8] sm:$0xff] }
 0x1f9   : > { %v3285_v49 = vpack.c.bf16 %v901_v44, %v893_v43  ;;  %v973_v39 = vld [vmem:[#allocation5 + $0x16a8] sm:$0xff] }
 0x1fa   : > { %3264 = vmatpush1.bf16.msra.mxu0 %v3263_v51  ;;  %v900_v51 = vld [vmem:[#allocation5 + $0x1460] sm:$0xff]  ;;  %v981_v40 = vld [vmem:[#allocation5 + $0x16e8] sm:$0xff] }
 0x1fb   : > { %3520 = vmatpush1.bf16.msra.mxu1 %v3519_v52  ;;  %3266 = vmatprep.subr.bf16.mxu0 %v3265_v53  ;;  %v894_v52 = vld [vmem:[#allocation5 + $0x1430] sm:$0xff]  ;;  %v3541_v53 = vpack.c.bf16 %v903_v46, %v895_v45  ;;  %v3287_v59 = vpack.c.bf16 %v900_v51, %v892_v50  ;;  %v3305_v45 = vpack.c.bf16 %v981_v40, %v973_v39  ;;  %v972_v46 = vld [vmem:[#allocation5 + $0x16a0] sm:$0xff]  ;;  %v989_v51 = vld [vmem:[#allocation5 + $0x1728] sm:$0xff] }
 0x1fc   : > { %3522 = vmatprep.subr.bf16.mxu1 %v3521_v57  ;;  %v911_v57 = vld [vmem:[#allocation5 + $0x14b8] sm:$0xff]  ;;  %v3543_v60 = vpack.c.bf16 %v902_v54, %v894_v52  ;;  %v982_v50 = vld [vmem:[#allocation5 + $0x16f0] sm:$0xff]  ;;  %v997_v52 = vld [vmem:[#allocation5 + $0x1768] sm:$0xff] }
 0x1fd   : > { %v999_v54 = vld [vmem:[#allocation5 + $0x1778] sm:$0xff] }
 0x1fe   : > { %3268 = vmatpush1.bf16.msra.mxu0 %v3267_v63  ;;  %v916_v63 = vld [vmem:[#allocation5 + $0x14e0] sm:$0xff]  ;;  %v1063_v39 = vld [vmem:[#allocation5 + $0x1978] sm:$0xff] }
 0x1ff   : > { %3524 = vmatpush1.bf16.msra.mxu1 %v3523_v0  ;;  %3270 = vmatprep.subr.bf16.mxu0 %v3269_v1  ;;  %v910_v0 = vld [vmem:[#allocation5 + $0x14b0] sm:$0xff]  ;;  %v3545_v1 = vpack.c.bf16 %v919_v58, %v911_v57  ;;  %v3291_v7 = vpack.c.bf16 %v916_v63, %v908_v62  ;;  %v3309_v57 = vpack.c.bf16 %v997_v52, %v989_v51  ;;  %v988_v58 = vld [vmem:[#allocation5 + $0x1720] sm:$0xff]  ;;  %v1005_v63 = vld [vmem:[#allocation5 + $0x17a8] sm:$0xff] }
 0x200   : > { %3526 = vmatprep.subr.bf16.mxu1 %v3525_v5  ;;  %v927_v5 = vld [vmem:[#allocation5 + $0x1538] sm:$0xff]  ;;  %v3547_v8 = vpack.c.bf16 %v918_v2, %v910_v0  ;;  %v998_v62 = vld [vmem:[#allocation5 + $0x1770] sm:$0xff]  ;;  %v1013_v0 = vld [vmem:[#allocation5 + $0x17e8] sm:$0xff] }
 0x201   : > { %v1015_v2 = vld [vmem:[#allocation5 + $0x17f8] sm:$0xff] }
 0x202   : > { %3272 = vmatpush1.bf16.msra.mxu0 %v3271_v11  ;;  %v932_v11 = vld [vmem:[#allocation5 + $0x1560] sm:$0xff]  ;;  %v1071_v51 = vld [vmem:[#allocation5 + $0x19b8] sm:$0xff] }
 0x203   : > { %3528 = vmatpush1.bf16.msra.mxu1 %v3527_v12  ;;  %3274 = vmatprep.subr.bf16.mxu0 %v3273_v13  ;;  %v926_v12 = vld [vmem:[#allocation5 + $0x1530] sm:$0xff]  ;;  %v3549_v13 = vpack.c.bf16 %v935_v6, %v927_v5  ;;  %v3295_v19 = vpack.c.bf16 %v932_v11, %v924_v10  ;;  %v3313_v5 = vpack.c.bf16 %v1013_v0, %v1005_v63  ;;  %v1004_v6 = vld [vmem:[#allocation5 + $0x17a0] sm:$0xff]  ;;  %v1021_v11 = vld [vmem:[#allocation5 + $0x1828] sm:$0xff] }
 0x204   : > { %3530 = vmatprep.subr.bf16.mxu1 %v3529_v17  ;;  %v943_v17 = vld [vmem:[#allocation5 + $0x15b8] sm:$0xff]  ;;  %v3551_v20 = vpack.c.bf16 %v934_v14, %v926_v12  ;;  %v1014_v10 = vld [vmem:[#allocation5 + $0x17f0] sm:$0xff]  ;;  %v1029_v12 = vld [vmem:[#allocation5 + $0x1868] sm:$0xff] }
 0x205   : > { %v1031_v14 = vld [vmem:[#allocation5 + $0x1878] sm:$0xff]  ;;  %v1093_v63 = vld [vmem:[#allocation5 + $0x1a68] sm:$0xff] }
 0x206   : > { %3276 = vmatpush1.bf16.msra.mxu0 %v3275_v23  ;;  %v948_v23 = vld [vmem:[#allocation5 + $0x15e0] sm:$0xff]  ;;  %v1079_v52 = vld [vmem:[#allocation5 + $0x19f8] sm:$0xff] }
 0x207   : > { %3532 = vmatpush1.bf16.msra.mxu1 %v3531_v24  ;;  %3278 = vmatprep.subr.bf16.mxu0 %v3277_v25  ;;  %v942_v24 = vld [vmem:[#allocation5 + $0x15b0] sm:$0xff]  ;;  %v3553_v25 = vpack.c.bf16 %v951_v18, %v943_v17  ;;  %v3299_v31 = vpack.c.bf16 %v948_v23, %v940_v22  ;;  %v3317_v17 = vpack.c.bf16 %v1029_v12, %v1021_v11  ;;  %v1020_v18 = vld [vmem:[#allocation5 + $0x1820] sm:$0xff]  ;;  %v1037_v23 = vld [vmem:[#allocation5 + $0x18a8] sm:$0xff] }
 0x208   : > { %3534 = vmatprep.subr.bf16.mxu1 %v3533_v29  ;;  %v959_v29 = vld [vmem:[#allocation5 + $0x1638] sm:$0xff]  ;;  %v3555_v32 = vpack.c.bf16 %v950_v26, %v942_v24  ;;  %v1030_v22 = vld [vmem:[#allocation5 + $0x1870] sm:$0xff]  ;;  %v1045_v24 = vld [vmem:[#allocation5 + $0x18e8] sm:$0xff] }
 0x209   : > { %v1047_v26 = vld [vmem:[#allocation5 + $0x18f8] sm:$0xff]  ;;  %v1101_v11 = vld [vmem:[#allocation5 + $0x1aa8] sm:$0xff] }
 0x20a   : > { %3280 = vmatpush1.bf16.msra.mxu0 %v3279_v35  ;;  %v964_v35 = vld [vmem:[#allocation5 + $0x1660] sm:$0xff]  ;;  %v1087_v0 = vld [vmem:[#allocation5 + $0x1a38] sm:$0xff]  ;;  %v1109_v12 = vld [vmem:[#allocation5 + $0x1ae8] sm:$0xff] }
 0x20b   : > { %3536 = vmatpush1.bf16.msra.mxu1 %v3535_v36  ;;  %3282 = vmatprep.subr.bf16.mxu0 %v3281_v37  ;;  %v958_v36 = vld [vmem:[#allocation5 + $0x1630] sm:$0xff]  ;;  %v3557_v37 = vpack.c.bf16 %v967_v30, %v959_v29  ;;  %v3303_v43 = vpack.c.bf16 %v964_v35, %v956_v34  ;;  %v3321_v29 = vpack.c.bf16 %v1045_v24, %v1037_v23  ;;  %v1036_v30 = vld [vmem:[#allocation5 + $0x18a0] sm:$0xff]  ;;  %v1053_v35 = vld [vmem:[#allocation5 + $0x1928] sm:$0xff] }
 0x20c   : > { %3538 = vmatprep.subr.bf16.mxu1 %v3537_v41  ;;  %v975_v41 = vld [vmem:[#allocation5 + $0x16b8] sm:$0xff]  ;;  %v3559_v44 = vpack.c.bf16 %v966_v38, %v958_v36  ;;  %v1046_v34 = vld [vmem:[#allocation5 + $0x18f0] sm:$0xff]  ;;  %v1061_v36 = vld [vmem:[#allocation5 + $0x1968] sm:$0xff] }
 0x20d   : > { %v1055_v38 = vld [vmem:[#allocation5 + $0x1938] sm:$0xff]  ;;  %v1100_v23 = vld [vmem:[#allocation5 + $0x1aa0] sm:$0xff] }
 0x20e   : > { %3284 = vmatpush1.bf16.msra.mxu0 %v3283_v47  ;;  %v980_v47 = vld [vmem:[#allocation5 + $0x16e0] sm:$0xff] }
 0x20f   : > { %3540 = vmatpush1.bf16.msra.mxu1 %v3539_v48  ;;  %3286 = vmatprep.subr.bf16.mxu0 %v3285_v49  ;;  %v974_v48 = vld [vmem:[#allocation5 + $0x16b0] sm:$0xff]  ;;  %v3561_v49 = vpack.c.bf16 %v983_v42, %v975_v41  ;;  %v3307_v55 = vpack.c.bf16 %v980_v47, %v972_v46  ;;  %v3325_v42 = vpack.c.bf16 %v1061_v36, %v1053_v35  ;;  %v1108_v24 = vld [vmem:[#allocation5 + $0x1ae0] sm:$0xff] }
 0x210   : > { %3542 = vmatprep.subr.bf16.mxu1 %v3541_v53  ;;  %v991_v53 = vld [vmem:[#allocation5 + $0x1738] sm:$0xff]  ;;  %v3563_v56 = vpack.c.bf16 %v982_v50, %v974_v48  ;;  %v3581_v46 = vpack.c.bf16 %v1063_v39, %v1055_v38  ;;  %v1062_v47 = vld [vmem:[#allocation5 + $0x1970] sm:$0xff]  ;;  %v1069_v48 = vld [vmem:[#allocation5 + $0x19a8] sm:$0xff]  ;;  %v3339_v35 = vpack.c.bf16 %v1108_v24, %v1100_v23 }
 0x211   : > { %v3762_v50 = vld [vmem:[%s4160_s28 + $0x38] sm:$0xff]  ;;  %v1116_v39 = vld [vmem:[#allocation5 + $0x1b20] sm:$0xff] }
 0x212   : > { %3288 = vmatpush1.bf16.msra.mxu0 %v3287_v59  ;;  %v996_v59 = vld [vmem:[#allocation5 + $0x1760] sm:$0xff] }
 0x213   : > { %3544 = vmatpush1.bf16.msra.mxu1 %v3543_v60  ;;  %3290 = vmatprep.subr.bf16.mxu0 %v3289_v61  ;;  %v990_v60 = vld [vmem:[#allocation5 + $0x1730] sm:$0xff]  ;;  %v3565_v61 = vpack.c.bf16 %v999_v54, %v991_v53  ;;  %v3311_v3 = vpack.c.bf16 %v996_v59, %v988_v58  ;;  %v1274_v53 = vlaneseq  ;;  %v1076_v58 = vld [vmem:[#allocation5 + $0x19e0] sm:$0xff] }
 0x214   : > { %3546 = vmatprep.subr.bf16.mxu1 %v3545_v1  ;;  %v1007_v1 = vld [vmem:[#allocation5 + $0x17b8] sm:$0xff]  ;;  %v3567_v4 = vpack.c.bf16 %v998_v62, %v990_v60  ;;  %v1070_v59 = vld [vmem:[#allocation5 + $0x19b0] sm:$0xff]  ;;  %v3585_v60 = vpack.c.bf16 %v1079_v52, %v1071_v51  ;;  %v1085_v62 = vld [vmem:[#allocation5 + $0x1a28] sm:$0xff] }
 0x215   : > { %v1143_v51 = vld [vmem:[#allocation5 + $0x1bf8] sm:$0xff] }
 0x216   : > { %3292 = vmatpush1.bf16.msra.mxu0 %v3291_v7  ;;  %v1012_v7 = vld [vmem:[#allocation5 + $0x17e0] sm:$0xff] }
 0x217   : > { %3548 = vmatpush1.bf16.msra.mxu1 %v3547_v8  ;;  %3294 = vmatprep.subr.bf16.mxu0 %v3293_v9  ;;  %v1006_v8 = vld [vmem:[#allocation5 + $0x17b0] sm:$0xff]  ;;  %v3569_v9 = vpack.c.bf16 %v1015_v2, %v1007_v1  ;;  %v3315_v15 = vpack.c.bf16 %v1012_v7, %v1004_v6  ;;  %v1095_v1 = vld [vmem:[#allocation5 + $0x1a78] sm:$0xff]  ;;  %v4185_v2 = vshrl.u32 %v1274_v53, 7  ;;  %v1084_v6 = vld [vmem:[#allocation5 + $0x1a20] sm:$0xff] }
 0x218   : > { %3550 = vmatprep.subr.bf16.mxu1 %v3549_v13  ;;  %v1023_v13 = vld [vmem:[#allocation5 + $0x1838] sm:$0xff]  ;;  %v3571_v16 = vpack.c.bf16 %v1014_v10, %v1006_v8  ;;  %v1092_v7 = vld [vmem:[#allocation5 + $0x1a60] sm:$0xff]  ;;  %v1086_v8 = vld [vmem:[#allocation5 + $0x1a30] sm:$0xff] }
 0x219   : > { %v1094_v10 = vld [vmem:[#allocation5 + $0x1a70] sm:$0xff] }
 0x21a   : > { %3296 = vmatpush1.bf16.msra.mxu0 %v3295_v19  ;;  %v1028_v19 = vld [vmem:[#allocation5 + $0x1860] sm:$0xff] }
 0x21b   : > { %3552 = vmatpush1.bf16.msra.mxu1 %v3551_v20  ;;  %3298 = vmatprep.subr.bf16.mxu0 %v3297_v21  ;;  %v1022_v20 = vld [vmem:[#allocation5 + $0x1830] sm:$0xff]  ;;  %v3573_v21 = vpack.c.bf16 %v1031_v14, %v1023_v13  ;;  %v3319_v27 = vpack.c.bf16 %v1028_v19, %v1020_v18  ;;  %v1276_v13 = vsub.s32 0, %v4185_v2  ;;  %v1103_v14 = vld [vmem:[#allocation5 + $0x1ab8] sm:$0xff]  ;;  %v1284_v18 = vsub.s32 2, %v4185_v2 }
 0x21c   : > { %3554 = vmatprep.subr.bf16.mxu1 %v3553_v25  ;;  %v1039_v25 = vld [vmem:[#allocation5 + $0x18b8] sm:$0xff]  ;;  %v3575_v28 = vpack.c.bf16 %v1030_v22, %v1022_v20  ;;  %v1280_v19 = vsub.s32 1, %v4185_v2  ;;  %v3591_v20 = vpack.c.bf16 %v1094_v10, %v1086_v8  ;;  %v3337_v22 = vpack.c.bf16 %v1109_v12, %v1101_v11  ;;  %v1148_v12 = vld [vmem:[#allocation5 + $0x1c20] sm:$0xff] }
 0x21d   : > { %v1159_v8 = vld [vmem:[#allocation5 + $0x1c78] sm:$0xff] }
 0x21e   : > { %3300 = vmatpush1.bf16.msra.mxu0 %v3299_v31  ;;  %v1044_v31 = vld [vmem:[#allocation5 + $0x18e0] sm:$0xff] }
 0x21f   : > { %3556 = vmatpush1.bf16.msra.mxu1 %v3555_v32  ;;  %3302 = vmatprep.subr.bf16.mxu0 %v3301_v33  ;;  %v1038_v32 = vld [vmem:[#allocation5 + $0x18b0] sm:$0xff]  ;;  %v3577_v33 = vpack.c.bf16 %v1047_v26, %v1039_v25  ;;  %v3323_v40 = vpack.c.bf16 %v1044_v31, %v1036_v30  ;;  %v1119_v31 = vld [vmem:[#allocation5 + $0x1b38] sm:$0xff] }
 0x220   : > { %3558 = vmatprep.subr.bf16.mxu1 %v3557_v37  ;;  %v3761_v37 = vld [vmem:[%s4160_s28 + $0x20] sm:$0xff]  ;;  %v3579_v41 = vpack.c.bf16 %v1046_v34, %v1038_v32  ;;  %v1102_v25 = vld [vmem:[#allocation5 + $0x1ab0] sm:$0xff]  ;;  %v1127_v32 = vld [vmem:[#allocation5 + $0x1b78] sm:$0xff] }
 0x222   : > { %3304 = vmatpush1.bf16.msra.mxu0 %v3303_v43  ;;  %v1052_v43 = vld [vmem:[#allocation5 + $0x1920] sm:$0xff] }
 0x223   : > { %3560 = vmatpush1.bf16.msra.mxu1 %v3559_v44  ;;  %3306 = vmatprep.subr.bf16.mxu0 %v3305_v45  ;;  %v1060_v44 = vld [vmem:[#allocation5 + $0x1960] sm:$0xff]  ;;  %v1054_v45 = vld [vmem:[#allocation5 + $0x1930] sm:$0xff] }
 0x224   : > { %3562 = vmatprep.subr.bf16.mxu1 %v3561_v49  ;;  %v1077_v49 = vld [vmem:[#allocation5 + $0x19e8] sm:$0xff]  ;;  %v3327_v54 = vpack.c.bf16 %v1060_v44, %v1052_v43  ;;  %v3597_v43 = vpack.c.bf16 %v1127_v32, %v1119_v31  ;;  %v1126_v44 = vld [vmem:[#allocation5 + $0x1b70] sm:$0xff]  ;;  %v1183_v32 = vld [vmem:[#allocation5 + $0x1d38] sm:$0xff] }
 0x225   : > { %v1189_v31 = vld [vmem:[#allocation5 + $0x1d68] sm:$0xff] }
 0x226   : > { %3308 = vmatpush1.bf16.msra.mxu0 %v3307_v55  ;;  %v3583_v55 = vpack.c.bf16 %v1062_v47, %v1054_v45  ;;  %v1133_v45 = vld [vmem:[#allocation5 + $0x1ba8] sm:$0xff] }
 0x227   : > { %3564 = vmatpush1.bf16.msra.mxu1 %v3563_v56  ;;  %3310 = vmatprep.subr.bf16.mxu0 %v3309_v57  ;;  %v3329_v56 = vpack.c.bf16 %v1077_v49, %v1069_v48  ;;  %v1068_v57 = vld [vmem:[#allocation5 + $0x19a0] sm:$0xff] }
 0x228   : > { %3566 = vmatprep.subr.bf16.mxu1 %v3565_v61  ;;  %v1078_v61 = vld [vmem:[#allocation5 + $0x19f0] sm:$0xff] }
 0x22a   : > { %3312 = vmatpush1.bf16.msra.mxu0 %v3311_v3  ;;  %v3331_v3 = vpack.c.bf16 %v1076_v58, %v1068_v57 }
 0x22b   : > { %3568 = vmatpush1.bf16.msra.mxu1 %v3567_v4  ;;  %3314 = vmatprep.subr.bf16.mxu0 %v3313_v5  ;;  %v3587_v4 = vpack.c.bf16 %v1078_v61, %v1070_v59  ;;  %v3333_v5 = vpack.c.bf16 %v1093_v63, %v1085_v62  ;;  %v1140_v61 = vld [vmem:[#allocation5 + $0x1be0] sm:$0xff]  ;;  %v1134_v62 = vld [vmem:[#allocation5 + $0x1bb0] sm:$0xff] }
 0x22c   : > { %3570 = vmatprep.subr.bf16.mxu1 %v3569_v9  ;;  %v3589_v9 = vpack.c.bf16 %v1095_v1, %v1087_v0 }
 0x22e   : > { %3316 = vmatpush1.bf16.msra.mxu0 %v3315_v15  ;;  %v1111_v15 = vld [vmem:[#allocation5 + $0x1af8] sm:$0xff] }
 0x22f   : > { %3572 = vmatpush1.bf16.msra.mxu1 %v3571_v16  ;;  %3318 = vmatprep.subr.bf16.mxu0 %v3317_v17  ;;  %v3335_v16 = vpack.c.bf16 %v1092_v7, %v1084_v6  ;;  %v4188_v17 = vld [vmem:[#allocation7] sm:$0xff]  ;;  %v3593_v26 = vpack.c.bf16 %v1111_v15, %v1103_v14  ;;  %v1151_v7 = vld [vmem:[#allocation5 + $0x1c38] sm:$0xff]  ;;  %v1150_v14 = vld [vmem:[#allocation5 + $0x1c30] sm:$0xff] }
 0x230   : > { %3574 = vmatprep.subr.bf16.mxu1 %v3573_v21  ;;  %v1288_v21 = vsub.s32 3, %v4185_v2  ;;  %v1277_v30 = vrot.slane %v4188_v17, %v1276_v13  ;;  %v1281_v34 = vrot.slane %v4188_v17, %v1280_v19  ;;  %v1156_v13 = vld [vmem:[#allocation5 + $0x1c60] sm:$0xff]  ;;  %v3605_v15 = vpack.c.bf16 %v1159_v8, %v1151_v7  ;;  %v1173_v19 = vld [vmem:[#allocation5 + $0x1ce8] sm:$0xff] }
 0x231   : > { %2089 = vmatmul.mubr.f32.vlgmr.msra.gmra.mrb[2].mxu0 %v3761_v37 }
 0x232   : > { %3320 = vmatpush1.bf16.msra.mxu0 %v3319_v27  ;;  %2373 = vmatmul.mubr.f32.vlgmr.msra.gmra.mrb[2].mxu1 %v3761_v37  ;;  %v1110_v27 = vld [vmem:[#allocation5 + $0x1af0] sm:$0xff]  ;;  %v1289_v36 = vrot.slane %v4188_v17, %v1288_v21  ;;  %v1175_v21 = vld [vmem:[#allocation5 + $0x1cf8] sm:$0xff] }
 0x233   : > { %3576 = vmatpush1.bf16.msra.mxu1 %v3575_v28  ;;  %3322 = vmatprep.subr.bf16.mxu0 %v3321_v29  ;;  %v1117_v28 = vld [vmem:[#allocation5 + $0x1b28] sm:$0xff]  ;;  %v3595_v37 = vpack.c.bf16 %v1110_v27, %v1102_v25  ;;  %v1164_v25 = vld [vmem:[#allocation5 + $0x1ca0] sm:$0xff]  ;;  %v1166_v27 = vld [vmem:[#allocation5 + $0x1cb0] sm:$0xff] }
 0x234   : > { %3578 = vmatprep.subr.bf16.mxu1 %v3577_v33  ;;  %2159 = vmatprep.mubr.f32.mxu0 %v3762_v50  ;;  %v1125_v29 = vld [vmem:[#allocation5 + $0x1b68] sm:$0xff]  ;;  %v1285_v33 = vrot.slane %v4188_v17, %v1284_v18 }
 0x235   : > { %2443 = vmatprep.mubr.f32.mxu1 %v3762_v50  ;;  %v3341_v38 = vpack.c.bf16 %v1125_v29, %v1117_v28  ;;  %v1135_v50 = vld [vmem:[#allocation5 + $0x1bb8] sm:$0xff]  ;;  %v1165_v18 = vld [vmem:[#allocation5 + $0x1ca8] sm:$0xff]  ;;  %v1174_v29 = vld [vmem:[#allocation5 + $0x1cf0] sm:$0xff] }
 0x236   : > { %3324 = vmatpush1.bf16.msra.mxu0 %v3323_v40  ;;  %v1124_v40 = vld [vmem:[#allocation5 + $0x1b60] sm:$0xff]  ;;  %v3601_v1 = vpack.c.bf16 %v1143_v51, %v1135_v50  ;;  %v3353_v24 = vpack.c.bf16 %v1173_v19, %v1165_v18  ;;  %v1198_v51 = vld [vmem:[#allocation5 + $0x1db0] sm:$0xff]  ;;  %v1247_v18 = vld [vmem:[#allocation5 + $0x1f38] sm:$0xff] }
 0x237   : > { %3580 = vmatpush1.bf16.msra.mxu1 %v3579_v41  ;;  %3326 = vmatprep.subr.bf16.mxu0 %v3325_v42  ;;  %v1118_v41 = vld [vmem:[#allocation5 + $0x1b30] sm:$0xff]  ;;  %v1204_v50 = vld [vmem:[#allocation5 + $0x1de0] sm:$0xff]  ;;  %v1255_v19 = vld [vmem:[#allocation5 + $0x1f78] sm:$0xff] }
 0x238   : > { %3582 = vmatprep.subr.bf16.mxu1 %v3581_v46  ;;  %v1141_v46 = vld [vmem:[#allocation5 + $0x1be8] sm:$0xff]  ;;  %v3599_v58 = vpack.c.bf16 %v1126_v44, %v1118_v41  ;;  %v1190_v41 = vld [vmem:[#allocation5 + $0x1d70] sm:$0xff]  ;;  %v1199_v44 = vld [vmem:[#allocation5 + $0x1db8] sm:$0xff] }
 0x239   : > { %v3345_v59 = vpack.c.bf16 %v1141_v46, %v1133_v45  ;;  %v1207_v45 = vld [vmem:[#allocation5 + $0x1df8] sm:$0xff] }
 0x23a   : > { %3328 = vmatpush1.bf16.msra.mxu0 %v3327_v54 }
 0x23b   : > { %3584 = vmatpush1.bf16.msra.mxu1 %v3583_v55  ;;  %3330 = vmatprep.subr.bf16.mxu0 %v3329_v56  ;;  %v3343_v55 = vpack.c.bf16 %v1124_v40, %v1116_v39  ;;  %v1182_v39 = vld [vmem:[#allocation5 + $0x1d30] sm:$0xff] }
 0x23c   : > { %3586 = vmatprep.subr.bf16.mxu1 %v3585_v60  ;;  %v1132_v60 = vld [vmem:[#allocation5 + $0x1ba0] sm:$0xff] }
 0x23e   : > { %3332 = vmatpush1.bf16.msra.mxu0 %v3331_v3  ;;  %v1142_v3 = vld [vmem:[#allocation5 + $0x1bf0] sm:$0xff] }
 0x23f   : > { %3588 = vmatpush1.bf16.msra.mxu1 %v3587_v4  ;;  %3334 = vmatprep.subr.bf16.mxu0 %v3333_v5  ;;  %v1149_v4 = vld [vmem:[#allocation5 + $0x1c28] sm:$0xff]  ;;  %v3603_v10 = vpack.c.bf16 %v1142_v3, %v1134_v62  ;;  %v1220_v62 = vld [vmem:[#allocation5 + $0x1e60] sm:$0xff] }
 0x240   : > { %3590 = vmatprep.subr.bf16.mxu1 %v3589_v9  ;;  %v1157_v5 = vld [vmem:[#allocation5 + $0x1c68] sm:$0xff]  ;;  %v3347_v9 = vpack.c.bf16 %v1140_v61, %v1132_v60  ;;  %v1212_v61 = vld [vmem:[#allocation5 + $0x1e20] sm:$0xff] }
 0x241   : > { %v3349_v11 = vpack.c.bf16 %v1157_v5, %v1149_v4  ;;  %v1229_v3 = vld [vmem:[#allocation5 + $0x1ea8] sm:$0xff]  ;;  %v1231_v5 = vld [vmem:[#allocation5 + $0x1eb8] sm:$0xff]  ;;  %v3367_v7 = vpack.c.bf16 %v1220_v62, %v1212_v61 }
 0x242   : > { %3336 = vmatpush1.bf16.msra.mxu0 %v3335_v16  ;;  %v1158_v16 = vld [vmem:[#allocation5 + $0x1c70] sm:$0xff]  ;;  %v1237_v4 = vld [vmem:[#allocation5 + $0x1ee8] sm:$0xff] }
 0x243   : > { %3592 = vmatpush1.bf16.msra.mxu1 %v3591_v20  ;;  %3338 = vmatprep.subr.bf16.mxu0 %v3337_v22  ;;  %v1167_v20 = vld [vmem:[#allocation5 + $0x1cb8] sm:$0xff]  ;;  %v3351_v22 = vpack.c.bf16 %v1156_v13, %v1148_v12  ;;  %v3607_v23 = vpack.c.bf16 %v1158_v16, %v1150_v14  ;;  %v1230_v12 = vld [vmem:[#allocation5 + $0x1eb0] sm:$0xff]  ;;  %v1253_v16 = vld [vmem:[#allocation5 + $0x1f68] sm:$0xff] }
 0x244   : > { %v1593_v42 = vpop.f32.mrb[0].mxu0  ;;  %3594 = vmatprep.subr.bf16.mxu1 %v3593_v26  ;;  %v1172_v26 = vld [vmem:[#allocation5 + $0x1ce0] sm:$0xff]  ;;  %v3609_v28 = vpack.c.bf16 %v1175_v21, %v1167_v20  ;;  %v1238_v14 = vld [vmem:[#allocation5 + $0x1ef0] sm:$0xff] }
 0x245   : > { %v3637_v47 = vadd.f32 %v1593_v42, %v1277_v30  ;;  %v1877_v48 = vpop.f32.mrb[0].mxu1  ;;  %v1595_v49 = vpop.f32.mrb[1].mxu0  ;;  %v1181_v30 = vld [vmem:[#allocation5 + $0x1d28] sm:$0xff]  ;;  %v3627_v21 = vpack.c.bf16 %v1238_v14, %v1230_v12 }
 0x246   : > { %v3639_v52 = vadd.f32 %v1877_v48, %v1285_v33  ;;  %v3638_v53 = vadd.f32 %v1595_v49, %v1281_v34  ;;  %v1879_v54 = vpop.f32.mrb[1].mxu1  ;;  %3340 = vmatpush1.bf16.msra.mxu0 %v3339_v35  ;;  %v1191_v33 = vld [vmem:[#allocation5 + $0x1d78] sm:$0xff]  ;;  %v3355_v34 = vpack.c.bf16 %v1172_v26, %v1164_v25  ;;  %v3611_v35 = vpack.c.bf16 %v1174_v29, %v1166_v27  ;;  %v1197_v42 = vld [vmem:[#allocation5 + $0x1da8] sm:$0xff]  ;;  %v1196_v49 = vld [vmem:[#allocation5 + $0x1da0] sm:$0xff] }
 0x247   : > { %v2450_v56 = vmax.f32 %v3637_v47, 0.0  ;;  %v3640_v57 = vadd.f32 %v1879_v54, %v1289_v36  ;;  %3596 = vmatpush1.bf16.msra.mxu1 %v3595_v37  ;;  %3342 = vmatprep.subr.bf16.mxu0 %v3341_v38  ;;  %v3357_v36 = vpack.c.bf16 %v1189_v31, %v1181_v30  ;;  %v1180_v37 = vld [vmem:[#allocation5 + $0x1d20] sm:$0xff]  ;;  %v3613_v40 = vpack.c.bf16 %v1191_v33, %v1183_v32  ;;  %v1213_v54 = vld [vmem:[#allocation5 + $0x1e28] sm:$0xff]  ;;  %v1246_v25 = vld [vmem:[#allocation5 + $0x1f30] sm:$0xff] }
 0x248   : > { %v2452_v63 = vmax.f32 %v3639_v52, 0.0  ;;  %v2451_v0 = vmax.f32 %v3638_v53, 0.0  ;;  %3598 = vmatprep.subr.bf16.mxu1 %v3597_v43  ;;  %v1188_v38 = vld [vmem:[#allocation5 + $0x1d60] sm:$0xff]  ;;  %v1205_v43 = vld [vmem:[#allocation5 + $0x1de8] sm:$0xff]  ;;  %v3615_v47 = vpack.c.bf16 %v1190_v41, %v1182_v39  ;;  %v3617_v52 = vpack.c.bf16 %v1207_v45, %v1199_v44  ;;  %v1206_v53 = vld [vmem:[#allocation5 + $0x1df0] sm:$0xff] }
 0x249   : > { %2458 = vst [vmem:[%s4199_s20] sm:$0xff] %v2450_v56  ;;  %v2453_v6 = vmax.f32 %v3640_v57, 0.0  ;;  %v3359_v46 = vpack.c.bf16 %v1188_v38, %v1180_v37  ;;  %v3361_v48 = vpack.c.bf16 %v1205_v43, %v1197_v42  ;;  %v1215_v56 = vld [vmem:[#allocation5 + $0x1e38] sm:$0xff]  ;;  %v3629_v26 = vpack.c.bf16 %v1255_v19, %v1247_v18  ;;  %v1254_v27 = vld [vmem:[#allocation5 + $0x1f70] sm:$0xff]  ;;  %v1269_v29 = vld [vmem:[#allocation5 + $0x1fe8] sm:$0xff] }
 0x24a   : > { %2460 = vst [vmem:[%s4199_s20 + $0x10] sm:$0xff] %v2452_v63  ;;  %2459 = vst [vmem:[%s4199_s20 + $0x8] sm:$0xff] %v2451_v0  ;;  %3344 = vmatpush1.bf16.msra.mxu0 %v3343_v55  ;;  %v1221_v55 = vld [vmem:[#allocation5 + $0x1e68] sm:$0xff]  ;;  %v1223_v57 = vld [vmem:[#allocation5 + $0x1e78] sm:$0xff]  ;;  %v3631_v33 = vpack.c.bf16 %v1254_v27, %v1246_v25  ;;  %v1292_v43 = vsub.s32 4, %v4185_v2  ;;  %v1300_v44 = vsub.s32 6, %v4185_v2 }
 0x24b   : > { %2461 = vst [vmem:[%s4199_s20 + $0x18] sm:$0xff] %v2453_v6  ;;  %3600 = vmatpush1.bf16.msra.mxu1 %v3599_v58  ;;  %3346 = vmatprep.subr.bf16.mxu0 %v3345_v59  ;;  %v3363_v58 = vpack.c.bf16 %v1204_v50, %v1196_v49  ;;  %v3619_v59 = vpack.c.bf16 %v1206_v53, %v1198_v51  ;;  %v1214_v63 = vld [vmem:[#allocation5 + $0x1e30] sm:$0xff]  ;;  %v1239_v6 = vld [vmem:[#allocation5 + $0x1ef8] sm:$0xff]  ;;  %v1296_v45 = vsub.s32 5, %v4185_v2 }
 0x24c   : > { %3602 = vmatprep.subr.bf16.mxu1 %v3601_v1  ;;  %v3365_v60 = vpack.c.bf16 %v1221_v55, %v1213_v54  ;;  %v3621_v0 = vpack.c.bf16 %v1223_v57, %v1215_v56  ;;  %v1222_v1 = vld [vmem:[#allocation5 + $0x1e70] sm:$0xff]  ;;  %v3625_v13 = vpack.c.bf16 %v1239_v6, %v1231_v5  ;;  %v1263_v30 = vld [vmem:[#allocation5 + $0x1fb8] sm:$0xff] }
 0x24d   : > { %v3623_v8 = vpack.c.bf16 %v1222_v1, %v1214_v63  ;;  %v1271_v31 = vld [vmem:[#allocation5 + $0x1ff8] sm:$0xff]  ;;  %v1262_v38 = vld [vmem:[#allocation5 + $0x1fb0] sm:$0xff]  ;;  %v1297_v49 = vrot.slane %v4188_v17, %v1296_v45 }
 0x24e   : > { %3348 = vmatpush1.bf16.msra.mxu0 %v3347_v9  ;;  %v3369_v9 = vpack.c.bf16 %v1237_v4, %v1229_v3  ;;  %v3633_v37 = vpack.c.bf16 %v1271_v31, %v1263_v30  ;;  %v1270_v39 = vld [vmem:[#allocation5 + $0x1ff0] sm:$0xff] }
 0x24f   : > { %3604 = vmatpush1.bf16.msra.mxu1 %v3603_v10  ;;  %3350 = vmatprep.subr.bf16.mxu0 %v3349_v11  ;;  %v1228_v10 = vld [vmem:[#allocation5 + $0x1ea0] sm:$0xff]  ;;  %v3635_v41 = vpack.c.bf16 %v1270_v39, %v1262_v38  ;;  %v3763_v42 = vld [vmem:[%s4160_s28 + $0x30] sm:$0xff] }
 0x250   : > { %3606 = vmatprep.subr.bf16.mxu1 %v3605_v15  ;;  %v1236_v11 = vld [vmem:[#allocation5 + $0x1ee0] sm:$0xff]  ;;  %v1245_v15 = vld [vmem:[#allocation5 + $0x1f28] sm:$0xff] }
 0x251   : > { %v3371_v20 = vpack.c.bf16 %v1236_v11, %v1228_v10 }
 0x252   : > { %3352 = vmatpush1.bf16.msra.mxu0 %v3351_v22  ;;  %v3373_v22 = vpack.c.bf16 %v1253_v16, %v1245_v15 }
 0x253   : > { %3608 = vmatpush1.bf16.msra.mxu1 %v3607_v23  ;;  %3354 = vmatprep.subr.bf16.mxu0 %v3353_v24  ;;  %v1244_v23 = vld [vmem:[#allocation5 + $0x1f20] sm:$0xff] }
 0x254   : > { %3610 = vmatprep.subr.bf16.mxu1 %v3609_v28  ;;  %v1252_v24 = vld [vmem:[#allocation5 + $0x1f60] sm:$0xff]  ;;  %v1261_v28 = vld [vmem:[#allocation5 + $0x1fa8] sm:$0xff] }
 0x255   : > { %v3375_v32 = vpack.c.bf16 %v1252_v24, %v1244_v23 }
 0x256   : > { %3356 = vmatpush1.bf16.msra.mxu0 %v3355_v34  ;;  %v3377_v34 = vpack.c.bf16 %v1269_v29, %v1261_v28 }
 0x257   : > { %3612 = vmatpush1.bf16.msra.mxu1 %v3611_v35  ;;  %3358 = vmatprep.subr.bf16.mxu0 %v3357_v36  ;;  %v1260_v35 = vld [vmem:[#allocation5 + $0x1fa0] sm:$0xff] }
 0x258   : > { %3614 = vmatprep.subr.bf16.mxu1 %v3613_v40  ;;  %v1268_v36 = vld [vmem:[#allocation5 + $0x1fe0] sm:$0xff] }
 0x259   : > { %v3379_v40 = vpack.c.bf16 %v1268_v36, %v1260_v35 }
 0x25a   : > { %3360 = vmatpush1.bf16.msra.mxu0 %v3359_v46  ;;  %v1304_v46 = vsub.s32 7, %v4185_v2 }
 0x25b   : > { %3616 = vmatpush1.bf16.msra.mxu1 %v3615_v47  ;;  %3362 = vmatprep.subr.bf16.mxu0 %v3361_v48  ;;  %v1293_v47 = vrot.slane %v4188_v17, %v1292_v43  ;;  %v1301_v48 = vrot.slane %v4188_v17, %v1300_v44 }
 0x25c   : > { %3618 = vmatprep.subr.bf16.mxu1 %v3617_v52  ;;  %v1305_v50 = vrot.slane %v4188_v17, %v1304_v46 }
 0x25e   : > { %3364 = vmatpush1.bf16.msra.mxu0 %v3363_v58 }
 0x25f   : > { %3620 = vmatpush1.bf16.msra.mxu1 %v3619_v59  ;;  %3366 = vmatprep.subr.bf16.mxu0 %v3365_v60 }
 0x260   : > { %3622 = vmatprep.subr.bf16.mxu1 %v3621_v0 }
 0x262   : > { %3368 = vmatpush1.bf16.msra.mxu0 %v3367_v7 }
 0x263   : > { %3624 = vmatpush1.bf16.msra.mxu1 %v3623_v8  ;;  %3370 = vmatprep.subr.bf16.mxu0 %v3369_v9 }
 0x264   : > { %3626 = vmatprep.subr.bf16.mxu1 %v3625_v13 }
 0x266   : > { %3372 = vmatpush1.bf16.msra.mxu0 %v3371_v20 }
 0x267   : > { %3628 = vmatpush1.bf16.msra.mxu1 %v3627_v21  ;;  %3374 = vmatprep.subr.bf16.mxu0 %v3373_v22 }
 0x268   : > { %3630 = vmatprep.subr.bf16.mxu1 %v3629_v26 }
 0x26a   : > { %3376 = vmatpush1.bf16.msra.mxu0 %v3375_v32 }
 0x26b   : > { %3632 = vmatpush1.bf16.msra.mxu1 %v3631_v33  ;;  %3378 = vmatprep.subr.bf16.mxu0 %v3377_v34 }
 0x26c   : > { %3634 = vmatprep.subr.bf16.mxu1 %v3633_v37 }
 0x26e   : > { %3380 = vmatpush1.bf16.msra.mxu0 %v3379_v40 }
 0x26f   : > { %3636 = vmatpush1.bf16.msra.mxu1 %v3635_v41 }
 0x271   : > { %2160 = vmatmul.mubr.f32.vlgmr.msra.gmra.mrb[2].mxu0 %v3763_v42 }
 0x272   : > { %2444 = vmatmul.mubr.f32.vlgmr.msra.gmra.mrb[2].mxu1 %v3763_v42 }
 0x344   : > { %v2161_v51 = vpop.f32.mrb[2].mxu0 }
 0x345   : > { %v3641_v52 = vadd.f32 %v2161_v51, %v1293_v47  ;;  %v2445_v53 = vpop.f32.mrb[2].mxu1  ;;  %v2163_v54 = vpop.f32.mrb[3].mxu0 }
 0x346   : > { %v3643_v55 = vadd.f32 %v2445_v53, %v1301_v48  ;;  %v3642_v56 = vadd.f32 %v2163_v54, %v1297_v49  ;;  %v2447_v2 = vpop.f32.mrb[3].mxu1 }
 0x347   : > { %v2454_v57 = vmax.f32 %v3641_v52, 0.0  ;;  %v3644_v58 = vadd.f32 %v2447_v2, %v1305_v50 }
 0x348   : > { %v2456_v59 = vmax.f32 %v3643_v55, 0.0  ;;  %v2455_v60 = vmax.f32 %v3642_v56, 0.0 }
 0x349   : > { %2462 = vst [vmem:[%s4199_s20 + $0x20] sm:$0xff] %v2454_v57  ;;  %v2457_v17 = vmax.f32 %v3644_v58, 0.0 }
 0x34a   : > { %2464 = vst [vmem:[%s4199_s20 + $0x30] sm:$0xff] %v2456_v59  ;;  %2463 = vst [vmem:[%s4199_s20 + $0x28] sm:$0xff] %v2455_v60 }
 0x34b   : > { %2465 = vst [vmem:[%s4199_s20 + $0x38] sm:$0xff] %v2457_v17 }
 0x34c   : > { %3863 = shalt.err (!%p3860_p11)
}
 0x34d   : > { %s3864_s21 = scalar_lea.hbm %s4220_s8, 1024  ;;  %s3868_s18 = scalar_lea.hbm %s4275_s3, 2048 }
 0x34e   : > { %p3865_p0 = scmp.ne.s32.totalorder %s4220_s8, %s3864_s21  ;;  %p3869_p6 = scmp.lt.u32.totalorder %s4220_s8, %s4275_s3 }
 0x34f   : > { %p3870_p7 = scmp.lt.u32.totalorder %s3868_s18, %s3864_s21  ;;  %p3872_p8 = scmp.lt.u32.totalorder %s3864_s21, %s4220_s8 }
 0x350   : > { %p3866_p4 = pnand %p3865_p0, %p4290_p12 }
 0x351   : > { %p3871_p2 = por %p3870_p7, %p3869_p6 }
 0x352   : > { %p3867_p13 = pneg %p3866_p4 }
 0x353   : > { %p3873_p1 = por %p3872_p8, %p3871_p2 }
 0x355   : > { %p3874_p10 = pnand %p3873_p1, %p3867_p13 }
 0x357   : > { %3877 = shalt.err (!%p3874_p10)
}
 0x358   : > { %3679 = dma.vmem_to_hbm [thread:$0]  (%p4290_p12), %s4222_s24, 1024, %s4220_s8, %s2467_s15  }
 0x359 PF: > { %s2495_s28 = sand.u32 1, %s3916_s12   ;;  %p4291_p3 = scmp.ne.s32.totalorder %s4283_s23, 0 }
 0x35a   : > { %p4292_p5 = scmp.ge.s32.totalorder %s3936_s17, 2  ;;  %s2496_s20 = scalar_lea.sflag [#allocation4], %s2495_s28 }
 0x35c   : > { %p3693_p9 = pnand %p4292_p5, %p4291_p3 }
 0x35e   : > { %3911 = dma.done.wait (!%p3693_p9), %s2496_s20, 1024  }
 0x35f   : > { %3913 = vsyncadd (!%p3693_p9), %s2496_s20, 4294966272  ;;  %s20_s17 = sadd.s32 1, %s3936_s17   ;;  %s4293_s12 = smov %s3920_s13 }
 0x360   : > { %p17_p11 = scmp.ge.s32.totalorder %s20_s17, 4   ;;  %s4294_s13 = smov %s3924_s14 }
 0x361   : > { %s4295_s14 = smov %s4108_s30  ;;  %s4296_s15 = smov %s3932_s16 }
 0x362   : > { %s4297_s16 = smov %s4299_s11  ;;  %19 = sbr.rel (!%p17_p11) target bundleno = 7 (0x7), region = 92 }
 0x369   :  { %2501 = vsyncpa [#allocation3], 1 }
 0x36a   :  { %2503 = vsyncpa [#allocation3 + $0x1], 1 }
 0x36b   :  { %2504 = vsyncpa [#allocation6], 1 }
 0x36c   :  { %2505 = vsyncpa [#allocation4], 1 }
 0x36d   :  { %2507 = vsyncpa [#allocation4 + $0x1], 1 }

</bundles_post_ra>
